<compile_context>
chip_gen: v6e
topology: v6e:2x2x1
jax: 0.10.0
libtpu: 0.0.40
codegen_flags: <defaults>
</compile_context>

<pallas_src>
import numpy as np
import jax
import jax.numpy as jnp
from jax.experimental import pallas as pl
from jax.experimental.pallas import tpu as pltpu


# -----------------------------------------------------------------------------
# Pallas kernel: one batch-block per grid step.  Inside VMEM it does:
#   1) fused DataEmbedding_wo_pos matmul           (1 matmul)
#   2) per layer: hoisted input projection         (1 matmul)
#                 + sequential LSTM recurrence     (L small matmuls, i/f/g/o order)
#   3) final Linear projection (lane-dense padded)
# Rows inside a block are time-major: row = t * b_blk + j  (j = batch-in-block).
# -----------------------------------------------------------------------------
def make_hybrid_kernel(num_layers, hidden_dim, seq_len, b_blk):
    H = hidden_dim
    L = seq_len

    def kernel(feat_ref, w_emb_ref, *rest):
        lstm_refs = rest[:3 * num_layers]
        (fc_w_ref, fc_b_ref, out_ref,
         pre_ref, seq_ref, h_ref, c_ref) = rest[3 * num_layers:]

        # Fused embedding: feat rows already hold [x[t-1], x[t], x[t+1], x_mark[t]]
        # (circular in t), so the conv-k3 + timeF embedding is one matmul.
        emb = jnp.dot(feat_ref[...], w_emb_ref[...],
                      preferred_element_type=jnp.float32)        # (L*b_blk, E)
        # dropout(p=0.1) is identity in eval mode.

        seq2d = emb
        for layer in range(num_layers):
            wih = lstm_refs[3 * layer][...]        # (E or H, 4H)
            whh = lstm_refs[3 * layer + 1][...]    # (H, 4H)
            bias = lstm_refs[3 * layer + 2][...]   # (1, 4H)  (= b_ih + b_hh)

            # Hoisted input projection: one (L*b_blk, 4H) matmul per layer
            # instead of one M=1 matmul per timestep.
            pre_ref[...] = (jnp.dot(seq2d, wih,
                                    preferred_element_type=jnp.float32) + bias)

            h_ref[...] = jnp.zeros_like(h_ref)
            c_ref[...] = jnp.zeros_like(c_ref)

            def step(t, carry, whh=whh):
                row = t * b_blk
                h = h_ref[...]                                    # (b_blk, H)
                gates = (pre_ref[pl.ds(row, b_blk), :]
                         + jnp.dot(h, whh, preferred_element_type=jnp.float32))
                # Full-width transcendentals (EUP); pick tanh lanes for gate g.
                lane = jax.lax.broadcasted_iota(jnp.int32, gates.shape, 1)
                g_lane = (lane >= 2 * H) & (lane < 3 * H)
                act = jnp.where(g_lane, jnp.tanh(gates), jax.nn.sigmoid(gates))
                i_g = act[:, 0 * H:1 * H]
                f_g = act[:, 1 * H:2 * H]
                g_g = act[:, 2 * H:3 * H]
                o_g = act[:, 3 * H:4 * H]
                c_new = f_g * c_ref[...] + i_g * g_g
                h_new = o_g * jnp.tanh(c_new)
                c_ref[...] = c_new
                h_ref[...] = h_new
                seq_ref[pl.ds(row, b_blk), :] = h_new             # resident scratch
                return carry

            jax.lax.fori_loop(0, L, step, None, unroll=(L <= 16))
            seq2d = seq_ref[...]                                  # (L*b_blk, H)

        # Final Linear, padded to a lane-dense width -> unmasked output store.
        out = (jnp.dot(seq2d, fc_w_ref[...], preferred_element_type=jnp.float32)
               + fc_b_ref[...])                                   # (L*b_blk, out_pad)
        out_ref[...] = out.astype(out_ref.dtype)

    return kernel


def hybrid_forward(x_enc, x_mark_enc, params, *, hidden_dim, num_layers,
                   output_dim, num_blocks=None):
    """Pallas-backed forward of Hybrid (model_name='LSTM', eval mode)."""
    B, L, D_in = x_enc.shape
    _, _, D_mark = x_mark_enc.shape
    H = hidden_dim
    conv_w, mark_w, lstm_params, fc_w, fc_b = params

    # ---- host-side weight prep (tiny, one-time) -----------------------------
    # Fused embedding weight: [conv tap t-1 ; tap t ; tap t+1 ; timeF] -> (K, E)
    w_emb = jnp.concatenate([conv_w[0], conv_w[1], conv_w[2], mark_w], axis=0)
    lstm_flat = []
    for (wih, whh, bih, bhh) in lstm_params:
        lstm_flat += [wih, whh, bih + bhh]              # pre-added biases
    out_pad = ((output_dim + 127) // 128) * 128         # lane-dense output slab
    fc_w_p = jnp.zeros((H, out_pad), jnp.float32).at[:, :output_dim].set(fc_w)
    fc_b_p = jnp.zeros((1, out_pad), jnp.float32).at[:, :output_dim].set(fc_b)
    weight_args = [w_emb] + lstm_flat + [fc_w_p, fc_b_p]

    # ---- host-side input prep: im2col for the circular k=3 conv + timeF -----
    # (pure layout plumbing; all matmuls stay inside the kernel)
    x32 = x_enc.astype(jnp.float32)
    feat = jnp.concatenate(
        [jnp.roll(x32, 1, axis=1), x32, jnp.roll(x32, -1, axis=1),
         x_mark_enc.astype(jnp.float32)], axis=-1)      # (B, L, K)
    K = feat.shape[-1]

    # ---- batch blocking: grid of `num_blocks` independent (parallel) blocks --
    if num_blocks is None:
        num_blocks = 2 if (B % 2 == 0 and B >= 2) else 1   # dual-TC split on v7x
    assert B % num_blocks == 0, "batch must divide evenly into blocks"
    b_blk = B // num_blocks

    # Rows inside each block are time-major: row = t * b_blk + j.
    feat_r = (feat.reshape(num_blocks, b_blk, L, K)
                  .transpose(0, 2, 1, 3)
                  .reshape(num_blocks, L * b_blk, K))

    def full_spec(arr):
        nd = arr.ndim
        return pl.BlockSpec(arr.shape, lambda b, _nd=nd: (0,) * _nd)

    in_specs = ([pl.BlockSpec((None, L * b_blk, K), lambda b: (b, 0, 0))]
                + [full_spec(w) for w in weight_args])
    out_spec = pl.BlockSpec((None, L * b_blk, out_pad), lambda b: (b, 0, 0))

    kernel = make_hybrid_kernel(num_layers, H, L, b_blk)

    out_r = pl.pallas_call(
        kernel,
        out_shape=jax.ShapeDtypeStruct((num_blocks, L * b_blk, out_pad),
                                       jnp.float32),
        grid=(num_blocks,),
        in_specs=in_specs,
        out_specs=out_spec,
        scratch_shapes=[
            pltpu.VMEM((L * b_blk, 4 * H), jnp.float32),   # hoisted pre-gates
            pltpu.VMEM((L * b_blk, H), jnp.float32),       # per-layer seq output
            pltpu.VMEM((b_blk, H), jnp.float32),           # h state
            pltpu.VMEM((b_blk, H), jnp.float32),           # c state
        ],
        compiler_params=pltpu.CompilerParams(
            dimension_semantics=("parallel",)),
    )(feat_r, *weight_args)

    # Undo the block layout: (num_blocks, L*b_blk, out_pad) -> (B, L, output_dim)
    out = (out_r.reshape(num_blocks, L, b_blk, out_pad)
                .transpose(0, 2, 1, 3)
                .reshape(B, L, out_pad))
    return out[..., :output_dim]


# -----------------------------------------------------------------------------
# Pure-JAX reference (same math) for a correctness check.
# -----------------------------------------------------------------------------
def hybrid_reference(x_enc, x_mark_enc, params, *, hidden_dim, num_layers):
    conv_w, mark_w, lstm_params, fc_w, fc_b = params
    H = hidden_dim

    def one(x, xm):
        emb = (jnp.roll(x, 1, axis=0) @ conv_w[0]
               + x @ conv_w[1]
               + jnp.roll(x, -1, axis=0) @ conv_w[2]
               + xm @ mark_w)
        seq = emb
        for layer in range(num_layers):
            wih, whh, bih, bhh = lstm_params[layer]
            h = jnp.zeros((1, H), jnp.float32)
            c = jnp.zeros((1, H), jnp.float32)
            outs = []
            for t in range(seq.shape[0]):
                gates = seq[t:t + 1] @ wih + h @ whh + bih + bhh
                i_g = jax.nn.sigmoid(gates[:, 0 * H:1 * H])
                f_g = jax.nn.sigmoid(gates[:, 1 * H:2 * H])
                g_g = jnp.tanh(gates[:, 2 * H:3 * H])
                o_g = jax.nn.sigmoid(gates[:, 3 * H:4 * H])
                c = f_g * c + i_g * g_g
                h = o_g * jnp.tanh(c)
                outs.append(h)
            seq = jnp.concatenate(outs, axis=0)
        return seq @ fc_w + fc_b

    return jax.vmap(one)(x_enc, x_mark_enc)


# -----------------------------------------------------------------------------
# Deterministic parameter construction (synthetic init, shapes per __init__).
# -----------------------------------------------------------------------------
def init_params(key, *, input_dim, mark_dim, embedding_dim, hidden_dim,
                num_layers, output_dim):
    keys = jax.random.split(key, 8 + 4 * num_layers)
    s = 0.2

    # TokenEmbedding: Conv1d(input_dim, embedding_dim, k=3, bias=False)
    # torch weight shape (E, D_in, 3); store transposed per-tap: (3, D_in, E)
    conv_w_torch = s * jax.random.normal(keys[0], (embedding_dim, input_dim, 3),
                                         jnp.float32)
    conv_w = jnp.transpose(conv_w_torch, (2, 1, 0))

    # TimeFeatureEmbedding: Linear(mark_dim, embedding_dim, bias=False), transposed
    mark_w = s * jax.random.normal(keys[1], (mark_dim, embedding_dim), jnp.float32)

    lstm_params = []
    for layer in range(num_layers):
        d_in = embedding_dim if layer == 0 else hidden_dim
        k0, k1, k2, k3 = keys[2 + 4 * layer: 6 + 4 * layer]
        wih = s * jax.random.normal(k0, (d_in, 4 * hidden_dim), jnp.float32)       # W_ih^T
        whh = s * jax.random.normal(k1, (hidden_dim, 4 * hidden_dim), jnp.float32) # W_hh^T
        bih = s * jax.random.normal(k2, (1, 4 * hidden_dim), jnp.float32)
        bhh = s * jax.random.normal(k3, (1, 4 * hidden_dim), jnp.float32)
        lstm_params.append((wih, whh, bih, bhh))

    fc_w = s * jax.random.normal(keys[-2], (hidden_dim, output_dim), jnp.float32)  # W_fc^T
    fc_b = s * jax.random.normal(keys[-1], (1, output_dim), jnp.float32)
    return conv_w, mark_w, lstm_params, fc_w, fc_b


if __name__ == "__main__":
    # Small config consistent with the module's forward.
    B, L = 2, 8
    input_dim, mark_dim = 4, 4          # freq='h', embed_type='timeF' -> 4 time features
    embedding_dim, hidden_dim = 32, 32
    num_layers, output_dim = 2, 4

    key = jax.random.PRNGKey(0)
    k_x, k_m, k_p = jax.random.split(key, 3)
    x_enc = jax.random.normal(k_x, (B, L, input_dim), jnp.float32)
    x_mark_enc = jax.random.normal(k_m, (B, L, mark_dim), jnp.float32)
    params = init_params(k_p, input_dim=input_dim, mark_dim=mark_dim,
                         embedding_dim=embedding_dim, hidden_dim=hidden_dim,
                         num_layers=num_layers, output_dim=output_dim)

    out = hybrid_forward(x_enc, x_mark_enc, params,
                         hidden_dim=hidden_dim, num_layers=num_layers,
                         output_dim=output_dim)
    out = jax.block_until_ready(out)

    ref = hybrid_reference(x_enc, x_mark_enc, params,
                           hidden_dim=hidden_dim, num_layers=num_layers)
    np.testing.assert_allclose(np.asarray(out), np.asarray(ref),
                               rtol=1e-3, atol=1e-3)
    assert out.shape == (B, L, output_dim)

    print("KERNEL_OK")
</pallas_src>

<mosaic_0001>
module attributes {stable_mosaic.version = 11 : i64} {
  func.func @kernel(%arg0: i32, %arg1: memref<1x8x16xf32, #tpu.memory_space<vmem>>, %arg2: memref<16x32xf32, #tpu.memory_space<vmem>>, %arg3: memref<32x128xf32, #tpu.memory_space<vmem>>, %arg4: memref<32x128xf32, #tpu.memory_space<vmem>>, %arg5: memref<1x128xf32, #tpu.memory_space<vmem>>, %arg6: memref<32x128xf32, #tpu.memory_space<vmem>>, %arg7: memref<32x128xf32, #tpu.memory_space<vmem>>, %arg8: memref<1x128xf32, #tpu.memory_space<vmem>>, %arg9: memref<32x128xf32, #tpu.memory_space<vmem>>, %arg10: memref<1x128xf32, #tpu.memory_space<vmem>>, %arg11: memref<1x8x128xf32, #tpu.memory_space<vmem>>, %arg12: memref<8x128xf32, #tpu.memory_space<vmem>>, %arg13: memref<8x32xf32, #tpu.memory_space<vmem>>, %arg14: memref<1x32xf32, #tpu.memory_space<vmem>>, %arg15: memref<1x32xf32, #tpu.memory_space<vmem>>) attributes {dimension_semantics = [#tpu.dimension_semantics<parallel>], iteration_bounds = array<i64: 2>, scalar_prefetch = 0 : i64, scratch_operands = 4 : i64, tpu.core_type = #tpu.core_type<tc>, window_params = [{transform_indices = @transform_0, window_bounds = array<i64: 1, 8, 16>}, {pipeline_mode = #tpu.pipeline_mode<synchronous>, transform_indices = @transform_1, window_bounds = array<i64: 16, 32>}, {pipeline_mode = #tpu.pipeline_mode<synchronous>, transform_indices = @transform_2, window_bounds = array<i64: 32, 128>}, {pipeline_mode = #tpu.pipeline_mode<synchronous>, transform_indices = @transform_3, window_bounds = array<i64: 32, 128>}, {pipeline_mode = #tpu.pipeline_mode<synchronous>, transform_indices = @transform_4, window_bounds = array<i64: 1, 128>}, {pipeline_mode = #tpu.pipeline_mode<synchronous>, transform_indices = @transform_5, window_bounds = array<i64: 32, 128>}, {pipeline_mode = #tpu.pipeline_mode<synchronous>, transform_indices = @transform_6, window_bounds = array<i64: 32, 128>}, {pipeline_mode = #tpu.pipeline_mode<synchronous>, transform_indices = @transform_7, window_bounds = array<i64: 1, 128>}, {pipeline_mode = #tpu.pipeline_mode<synchronous>, transform_indices = @transform_8, window_bounds = array<i64: 32, 128>}, {pipeline_mode = #tpu.pipeline_mode<synchronous>, transform_indices = @transform_9, window_bounds = array<i64: 1, 128>}, {transform_indices = @transform_10, window_bounds = array<i64: 1, 8, 128>}]} {
    %c0 = arith.constant 0 : index
    %c0_0 = arith.constant 0 : index
    %c0_1 = arith.constant 0 : index
    %0 = vector.load %arg1[%c0, %c0_0, %c0_1] : memref<1x8x16xf32, #tpu.memory_space<vmem>>, vector<1x8x16xf32>
    %1 = vector.shape_cast %0 : vector<1x8x16xf32> to vector<8x16xf32>
    %c0_2 = arith.constant 0 : index
    %c0_3 = arith.constant 0 : index
    %2 = vector.load %arg2[%c0_2, %c0_3] : memref<16x32xf32, #tpu.memory_space<vmem>>, vector<16x32xf32>
    %cst = arith.constant dense<0.000000e+00> : vector<8x32xf32>
    %3 = tpu.matmul %1, %2, %cst {dimension_numbers = #tpu.dot_dimension_numbers<[1], [0], [0], [1], [0, 0, 1, 1], [], []>} : vector<8x16xf32>, vector<16x32xf32>, vector<8x32xf32> -> vector<8x32xf32>
    %c0_4 = arith.constant 0 : index
    %c0_5 = arith.constant 0 : index
    %4 = vector.load %arg3[%c0_4, %c0_5] : memref<32x128xf32, #tpu.memory_space<vmem>>, vector<32x128xf32>
    %c0_6 = arith.constant 0 : index
    %c0_7 = arith.constant 0 : index
    %5 = vector.load %arg4[%c0_6, %c0_7] : memref<32x128xf32, #tpu.memory_space<vmem>>, vector<32x128xf32>
    %c0_8 = arith.constant 0 : index
    %c0_9 = arith.constant 0 : index
    %6 = vector.load %arg5[%c0_8, %c0_9] : memref<1x128xf32, #tpu.memory_space<vmem>>, vector<1x128xf32>
    %cst_10 = arith.constant dense<0.000000e+00> : vector<8x128xf32>
    %7 = tpu.matmul %3, %4, %cst_10 {dimension_numbers = #tpu.dot_dimension_numbers<[1], [0], [0], [1], [0, 0, 1, 1], [], []>} : vector<8x32xf32>, vector<32x128xf32>, vector<8x128xf32> -> vector<8x128xf32>
    %8 = vector.broadcast %6 : vector<1x128xf32> to vector<8x128xf32>
    %9 = arith.addf %7, %8 : vector<8x128xf32>
    %c0_11 = arith.constant 0 : index
    %c0_12 = arith.constant 0 : index
    %10 = vector.load %arg12[%c0_11, %c0_12] : memref<8x128xf32, #tpu.memory_space<vmem>>, vector<8x128xf32>
    tpu.vector_store %arg12[%c0_11, %c0_12], %9 {strides = array<i32>} : memref<8x128xf32, #tpu.memory_space<vmem>>, vector<8x128xf32>,
    %cst_13 = arith.constant 0.000000e+00 : f32
    %11 = vector.broadcast %cst_13 : f32 to vector<1x32xf32>
    %c0_14 = arith.constant 0 : index
    %c0_15 = arith.constant 0 : index
    %12 = vector.load %arg14[%c0_14, %c0_15] : memref<1x32xf32, #tpu.memory_space<vmem>>, vector<1x32xf32>
    tpu.vector_store %arg14[%c0_14, %c0_15], %11 {strides = array<i32>} : memref<1x32xf32, #tpu.memory_space<vmem>>, vector<1x32xf32>,
    %cst_16 = arith.constant 0.000000e+00 : f32
    %13 = vector.broadcast %cst_16 : f32 to vector<1x32xf32>
    %c0_17 = arith.constant 0 : index
    %c0_18 = arith.constant 0 : index
    %14 = vector.load %arg15[%c0_17, %c0_18] : memref<1x32xf32, #tpu.memory_space<vmem>>, vector<1x32xf32>
    tpu.vector_store %arg15[%c0_17, %c0_18], %13 {strides = array<i32>} : memref<1x32xf32, #tpu.memory_space<vmem>>, vector<1x32xf32>,
    %c0_i32 = arith.constant 0 : i32
    %c1_i32 = arith.constant 1 : i32
    %15 = arith.muli %c0_i32, %c1_i32 : i32
    %c0_19 = arith.constant 0 : index
    %c0_20 = arith.constant 0 : index
    %16 = vector.load %arg14[%c0_19, %c0_20] : memref<1x32xf32, #tpu.memory_space<vmem>>, vector<1x32xf32>
    %17 = arith.index_cast %15 : i32 to index
    %c0_21 = arith.constant 0 : index
    %18 = vector.load %arg12[%17, %c0_21] : memref<8x128xf32, #tpu.memory_space<vmem>>, vector<1x128xf32>
    %cst_22 = arith.constant dense<0.000000e+00> : vector<1x128xf32>
    %19 = tpu.matmul %16, %5, %cst_22 {dimension_numbers = #tpu.dot_dimension_numbers<[1], [0], [0], [1], [0, 0, 1, 1], [], []>} : vector<1x32xf32>, vector<32x128xf32>, vector<1x128xf32> -> vector<1x128xf32>
    %20 = arith.addf %18, %19 : vector<1x128xf32>
    %21 = tpu.iota {dimensions = array<i32: 1>} : vector<1x128xi32>
    %c64_i32 = arith.constant 64 : i32
    %22 = vector.broadcast %c64_i32 : i32 to vector<1x128xi32>
    %23 = arith.cmpi sge, %21, %22 : vector<1x128xi32>
    %c96_i32 = arith.constant 96 : i32
    %24 = vector.broadcast %c96_i32 : i32 to vector<1x128xi32>
    %25 = arith.cmpi slt, %21, %24 : vector<1x128xi32>
    %26 = arith.andi %23, %25 : vector<1x128xi1>
    %27 = math.tanh %20 : vector<1x128xf32>
    %28 = arith.negf %20 : vector<1x128xf32>
    %29 = math.exp %28 : vector<1x128xf32>
    %cst_23 = arith.constant 1.000000e+00 : f32
    %30 = vector.broadcast %cst_23 : f32 to vector<1x128xf32>
    %31 = arith.addf %30, %29 : vector<1x128xf32>
    %32 = arith.divf %30, %31 : vector<1x128xf32>
    %33 = arith.select %26, %27, %32 : vector<1x128xi1>, vector<1x128xf32>
    %34 = vector.extract_strided_slice %33 {offsets = [0, 0], sizes = [1, 32], strides = [1, 1]} : vector<1x128xf32> to vector<1x32xf32>
    %35 = vector.extract_strided_slice %33 {offsets = [0, 32], sizes = [1, 32], strides = [1, 1]} : vector<1x128xf32> to vector<1x32xf32>
    %36 = vector.extract_strided_slice %33 {offsets = [0, 64], sizes = [1, 32], strides = [1, 1]} : vector<1x128xf32> to vector<1x32xf32>
    %37 = vector.extract_strided_slice %33 {offsets = [0, 96], sizes = [1, 32], strides = [1, 1]} : vector<1x128xf32> to vector<1x32xf32>
    %c0_24 = arith.constant 0 : index
    %c0_25 = arith.constant 0 : index
    %38 = vector.load %arg15[%c0_24, %c0_25] : memref<1x32xf32, #tpu.memory_space<vmem>>, vector<1x32xf32>
    %39 = arith.mulf %35, %38 : vector<1x32xf32>
    %40 = arith.mulf %34, %36 : vector<1x32xf32>
    %41 = arith.addf %39, %40 : vector<1x32xf32>
    %42 = math.tanh %41 : vector<1x32xf32>
    %43 = arith.mulf %37, %42 : vector<1x32xf32>
    %c0_26 = arith.constant 0 : index
    %c0_27 = arith.constant 0 : index
    %44 = vector.load %arg15[%c0_26, %c0_27] : memref<1x32xf32, #tpu.memory_space<vmem>>, vector<1x32xf32>
    tpu.vector_store %arg15[%c0_26, %c0_27], %41 {strides = array<i32>} : memref<1x32xf32, #tpu.memory_space<vmem>>, vector<1x32xf32>,
    %c0_28 = arith.constant 0 : index
    %c0_29 = arith.constant 0 : index
    %45 = vector.load %arg14[%c0_28, %c0_29] : memref<1x32xf32, #tpu.memory_space<vmem>>, vector<1x32xf32>
    tpu.vector_store %arg14[%c0_28, %c0_29], %43 {strides = array<i32>} : memref<1x32xf32, #tpu.memory_space<vmem>>, vector<1x32xf32>,
    %46 = arith.index_cast %15 : i32 to index
    %c0_30 = arith.constant 0 : index
    %47 = vector.load %arg13[%46, %c0_30] : memref<8x32xf32, #tpu.memory_space<vmem>>, vector<1x32xf32>
    tpu.vector_store %arg13[%46, %c0_30], %43 {strides = array<i32>} : memref<8x32xf32, #tpu.memory_space<vmem>>, vector<1x32xf32>,
    %c1_i32_31 = arith.constant 1 : i32
    %c1_i32_32 = arith.constant 1 : i32
    %48 = arith.muli %c1_i32_31, %c1_i32_32 : i32
    %c0_33 = arith.constant 0 : index
    %c0_34 = arith.constant 0 : index
    %49 = vector.load %arg14[%c0_33, %c0_34] : memref<1x32xf32, #tpu.memory_space<vmem>>, vector<1x32xf32>
    %50 = arith.index_cast %48 : i32 to index
    %c0_35 = arith.constant 0 : index
    %51 = vector.load %arg12[%50, %c0_35] : memref<8x128xf32, #tpu.memory_space<vmem>>, vector<1x128xf32>
    %cst_36 = arith.constant dense<0.000000e+00> : vector<1x128xf32>
    %52 = tpu.matmul %49, %5, %cst_36 {dimension_numbers = #tpu.dot_dimension_numbers<[1], [0], [0], [1], [0, 0, 1, 1], [], []>} : vector<1x32xf32>, vector<32x128xf32>, vector<1x128xf32> -> vector<1x128xf32>
    %53 = arith.addf %51, %52 : vector<1x128xf32>
    %54 = tpu.iota {dimensions = array<i32: 1>} : vector<1x128xi32>
    %c64_i32_37 = arith.constant 64 : i32
    %55 = vector.broadcast %c64_i32_37 : i32 to vector<1x128xi32>
    %56 = arith.cmpi sge, %54, %55 : vector<1x128xi32>
    %c96_i32_38 = arith.constant 96 : i32
    %57 = vector.broadcast %c96_i32_38 : i32 to vector<1x128xi32>
    %58 = arith.cmpi slt, %54, %57 : vector<1x128xi32>
    %59 = arith.andi %56, %58 : vector<1x128xi1>
    %60 = math.tanh %53 : vector<1x128xf32>
    %61 = arith.negf %53 : vector<1x128xf32>
    %62 = math.exp %61 : vector<1x128xf32>
    %cst_39 = arith.constant 1.000000e+00 : f32
    %63 = vector.broadcast %cst_39 : f32 to vector<1x128xf32>
    %64 = arith.addf %63, %62 : vector<1x128xf32>
    %65 = arith.divf %63, %64 : vector<1x128xf32>
    %66 = arith.select %59, %60, %65 : vector<1x128xi1>, vector<1x128xf32>
    %67 = vector.extract_strided_slice %66 {offsets = [0, 0], sizes = [1, 32], strides = [1, 1]} : vector<1x128xf32> to vector<1x32xf32>
    %68 = vector.extract_strided_slice %66 {offsets = [0, 32], sizes = [1, 32], strides = [1, 1]} : vector<1x128xf32> to vector<1x32xf32>
    %69 = vector.extract_strided_slice %66 {offsets = [0, 64], sizes = [1, 32], strides = [1, 1]} : vector<1x128xf32> to vector<1x32xf32>
    %70 = vector.extract_strided_slice %66 {offsets = [0, 96], sizes = [1, 32], strides = [1, 1]} : vector<1x128xf32> to vector<1x32xf32>
    %c0_40 = arith.constant 0 : index
    %c0_41 = arith.constant 0 : index
    %71 = vector.load %arg15[%c0_40, %c0_41] : memref<1x32xf32, #tpu.memory_space<vmem>>, vector<1x32xf32>
    %72 = arith.mulf %68, %71 : vector<1x32xf32>
    %73 = arith.mulf %67, %69 : vector<1x32xf32>
    %74 = arith.addf %72, %73 : vector<1x32xf32>
    %75 = math.tanh %74 : vector<1x32xf32>
    %76 = arith.mulf %70, %75 : vector<1x32xf32>
    %c0_42 = arith.constant 0 : index
    %c0_43 = arith.constant 0 : index
    %77 = vector.load %arg15[%c0_42, %c0_43] : memref<1x32xf32, #tpu.memory_space<vmem>>, vector<1x32xf32>
    tpu.vector_store %arg15[%c0_42, %c0_43], %74 {strides = array<i32>} : memref<1x32xf32, #tpu.memory_space<vmem>>, vector<1x32xf32>,
    %c0_44 = arith.constant 0 : index
    %c0_45 = arith.constant 0 : index
    %78 = vector.load %arg14[%c0_44, %c0_45] : memref<1x32xf32, #tpu.memory_space<vmem>>, vector<1x32xf32>
    tpu.vector_store %arg14[%c0_44, %c0_45], %76 {strides = array<i32>} : memref<1x32xf32, #tpu.memory_space<vmem>>, vector<1x32xf32>,
    %79 = arith.index_cast %48 : i32 to index
    %c0_46 = arith.constant 0 : index
    %80 = vector.load %arg13[%79, %c0_46] : memref<8x32xf32, #tpu.memory_space<vmem>>, vector<1x32xf32>
    tpu.vector_store %arg13[%79, %c0_46], %76 {strides = array<i32>} : memref<8x32xf32, #tpu.memory_space<vmem>>, vector<1x32xf32>,
    %c2_i32 = arith.constant 2 : i32
    %c1_i32_47 = arith.constant 1 : i32
    %81 = arith.muli %c2_i32, %c1_i32_47 : i32
    %c0_48 = arith.constant 0 : index
    %c0_49 = arith.constant 0 : index
    %82 = vector.load %arg14[%c0_48, %c0_49] : memref<1x32xf32, #tpu.memory_space<vmem>>, vector<1x32xf32>
    %83 = arith.index_cast %81 : i32 to index
    %c0_50 = arith.constant 0 : index
    %84 = vector.load %arg12[%83, %c0_50] : memref<8x128xf32, #tpu.memory_space<vmem>>, vector<1x128xf32>
    %cst_51 = arith.constant dense<0.000000e+00> : vector<1x128xf32>
    %85 = tpu.matmul %82, %5, %cst_51 {dimension_numbers = #tpu.dot_dimension_numbers<[1], [0], [0], [1], [0, 0, 1, 1], [], []>} : vector<1x32xf32>, vector<32x128xf32>, vector<1x128xf32> -> vector<1x128xf32>
    %86 = arith.addf %84, %85 : vector<1x128xf32>
    %87 = tpu.iota {dimensions = array<i32: 1>} : vector<1x128xi32>
    %c64_i32_52 = arith.constant 64 : i32
    %88 = vector.broadcast %c64_i32_52 : i32 to vector<1x128xi32>
    %89 = arith.cmpi sge, %87, %88 : vector<1x128xi32>
    %c96_i32_53 = arith.constant 96 : i32
    %90 = vector.broadcast %c96_i32_53 : i32 to vector<1x128xi32>
    %91 = arith.cmpi slt, %87, %90 : vector<1x128xi32>
    %92 = arith.andi %89, %91 : vector<1x128xi1>
    %93 = math.tanh %86 : vector<1x128xf32>
    %94 = arith.negf %86 : vector<1x128xf32>
    %95 = math.exp %94 : vector<1x128xf32>
    %cst_54 = arith.constant 1.000000e+00 : f32
    %96 = vector.broadcast %cst_54 : f32 to vector<1x128xf32>
    %97 = arith.addf %96, %95 : vector<1x128xf32>
    %98 = arith.divf %96, %97 : vector<1x128xf32>
    %99 = arith.select %92, %93, %98 : vector<1x128xi1>, vector<1x128xf32>
    %100 = vector.extract_strided_slice %99 {offsets = [0, 0], sizes = [1, 32], strides = [1, 1]} : vector<1x128xf32> to vector<1x32xf32>
    %101 = vector.extract_strided_slice %99 {offsets = [0, 32], sizes = [1, 32], strides = [1, 1]} : vector<1x128xf32> to vector<1x32xf32>
    %102 = vector.extract_strided_slice %99 {offsets = [0, 64], sizes = [1, 32], strides = [1, 1]} : vector<1x128xf32> to vector<1x32xf32>
    %103 = vector.extract_strided_slice %99 {offsets = [0, 96], sizes = [1, 32], strides = [1, 1]} : vector<1x128xf32> to vector<1x32xf32>
    %c0_55 = arith.constant 0 : index
    %c0_56 = arith.constant 0 : index
    %104 = vector.load %arg15[%c0_55, %c0_56] : memref<1x32xf32, #tpu.memory_space<vmem>>, vector<1x32xf32>
    %105 = arith.mulf %101, %104 : vector<1x32xf32>
    %106 = arith.mulf %100, %102 : vector<1x32xf32>
    %107 = arith.addf %105, %106 : vector<1x32xf32>
    %108 = math.tanh %107 : vector<1x32xf32>
    %109 = arith.mulf %103, %108 : vector<1x32xf32>
    %c0_57 = arith.constant 0 : index
    %c0_58 = arith.constant 0 : index
    %110 = vector.load %arg15[%c0_57, %c0_58] : memref<1x32xf32, #tpu.memory_space<vmem>>, vector<1x32xf32>
    tpu.vector_store %arg15[%c0_57, %c0_58], %107 {strides = array<i32>} : memref<1x32xf32, #tpu.memory_space<vmem>>, vector<1x32xf32>,
    %c0_59 = arith.constant 0 : index
    %c0_60 = arith.constant 0 : index
    %111 = vector.load %arg14[%c0_59, %c0_60] : memref<1x32xf32, #tpu.memory_space<vmem>>, vector<1x32xf32>
    tpu.vector_store %arg14[%c0_59, %c0_60], %109 {strides = array<i32>} : memref<1x32xf32, #tpu.memory_space<vmem>>, vector<1x32xf32>,
    %112 = arith.index_cast %81 : i32 to index
    %c0_61 = arith.constant 0 : index
    %113 = vector.load %arg13[%112, %c0_61] : memref<8x32xf32, #tpu.memory_space<vmem>>, vector<1x32xf32>
    tpu.vector_store %arg13[%112, %c0_61], %109 {strides = array<i32>} : memref<8x32xf32, #tpu.memory_space<vmem>>, vector<1x32xf32>,
    %c3_i32 = arith.constant 3 : i32
    %c1_i32_62 = arith.constant 1 : i32
    %114 = arith.muli %c3_i32, %c1_i32_62 : i32
    %c0_63 = arith.constant 0 : index
    %c0_64 = arith.constant 0 : index
    %115 = vector.load %arg14[%c0_63, %c0_64] : memref<1x32xf32, #tpu.memory_space<vmem>>, vector<1x32xf32>
    %116 = arith.index_cast %114 : i32 to index
    %c0_65 = arith.constant 0 : index
    %117 = vector.load %arg12[%116, %c0_65] : memref<8x128xf32, #tpu.memory_space<vmem>>, vector<1x128xf32>
    %cst_66 = arith.constant dense<0.000000e+00> : vector<1x128xf32>
    %118 = tpu.matmul %115, %5, %cst_66 {dimension_numbers = #tpu.dot_dimension_numbers<[1], [0], [0], [1], [0, 0, 1, 1], [], []>} : vector<1x32xf32>, vector<32x128xf32>, vector<1x128xf32> -> vector<1x128xf32>
    %119 = arith.addf %117, %118 : vector<1x128xf32>
    %120 = tpu.iota {dimensions = array<i32: 1>} : vector<1x128xi32>
    %c64_i32_67 = arith.constant 64 : i32
    %121 = vector.broadcast %c64_i32_67 : i32 to vector<1x128xi32>
    %122 = arith.cmpi sge, %120, %121 : vector<1x128xi32>
    %c96_i32_68 = arith.constant 96 : i32
    %123 = vector.broadcast %c96_i32_68 : i32 to vector<1x128xi32>
    %124 = arith.cmpi slt, %120, %123 : vector<1x128xi32>
    %125 = arith.andi %122, %124 : vector<1x128xi1>
    %126 = math.tanh %119 : vector<1x128xf32>
    %127 = arith.negf %119 : vector<1x128xf32>
    %128 = math.exp %127 : vector<1x128xf32>
    %cst_69 = arith.constant 1.000000e+00 : f32
    %129 = vector.broadcast %cst_69 : f32 to vector<1x128xf32>
    %130 = arith.addf %129, %128 : vector<1x128xf32>
    %131 = arith.divf %129, %130 : vector<1x128xf32>
    %132 = arith.select %125, %126, %131 : vector<1x128xi1>, vector<1x128xf32>
    %133 = vector.extract_strided_slice %132 {offsets = [0, 0], sizes = [1, 32], strides = [1, 1]} : vector<1x128xf32> to vector<1x32xf32>
    %134 = vector.extract_strided_slice %132 {offsets = [0, 32], sizes = [1, 32], strides = [1, 1]} : vector<1x128xf32> to vector<1x32xf32>
    %135 = vector.extract_strided_slice %132 {offsets = [0, 64], sizes = [1, 32], strides = [1, 1]} : vector<1x128xf32> to vector<1x32xf32>
    %136 = vector.extract_strided_slice %132 {offsets = [0, 96], sizes = [1, 32], strides = [1, 1]} : vector<1x128xf32> to vector<1x32xf32>
    %c0_70 = arith.constant 0 : index
    %c0_71 = arith.constant 0 : index
    %137 = vector.load %arg15[%c0_70, %c0_71] : memref<1x32xf32, #tpu.memory_space<vmem>>, vector<1x32xf32>
    %138 = arith.mulf %134, %137 : vector<1x32xf32>
    %139 = arith.mulf %133, %135 : vector<1x32xf32>
    %140 = arith.addf %138, %139 : vector<1x32xf32>
    %141 = math.tanh %140 : vector<1x32xf32>
    %142 = arith.mulf %136, %141 : vector<1x32xf32>
    %c0_72 = arith.constant 0 : index
    %c0_73 = arith.constant 0 : index
    %143 = vector.load %arg15[%c0_72, %c0_73] : memref<1x32xf32, #tpu.memory_space<vmem>>, vector<1x32xf32>
    tpu.vector_store %arg15[%c0_72, %c0_73], %140 {strides = array<i32>} : memref<1x32xf32, #tpu.memory_space<vmem>>, vector<1x32xf32>,
    %c0_74 = arith.constant 0 : index
    %c0_75 = arith.constant 0 : index
    %144 = vector.load %arg14[%c0_74, %c0_75] : memref<1x32xf32, #tpu.memory_space<vmem>>, vector<1x32xf32>
    tpu.vector_store %arg14[%c0_74, %c0_75], %142 {strides = array<i32>} : memref<1x32xf32, #tpu.memory_space<vmem>>, vector<1x32xf32>,
    %145 = arith.index_cast %114 : i32 to index
    %c0_76 = arith.constant 0 : index
    %146 = vector.load %arg13[%145, %c0_76] : memref<8x32xf32, #tpu.memory_space<vmem>>, vector<1x32xf32>
    tpu.vector_store %arg13[%145, %c0_76], %142 {strides = array<i32>} : memref<8x32xf32, #tpu.memory_space<vmem>>, vector<1x32xf32>,
    %c4_i32 = arith.constant 4 : i32
    %c1_i32_77 = arith.constant 1 : i32
    %147 = arith.muli %c4_i32, %c1_i32_77 : i32
    %c0_78 = arith.constant 0 : index
    %c0_79 = arith.constant 0 : index
    %148 = vector.load %arg14[%c0_78, %c0_79] : memref<1x32xf32, #tpu.memory_space<vmem>>, vector<1x32xf32>
    %149 = arith.index_cast %147 : i32 to index
    %c0_80 = arith.constant 0 : index
    %150 = vector.load %arg12[%149, %c0_80] : memref<8x128xf32, #tpu.memory_space<vmem>>, vector<1x128xf32>
    %cst_81 = arith.constant dense<0.000000e+00> : vector<1x128xf32>
    %151 = tpu.matmul %148, %5, %cst_81 {dimension_numbers = #tpu.dot_dimension_numbers<[1], [0], [0], [1], [0, 0, 1, 1], [], []>} : vector<1x32xf32>, vector<32x128xf32>, vector<1x128xf32> -> vector<1x128xf32>
    %152 = arith.addf %150, %151 : vector<1x128xf32>
    %153 = tpu.iota {dimensions = array<i32: 1>} : vector<1x128xi32>
    %c64_i32_82 = arith.constant 64 : i32
    %154 = vector.broadcast %c64_i32_82 : i32 to vector<1x128xi32>
    %155 = arith.cmpi sge, %153, %154 : vector<1x128xi32>
    %c96_i32_83 = arith.constant 96 : i32
    %156 = vector.broadcast %c96_i32_83 : i32 to vector<1x128xi32>
    %157 = arith.cmpi slt, %153, %156 : vector<1x128xi32>
    %158 = arith.andi %155, %157 : vector<1x128xi1>
    %159 = math.tanh %152 : vector<1x128xf32>
    %160 = arith.negf %152 : vector<1x128xf32>
    %161 = math.exp %160 : vector<1x128xf32>
    %cst_84 = arith.constant 1.000000e+00 : f32
    %162 = vector.broadcast %cst_84 : f32 to vector<1x128xf32>
    %163 = arith.addf %162, %161 : vector<1x128xf32>
    %164 = arith.divf %162, %163 : vector<1x128xf32>
    %165 = arith.select %158, %159, %164 : vector<1x128xi1>, vector<1x128xf32>
    %166 = vector.extract_strided_slice %165 {offsets = [0, 0], sizes = [1, 32], strides = [1, 1]} : vector<1x128xf32> to vector<1x32xf32>
    %167 = vector.extract_strided_slice %165 {offsets = [0, 32], sizes = [1, 32], strides = [1, 1]} : vector<1x128xf32> to vector<1x32xf32>
    %168 = vector.extract_strided_slice %165 {offsets = [0, 64], sizes = [1, 32], strides = [1, 1]} : vector<1x128xf32> to vector<1x32xf32>
    %169 = vector.extract_strided_slice %165 {offsets = [0, 96], sizes = [1, 32], strides = [1, 1]} : vector<1x128xf32> to vector<1x32xf32>
    %c0_85 = arith.constant 0 : index
    %c0_86 = arith.constant 0 : index
    %170 = vector.load %arg15[%c0_85, %c0_86] : memref<1x32xf32, #tpu.memory_space<vmem>>, vector<1x32xf32>
    %171 = arith.mulf %167, %170 : vector<1x32xf32>
    %172 = arith.mulf %166, %168 : vector<1x32xf32>
    %173 = arith.addf %171, %172 : vector<1x32xf32>
    %174 = math.tanh %173 : vector<1x32xf32>
    %175 = arith.mulf %169, %174 : vector<1x32xf32>
    %c0_87 = arith.constant 0 : index
    %c0_88 = arith.constant 0 : index
    %176 = vector.load %arg15[%c0_87, %c0_88] : memref<1x32xf32, #tpu.memory_space<vmem>>, vector<1x32xf32>
    tpu.vector_store %arg15[%c0_87, %c0_88], %173 {strides = array<i32>} : memref<1x32xf32, #tpu.memory_space<vmem>>, vector<1x32xf32>,
    %c0_89 = arith.constant 0 : index
    %c0_90 = arith.constant 0 : index
    %177 = vector.load %arg14[%c0_89, %c0_90] : memref<1x32xf32, #tpu.memory_space<vmem>>, vector<1x32xf32>
    tpu.vector_store %arg14[%c0_89, %c0_90], %175 {strides = array<i32>} : memref<1x32xf32, #tpu.memory_space<vmem>>, vector<1x32xf32>,
    %178 = arith.index_cast %147 : i32 to index
    %c0_91 = arith.constant 0 : index
    %179 = vector.load %arg13[%178, %c0_91] : memref<8x32xf32, #tpu.memory_space<vmem>>, vector<1x32xf32>
    tpu.vector_store %arg13[%178, %c0_91], %175 {strides = array<i32>} : memref<8x32xf32, #tpu.memory_space<vmem>>, vector<1x32xf32>,
    %c5_i32 = arith.constant 5 : i32
    %c1_i32_92 = arith.constant 1 : i32
    %180 = arith.muli %c5_i32, %c1_i32_92 : i32
    %c0_93 = arith.constant 0 : index
    %c0_94 = arith.constant 0 : index
    %181 = vector.load %arg14[%c0_93, %c0_94] : memref<1x32xf32, #tpu.memory_space<vmem>>, vector<1x32xf32>
    %182 = arith.index_cast %180 : i32 to index
    %c0_95 = arith.constant 0 : index
    %183 = vector.load %arg12[%182, %c0_95] : memref<8x128xf32, #tpu.memory_space<vmem>>, vector<1x128xf32>
    %cst_96 = arith.constant dense<0.000000e+00> : vector<1x128xf32>
    %184 = tpu.matmul %181, %5, %cst_96 {dimension_numbers = #tpu.dot_dimension_numbers<[1], [0], [0], [1], [0, 0, 1, 1], [], []>} : vector<1x32xf32>, vector<32x128xf32>, vector<1x128xf32> -> vector<1x128xf32>
    %185 = arith.addf %183, %184 : vector<1x128xf32>
    %186 = tpu.iota {dimensions = array<i32: 1>} : vector<1x128xi32>
    %c64_i32_97 = arith.constant 64 : i32
    %187 = vector.broadcast %c64_i32_97 : i32 to vector<1x128xi32>
    %188 = arith.cmpi sge, %186, %187 : vector<1x128xi32>
    %c96_i32_98 = arith.constant 96 : i32
    %189 = vector.broadcast %c96_i32_98 : i32 to vector<1x128xi32>
    %190 = arith.cmpi slt, %186, %189 : vector<1x128xi32>
    %191 = arith.andi %188, %190 : vector<1x128xi1>
    %192 = math.tanh %185 : vector<1x128xf32>
    %193 = arith.negf %185 : vector<1x128xf32>
    %194 = math.exp %193 : vector<1x128xf32>
    %cst_99 = arith.constant 1.000000e+00 : f32
    %195 = vector.broadcast %cst_99 : f32 to vector<1x128xf32>
    %196 = arith.addf %195, %194 : vector<1x128xf32>
    %197 = arith.divf %195, %196 : vector<1x128xf32>
    %198 = arith.select %191, %192, %197 : vector<1x128xi1>, vector<1x128xf32>
    %199 = vector.extract_strided_slice %198 {offsets = [0, 0], sizes = [1, 32], strides = [1, 1]} : vector<1x128xf32> to vector<1x32xf32>
    %200 = vector.extract_strided_slice %198 {offsets = [0, 32], sizes = [1, 32], strides = [1, 1]} : vector<1x128xf32> to vector<1x32xf32>
    %201 = vector.extract_strided_slice %198 {offsets = [0, 64], sizes = [1, 32], strides = [1, 1]} : vector<1x128xf32> to vector<1x32xf32>
    %202 = vector.extract_strided_slice %198 {offsets = [0, 96], sizes = [1, 32], strides = [1, 1]} : vector<1x128xf32> to vector<1x32xf32>
    %c0_100 = arith.constant 0 : index
    %c0_101 = arith.constant 0 : index
    %203 = vector.load %arg15[%c0_100, %c0_101] : memref<1x32xf32, #tpu.memory_space<vmem>>, vector<1x32xf32>
    %204 = arith.mulf %200, %203 : vector<1x32xf32>
    %205 = arith.mulf %199, %201 : vector<1x32xf32>
    %206 = arith.addf %204, %205 : vector<1x32xf32>
    %207 = math.tanh %206 : vector<1x32xf32>
    %208 = arith.mulf %202, %207 : vector<1x32xf32>
    %c0_102 = arith.constant 0 : index
    %c0_103 = arith.constant 0 : index
    %209 = vector.load %arg15[%c0_102, %c0_103] : memref<1x32xf32, #tpu.memory_space<vmem>>, vector<1x32xf32>
    tpu.vector_store %arg15[%c0_102, %c0_103], %206 {strides = array<i32>} : memref<1x32xf32, #tpu.memory_space<vmem>>, vector<1x32xf32>,
    %c0_104 = arith.constant 0 : index
    %c0_105 = arith.constant 0 : index
    %210 = vector.load %arg14[%c0_104, %c0_105] : memref<1x32xf32, #tpu.memory_space<vmem>>, vector<1x32xf32>
    tpu.vector_store %arg14[%c0_104, %c0_105], %208 {strides = array<i32>} : memref<1x32xf32, #tpu.memory_space<vmem>>, vector<1x32xf32>,
    %211 = arith.index_cast %180 : i32 to index
    %c0_106 = arith.constant 0 : index
    %212 = vector.load %arg13[%211, %c0_106] : memref<8x32xf32, #tpu.memory_space<vmem>>, vector<1x32xf32>
    tpu.vector_store %arg13[%211, %c0_106], %208 {strides = array<i32>} : memref<8x32xf32, #tpu.memory_space<vmem>>, vector<1x32xf32>,
    %c6_i32 = arith.constant 6 : i32
    %c1_i32_107 = arith.constant 1 : i32
    %213 = arith.muli %c6_i32, %c1_i32_107 : i32
    %c0_108 = arith.constant 0 : index
    %c0_109 = arith.constant 0 : index
    %214 = vector.load %arg14[%c0_108, %c0_109] : memref<1x32xf32, #tpu.memory_space<vmem>>, vector<1x32xf32>
    %215 = arith.index_cast %213 : i32 to index
    %c0_110 = arith.constant 0 : index
    %216 = vector.load %arg12[%215, %c0_110] : memref<8x128xf32, #tpu.memory_space<vmem>>, vector<1x128xf32>
    %cst_111 = arith.constant dense<0.000000e+00> : vector<1x128xf32>
    %217 = tpu.matmul %214, %5, %cst_111 {dimension_numbers = #tpu.dot_dimension_numbers<[1], [0], [0], [1], [0, 0, 1, 1], [], []>} : vector<1x32xf32>, vector<32x128xf32>, vector<1x128xf32> -> vector<1x128xf32>
    %218 = arith.addf %216, %217 : vector<1x128xf32>
    %219 = tpu.iota {dimensions = array<i32: 1>} : vector<1x128xi32>
    %c64_i32_112 = arith.constant 64 : i32
    %220 = vector.broadcast %c64_i32_112 : i32 to vector<1x128xi32>
    %221 = arith.cmpi sge, %219, %220 : vector<1x128xi32>
    %c96_i32_113 = arith.constant 96 : i32
    %222 = vector.broadcast %c96_i32_113 : i32 to vector<1x128xi32>
    %223 = arith.cmpi slt, %219, %222 : vector<1x128xi32>
    %224 = arith.andi %221, %223 : vector<1x128xi1>
    %225 = math.tanh %218 : vector<1x128xf32>
    %226 = arith.negf %218 : vector<1x128xf32>
    %227 = math.exp %226 : vector<1x128xf32>
    %cst_114 = arith.constant 1.000000e+00 : f32
    %228 = vector.broadcast %cst_114 : f32 to vector<1x128xf32>
    %229 = arith.addf %228, %227 : vector<1x128xf32>
    %230 = arith.divf %228, %229 : vector<1x128xf32>
    %231 = arith.select %224, %225, %230 : vector<1x128xi1>, vector<1x128xf32>
    %232 = vector.extract_strided_slice %231 {offsets = [0, 0], sizes = [1, 32], strides = [1, 1]} : vector<1x128xf32> to vector<1x32xf32>
    %233 = vector.extract_strided_slice %231 {offsets = [0, 32], sizes = [1, 32], strides = [1, 1]} : vector<1x128xf32> to vector<1x32xf32>
    %234 = vector.extract_strided_slice %231 {offsets = [0, 64], sizes = [1, 32], strides = [1, 1]} : vector<1x128xf32> to vector<1x32xf32>
    %235 = vector.extract_strided_slice %231 {offsets = [0, 96], sizes = [1, 32], strides = [1, 1]} : vector<1x128xf32> to vector<1x32xf32>
    %c0_115 = arith.constant 0 : index
    %c0_116 = arith.constant 0 : index
    %236 = vector.load %arg15[%c0_115, %c0_116] : memref<1x32xf32, #tpu.memory_space<vmem>>, vector<1x32xf32>
    %237 = arith.mulf %233, %236 : vector<1x32xf32>
    %238 = arith.mulf %232, %234 : vector<1x32xf32>
    %239 = arith.addf %237, %238 : vector<1x32xf32>
    %240 = math.tanh %239 : vector<1x32xf32>
    %241 = arith.mulf %235, %240 : vector<1x32xf32>
    %c0_117 = arith.constant 0 : index
    %c0_118 = arith.constant 0 : index
    %242 = vector.load %arg15[%c0_117, %c0_118] : memref<1x32xf32, #tpu.memory_space<vmem>>, vector<1x32xf32>
    tpu.vector_store %arg15[%c0_117, %c0_118], %239 {strides = array<i32>} : memref<1x32xf32, #tpu.memory_space<vmem>>, vector<1x32xf32>,
    %c0_119 = arith.constant 0 : index
    %c0_120 = arith.constant 0 : index
    %243 = vector.load %arg14[%c0_119, %c0_120] : memref<1x32xf32, #tpu.memory_space<vmem>>, vector<1x32xf32>
    tpu.vector_store %arg14[%c0_119, %c0_120], %241 {strides = array<i32>} : memref<1x32xf32, #tpu.memory_space<vmem>>, vector<1x32xf32>,
    %244 = arith.index_cast %213 : i32 to index
    %c0_121 = arith.constant 0 : index
    %245 = vector.load %arg13[%244, %c0_121] : memref<8x32xf32, #tpu.memory_space<vmem>>, vector<1x32xf32>
    tpu.vector_store %arg13[%244, %c0_121], %241 {strides = array<i32>} : memref<8x32xf32, #tpu.memory_space<vmem>>, vector<1x32xf32>,
    %c7_i32 = arith.constant 7 : i32
    %c1_i32_122 = arith.constant 1 : i32
    %246 = arith.muli %c7_i32, %c1_i32_122 : i32
    %c0_123 = arith.constant 0 : index
    %c0_124 = arith.constant 0 : index
    %247 = vector.load %arg14[%c0_123, %c0_124] : memref<1x32xf32, #tpu.memory_space<vmem>>, vector<1x32xf32>
    %248 = arith.index_cast %246 : i32 to index
    %c0_125 = arith.constant 0 : index
    %249 = vector.load %arg12[%248, %c0_125] : memref<8x128xf32, #tpu.memory_space<vmem>>, vector<1x128xf32>
    %cst_126 = arith.constant dense<0.000000e+00> : vector<1x128xf32>
    %250 = tpu.matmul %247, %5, %cst_126 {dimension_numbers = #tpu.dot_dimension_numbers<[1], [0], [0], [1], [0, 0, 1, 1], [], []>} : vector<1x32xf32>, vector<32x128xf32>, vector<1x128xf32> -> vector<1x128xf32>
    %251 = arith.addf %249, %250 : vector<1x128xf32>
    %252 = tpu.iota {dimensions = array<i32: 1>} : vector<1x128xi32>
    %c64_i32_127 = arith.constant 64 : i32
    %253 = vector.broadcast %c64_i32_127 : i32 to vector<1x128xi32>
    %254 = arith.cmpi sge, %252, %253 : vector<1x128xi32>
    %c96_i32_128 = arith.constant 96 : i32
    %255 = vector.broadcast %c96_i32_128 : i32 to vector<1x128xi32>
    %256 = arith.cmpi slt, %252, %255 : vector<1x128xi32>
    %257 = arith.andi %254, %256 : vector<1x128xi1>
    %258 = math.tanh %251 : vector<1x128xf32>
    %259 = arith.negf %251 : vector<1x128xf32>
    %260 = math.exp %259 : vector<1x128xf32>
    %cst_129 = arith.constant 1.000000e+00 : f32
    %261 = vector.broadcast %cst_129 : f32 to vector<1x128xf32>
    %262 = arith.addf %261, %260 : vector<1x128xf32>
    %263 = arith.divf %261, %262 : vector<1x128xf32>
    %264 = arith.select %257, %258, %263 : vector<1x128xi1>, vector<1x128xf32>
    %265 = vector.extract_strided_slice %264 {offsets = [0, 0], sizes = [1, 32], strides = [1, 1]} : vector<1x128xf32> to vector<1x32xf32>
    %266 = vector.extract_strided_slice %264 {offsets = [0, 32], sizes = [1, 32], strides = [1, 1]} : vector<1x128xf32> to vector<1x32xf32>
    %267 = vector.extract_strided_slice %264 {offsets = [0, 64], sizes = [1, 32], strides = [1, 1]} : vector<1x128xf32> to vector<1x32xf32>
    %268 = vector.extract_strided_slice %264 {offsets = [0, 96], sizes = [1, 32], strides = [1, 1]} : vector<1x128xf32> to vector<1x32xf32>
    %c0_130 = arith.constant 0 : index
    %c0_131 = arith.constant 0 : index
    %269 = vector.load %arg15[%c0_130, %c0_131] : memref<1x32xf32, #tpu.memory_space<vmem>>, vector<1x32xf32>
    %270 = arith.mulf %266, %269 : vector<1x32xf32>
    %271 = arith.mulf %265, %267 : vector<1x32xf32>
    %272 = arith.addf %270, %271 : vector<1x32xf32>
    %273 = math.tanh %272 : vector<1x32xf32>
    %274 = arith.mulf %268, %273 : vector<1x32xf32>
    %c0_132 = arith.constant 0 : index
    %c0_133 = arith.constant 0 : index
    %275 = vector.load %arg15[%c0_132, %c0_133] : memref<1x32xf32, #tpu.memory_space<vmem>>, vector<1x32xf32>
    tpu.vector_store %arg15[%c0_132, %c0_133], %272 {strides = array<i32>} : memref<1x32xf32, #tpu.memory_space<vmem>>, vector<1x32xf32>,
    %c0_134 = arith.constant 0 : index
    %c0_135 = arith.constant 0 : index
    %276 = vector.load %arg14[%c0_134, %c0_135] : memref<1x32xf32, #tpu.memory_space<vmem>>, vector<1x32xf32>
    tpu.vector_store %arg14[%c0_134, %c0_135], %274 {strides = array<i32>} : memref<1x32xf32, #tpu.memory_space<vmem>>, vector<1x32xf32>,
    %277 = arith.index_cast %246 : i32 to index
    %c0_136 = arith.constant 0 : index
    %278 = vector.load %arg13[%277, %c0_136] : memref<8x32xf32, #tpu.memory_space<vmem>>, vector<1x32xf32>
    tpu.vector_store %arg13[%277, %c0_136], %274 {strides = array<i32>} : memref<8x32xf32, #tpu.memory_space<vmem>>, vector<1x32xf32>,
    %c8_i32 = arith.constant 8 : i32
    %c0_137 = arith.constant 0 : index
    %c0_138 = arith.constant 0 : index
    %279 = vector.load %arg13[%c0_137, %c0_138] : memref<8x32xf32, #tpu.memory_space<vmem>>, vector<8x32xf32>
    %c0_139 = arith.constant 0 : index
    %c0_140 = arith.constant 0 : index
    %280 = vector.load %arg6[%c0_139, %c0_140] : memref<32x128xf32, #tpu.memory_space<vmem>>, vector<32x128xf32>
    %c0_141 = arith.constant 0 : index
    %c0_142 = arith.constant 0 : index
    %281 = vector.load %arg7[%c0_141, %c0_142] : memref<32x128xf32, #tpu.memory_space<vmem>>, vector<32x128xf32>
    %c0_143 = arith.constant 0 : index
    %c0_144 = arith.constant 0 : index
    %282 = vector.load %arg8[%c0_143, %c0_144] : memref<1x128xf32, #tpu.memory_space<vmem>>, vector<1x128xf32>
    %cst_145 = arith.constant dense<0.000000e+00> : vector<8x128xf32>
    %283 = tpu.matmul %279, %280, %cst_145 {dimension_numbers = #tpu.dot_dimension_numbers<[1], [0], [0], [1], [0, 0, 1, 1], [], []>} : vector<8x32xf32>, vector<32x128xf32>, vector<8x128xf32> -> vector<8x128xf32>
    %284 = vector.broadcast %282 : vector<1x128xf32> to vector<8x128xf32>
    %285 = arith.addf %283, %284 : vector<8x128xf32>
    %c0_146 = arith.constant 0 : index
    %c0_147 = arith.constant 0 : index
    %286 = vector.load %arg12[%c0_146, %c0_147] : memref<8x128xf32, #tpu.memory_space<vmem>>, vector<8x128xf32>
    tpu.vector_store %arg12[%c0_146, %c0_147], %285 {strides = array<i32>} : memref<8x128xf32, #tpu.memory_space<vmem>>, vector<8x128xf32>,
    %cst_148 = arith.constant 0.000000e+00 : f32
    %287 = vector.broadcast %cst_148 : f32 to vector<1x32xf32>
    %c0_149 = arith.constant 0 : index
    %c0_150 = arith.constant 0 : index
    %288 = vector.load %arg14[%c0_149, %c0_150] : memref<1x32xf32, #tpu.memory_space<vmem>>, vector<1x32xf32>
    tpu.vector_store %arg14[%c0_149, %c0_150], %287 {strides = array<i32>} : memref<1x32xf32, #tpu.memory_space<vmem>>, vector<1x32xf32>,
    %cst_151 = arith.constant 0.000000e+00 : f32
    %289 = vector.broadcast %cst_151 : f32 to vector<1x32xf32>
    %c0_152 = arith.constant 0 : index
    %c0_153 = arith.constant 0 : index
    %290 = vector.load %arg15[%c0_152, %c0_153] : memref<1x32xf32, #tpu.memory_space<vmem>>, vector<1x32xf32>
    tpu.vector_store %arg15[%c0_152, %c0_153], %289 {strides = array<i32>} : memref<1x32xf32, #tpu.memory_space<vmem>>, vector<1x32xf32>,
    %c0_i32_154 = arith.constant 0 : i32
    %c1_i32_155 = arith.constant 1 : i32
    %291 = arith.muli %c0_i32_154, %c1_i32_155 : i32
    %c0_156 = arith.constant 0 : index
    %c0_157 = arith.constant 0 : index
    %292 = vector.load %arg14[%c0_156, %c0_157] : memref<1x32xf32, #tpu.memory_space<vmem>>, vector<1x32xf32>
    %293 = arith.index_cast %291 : i32 to index
    %c0_158 = arith.constant 0 : index
    %294 = vector.load %arg12[%293, %c0_158] : memref<8x128xf32, #tpu.memory_space<vmem>>, vector<1x128xf32>
    %cst_159 = arith.constant dense<0.000000e+00> : vector<1x128xf32>
    %295 = tpu.matmul %292, %281, %cst_159 {dimension_numbers = #tpu.dot_dimension_numbers<[1], [0], [0], [1], [0, 0, 1, 1], [], []>} : vector<1x32xf32>, vector<32x128xf32>, vector<1x128xf32> -> vector<1x128xf32>
    %296 = arith.addf %294, %295 : vector<1x128xf32>
    %297 = tpu.iota {dimensions = array<i32: 1>} : vector<1x128xi32>
    %c64_i32_160 = arith.constant 64 : i32
    %298 = vector.broadcast %c64_i32_160 : i32 to vector<1x128xi32>
    %299 = arith.cmpi sge, %297, %298 : vector<1x128xi32>
    %c96_i32_161 = arith.constant 96 : i32
    %300 = vector.broadcast %c96_i32_161 : i32 to vector<1x128xi32>
    %301 = arith.cmpi slt, %297, %300 : vector<1x128xi32>
    %302 = arith.andi %299, %301 : vector<1x128xi1>
    %303 = math.tanh %296 : vector<1x128xf32>
    %304 = arith.negf %296 : vector<1x128xf32>
    %305 = math.exp %304 : vector<1x128xf32>
    %cst_162 = arith.constant 1.000000e+00 : f32
    %306 = vector.broadcast %cst_162 : f32 to vector<1x128xf32>
    %307 = arith.addf %306, %305 : vector<1x128xf32>
    %308 = arith.divf %306, %307 : vector<1x128xf32>
    %309 = arith.select %302, %303, %308 : vector<1x128xi1>, vector<1x128xf32>
    %310 = vector.extract_strided_slice %309 {offsets = [0, 0], sizes = [1, 32], strides = [1, 1]} : vector<1x128xf32> to vector<1x32xf32>
    %311 = vector.extract_strided_slice %309 {offsets = [0, 32], sizes = [1, 32], strides = [1, 1]} : vector<1x128xf32> to vector<1x32xf32>
    %312 = vector.extract_strided_slice %309 {offsets = [0, 64], sizes = [1, 32], strides = [1, 1]} : vector<1x128xf32> to vector<1x32xf32>
    %313 = vector.extract_strided_slice %309 {offsets = [0, 96], sizes = [1, 32], strides = [1, 1]} : vector<1x128xf32> to vector<1x32xf32>
    %c0_163 = arith.constant 0 : index
    %c0_164 = arith.constant 0 : index
    %314 = vector.load %arg15[%c0_163, %c0_164] : memref<1x32xf32, #tpu.memory_space<vmem>>, vector<1x32xf32>
    %315 = arith.mulf %311, %314 : vector<1x32xf32>
    %316 = arith.mulf %310, %312 : vector<1x32xf32>
    %317 = arith.addf %315, %316 : vector<1x32xf32>
    %318 = math.tanh %317 : vector<1x32xf32>
    %319 = arith.mulf %313, %318 : vector<1x32xf32>
    %c0_165 = arith.constant 0 : index
    %c0_166 = arith.constant 0 : index
    %320 = vector.load %arg15[%c0_165, %c0_166] : memref<1x32xf32, #tpu.memory_space<vmem>>, vector<1x32xf32>
    tpu.vector_store %arg15[%c0_165, %c0_166], %317 {strides = array<i32>} : memref<1x32xf32, #tpu.memory_space<vmem>>, vector<1x32xf32>,
    %c0_167 = arith.constant 0 : index
    %c0_168 = arith.constant 0 : index
    %321 = vector.load %arg14[%c0_167, %c0_168] : memref<1x32xf32, #tpu.memory_space<vmem>>, vector<1x32xf32>
    tpu.vector_store %arg14[%c0_167, %c0_168], %319 {strides = array<i32>} : memref<1x32xf32, #tpu.memory_space<vmem>>, vector<1x32xf32>,
    %322 = arith.index_cast %291 : i32 to index
    %c0_169 = arith.constant 0 : index
    %323 = vector.load %arg13[%322, %c0_169] : memref<8x32xf32, #tpu.memory_space<vmem>>, vector<1x32xf32>
    tpu.vector_store %arg13[%322, %c0_169], %319 {strides = array<i32>} : memref<8x32xf32, #tpu.memory_space<vmem>>, vector<1x32xf32>,
    %c1_i32_170 = arith.constant 1 : i32
    %c1_i32_171 = arith.constant 1 : i32
    %324 = arith.muli %c1_i32_170, %c1_i32_171 : i32
    %c0_172 = arith.constant 0 : index
    %c0_173 = arith.constant 0 : index
    %325 = vector.load %arg14[%c0_172, %c0_173] : memref<1x32xf32, #tpu.memory_space<vmem>>, vector<1x32xf32>
    %326 = arith.index_cast %324 : i32 to index
    %c0_174 = arith.constant 0 : index
    %327 = vector.load %arg12[%326, %c0_174] : memref<8x128xf32, #tpu.memory_space<vmem>>, vector<1x128xf32>
    %cst_175 = arith.constant dense<0.000000e+00> : vector<1x128xf32>
    %328 = tpu.matmul %325, %281, %cst_175 {dimension_numbers = #tpu.dot_dimension_numbers<[1], [0], [0], [1], [0, 0, 1, 1], [], []>} : vector<1x32xf32>, vector<32x128xf32>, vector<1x128xf32> -> vector<1x128xf32>
    %329 = arith.addf %327, %328 : vector<1x128xf32>
    %330 = tpu.iota {dimensions = array<i32: 1>} : vector<1x128xi32>
    %c64_i32_176 = arith.constant 64 : i32
    %331 = vector.broadcast %c64_i32_176 : i32 to vector<1x128xi32>
    %332 = arith.cmpi sge, %330, %331 : vector<1x128xi32>
    %c96_i32_177 = arith.constant 96 : i32
    %333 = vector.broadcast %c96_i32_177 : i32 to vector<1x128xi32>
    %334 = arith.cmpi slt, %330, %333 : vector<1x128xi32>
    %335 = arith.andi %332, %334 : vector<1x128xi1>
    %336 = math.tanh %329 : vector<1x128xf32>
    %337 = arith.negf %329 : vector<1x128xf32>
    %338 = math.exp %337 : vector<1x128xf32>
    %cst_178 = arith.constant 1.000000e+00 : f32
    %339 = vector.broadcast %cst_178 : f32 to vector<1x128xf32>
    %340 = arith.addf %339, %338 : vector<1x128xf32>
    %341 = arith.divf %339, %340 : vector<1x128xf32>
    %342 = arith.select %335, %336, %341 : vector<1x128xi1>, vector<1x128xf32>
    %343 = vector.extract_strided_slice %342 {offsets = [0, 0], sizes = [1, 32], strides = [1, 1]} : vector<1x128xf32> to vector<1x32xf32>
    %344 = vector.extract_strided_slice %342 {offsets = [0, 32], sizes = [1, 32], strides = [1, 1]} : vector<1x128xf32> to vector<1x32xf32>
    %345 = vector.extract_strided_slice %342 {offsets = [0, 64], sizes = [1, 32], strides = [1, 1]} : vector<1x128xf32> to vector<1x32xf32>
    %346 = vector.extract_strided_slice %342 {offsets = [0, 96], sizes = [1, 32], strides = [1, 1]} : vector<1x128xf32> to vector<1x32xf32>
    %c0_179 = arith.constant 0 : index
    %c0_180 = arith.constant 0 : index
    %347 = vector.load %arg15[%c0_179, %c0_180] : memref<1x32xf32, #tpu.memory_space<vmem>>, vector<1x32xf32>
    %348 = arith.mulf %344, %347 : vector<1x32xf32>
    %349 = arith.mulf %343, %345 : vector<1x32xf32>
    %350 = arith.addf %348, %349 : vector<1x32xf32>
    %351 = math.tanh %350 : vector<1x32xf32>
    %352 = arith.mulf %346, %351 : vector<1x32xf32>
    %c0_181 = arith.constant 0 : index
    %c0_182 = arith.constant 0 : index
    %353 = vector.load %arg15[%c0_181, %c0_182] : memref<1x32xf32, #tpu.memory_space<vmem>>, vector<1x32xf32>
    tpu.vector_store %arg15[%c0_181, %c0_182], %350 {strides = array<i32>} : memref<1x32xf32, #tpu.memory_space<vmem>>, vector<1x32xf32>,
    %c0_183 = arith.constant 0 : index
    %c0_184 = arith.constant 0 : index
    %354 = vector.load %arg14[%c0_183, %c0_184] : memref<1x32xf32, #tpu.memory_space<vmem>>, vector<1x32xf32>
    tpu.vector_store %arg14[%c0_183, %c0_184], %352 {strides = array<i32>} : memref<1x32xf32, #tpu.memory_space<vmem>>, vector<1x32xf32>,
    %355 = arith.index_cast %324 : i32 to index
    %c0_185 = arith.constant 0 : index
    %356 = vector.load %arg13[%355, %c0_185] : memref<8x32xf32, #tpu.memory_space<vmem>>, vector<1x32xf32>
    tpu.vector_store %arg13[%355, %c0_185], %352 {strides = array<i32>} : memref<8x32xf32, #tpu.memory_space<vmem>>, vector<1x32xf32>,
    %c2_i32_186 = arith.constant 2 : i32
    %c1_i32_187 = arith.constant 1 : i32
    %357 = arith.muli %c2_i32_186, %c1_i32_187 : i32
    %c0_188 = arith.constant 0 : index
    %c0_189 = arith.constant 0 : index
    %358 = vector.load %arg14[%c0_188, %c0_189] : memref<1x32xf32, #tpu.memory_space<vmem>>, vector<1x32xf32>
    %359 = arith.index_cast %357 : i32 to index
    %c0_190 = arith.constant 0 : index
    %360 = vector.load %arg12[%359, %c0_190] : memref<8x128xf32, #tpu.memory_space<vmem>>, vector<1x128xf32>
    %cst_191 = arith.constant dense<0.000000e+00> : vector<1x128xf32>
    %361 = tpu.matmul %358, %281, %cst_191 {dimension_numbers = #tpu.dot_dimension_numbers<[1], [0], [0], [1], [0, 0, 1, 1], [], []>} : vector<1x32xf32>, vector<32x128xf32>, vector<1x128xf32> -> vector<1x128xf32>
    %362 = arith.addf %360, %361 : vector<1x128xf32>
    %363 = tpu.iota {dimensions = array<i32: 1>} : vector<1x128xi32>
    %c64_i32_192 = arith.constant 64 : i32
    %364 = vector.broadcast %c64_i32_192 : i32 to vector<1x128xi32>
    %365 = arith.cmpi sge, %363, %364 : vector<1x128xi32>
    %c96_i32_193 = arith.constant 96 : i32
    %366 = vector.broadcast %c96_i32_193 : i32 to vector<1x128xi32>
    %367 = arith.cmpi slt, %363, %366 : vector<1x128xi32>
    %368 = arith.andi %365, %367 : vector<1x128xi1>
    %369 = math.tanh %362 : vector<1x128xf32>
    %370 = arith.negf %362 : vector<1x128xf32>
    %371 = math.exp %370 : vector<1x128xf32>
    %cst_194 = arith.constant 1.000000e+00 : f32
    %372 = vector.broadcast %cst_194 : f32 to vector<1x128xf32>
    %373 = arith.addf %372, %371 : vector<1x128xf32>
    %374 = arith.divf %372, %373 : vector<1x128xf32>
    %375 = arith.select %368, %369, %374 : vector<1x128xi1>, vector<1x128xf32>
    %376 = vector.extract_strided_slice %375 {offsets = [0, 0], sizes = [1, 32], strides = [1, 1]} : vector<1x128xf32> to vector<1x32xf32>
    %377 = vector.extract_strided_slice %375 {offsets = [0, 32], sizes = [1, 32], strides = [1, 1]} : vector<1x128xf32> to vector<1x32xf32>
    %378 = vector.extract_strided_slice %375 {offsets = [0, 64], sizes = [1, 32], strides = [1, 1]} : vector<1x128xf32> to vector<1x32xf32>
    %379 = vector.extract_strided_slice %375 {offsets = [0, 96], sizes = [1, 32], strides = [1, 1]} : vector<1x128xf32> to vector<1x32xf32>
    %c0_195 = arith.constant 0 : index
    %c0_196 = arith.constant 0 : index
    %380 = vector.load %arg15[%c0_195, %c0_196] : memref<1x32xf32, #tpu.memory_space<vmem>>, vector<1x32xf32>
    %381 = arith.mulf %377, %380 : vector<1x32xf32>
    %382 = arith.mulf %376, %378 : vector<1x32xf32>
    %383 = arith.addf %381, %382 : vector<1x32xf32>
    %384 = math.tanh %383 : vector<1x32xf32>
    %385 = arith.mulf %379, %384 : vector<1x32xf32>
    %c0_197 = arith.constant 0 : index
    %c0_198 = arith.constant 0 : index
    %386 = vector.load %arg15[%c0_197, %c0_198] : memref<1x32xf32, #tpu.memory_space<vmem>>, vector<1x32xf32>
    tpu.vector_store %arg15[%c0_197, %c0_198], %383 {strides = array<i32>} : memref<1x32xf32, #tpu.memory_space<vmem>>, vector<1x32xf32>,
    %c0_199 = arith.constant 0 : index
    %c0_200 = arith.constant 0 : index
    %387 = vector.load %arg14[%c0_199, %c0_200] : memref<1x32xf32, #tpu.memory_space<vmem>>, vector<1x32xf32>
    tpu.vector_store %arg14[%c0_199, %c0_200], %385 {strides = array<i32>} : memref<1x32xf32, #tpu.memory_space<vmem>>, vector<1x32xf32>,
    %388 = arith.index_cast %357 : i32 to index
    %c0_201 = arith.constant 0 : index
    %389 = vector.load %arg13[%388, %c0_201] : memref<8x32xf32, #tpu.memory_space<vmem>>, vector<1x32xf32>
    tpu.vector_store %arg13[%388, %c0_201], %385 {strides = array<i32>} : memref<8x32xf32, #tpu.memory_space<vmem>>, vector<1x32xf32>,
    %c3_i32_202 = arith.constant 3 : i32
    %c1_i32_203 = arith.constant 1 : i32
    %390 = arith.muli %c3_i32_202, %c1_i32_203 : i32
    %c0_204 = arith.constant 0 : index
    %c0_205 = arith.constant 0 : index
    %391 = vector.load %arg14[%c0_204, %c0_205] : memref<1x32xf32, #tpu.memory_space<vmem>>, vector<1x32xf32>
    %392 = arith.index_cast %390 : i32 to index
    %c0_206 = arith.constant 0 : index
    %393 = vector.load %arg12[%392, %c0_206] : memref<8x128xf32, #tpu.memory_space<vmem>>, vector<1x128xf32>
    %cst_207 = arith.constant dense<0.000000e+00> : vector<1x128xf32>
    %394 = tpu.matmul %391, %281, %cst_207 {dimension_numbers = #tpu.dot_dimension_numbers<[1], [0], [0], [1], [0, 0, 1, 1], [], []>} : vector<1x32xf32>, vector<32x128xf32>, vector<1x128xf32> -> vector<1x128xf32>
    %395 = arith.addf %393, %394 : vector<1x128xf32>
    %396 = tpu.iota {dimensions = array<i32: 1>} : vector<1x128xi32>
    %c64_i32_208 = arith.constant 64 : i32
    %397 = vector.broadcast %c64_i32_208 : i32 to vector<1x128xi32>
    %398 = arith.cmpi sge, %396, %397 : vector<1x128xi32>
    %c96_i32_209 = arith.constant 96 : i32
    %399 = vector.broadcast %c96_i32_209 : i32 to vector<1x128xi32>
    %400 = arith.cmpi slt, %396, %399 : vector<1x128xi32>
    %401 = arith.andi %398, %400 : vector<1x128xi1>
    %402 = math.tanh %395 : vector<1x128xf32>
    %403 = arith.negf %395 : vector<1x128xf32>
    %404 = math.exp %403 : vector<1x128xf32>
    %cst_210 = arith.constant 1.000000e+00 : f32
    %405 = vector.broadcast %cst_210 : f32 to vector<1x128xf32>
    %406 = arith.addf %405, %404 : vector<1x128xf32>
    %407 = arith.divf %405, %406 : vector<1x128xf32>
    %408 = arith.select %401, %402, %407 : vector<1x128xi1>, vector<1x128xf32>
    %409 = vector.extract_strided_slice %408 {offsets = [0, 0], sizes = [1, 32], strides = [1, 1]} : vector<1x128xf32> to vector<1x32xf32>
    %410 = vector.extract_strided_slice %408 {offsets = [0, 32], sizes = [1, 32], strides = [1, 1]} : vector<1x128xf32> to vector<1x32xf32>
    %411 = vector.extract_strided_slice %408 {offsets = [0, 64], sizes = [1, 32], strides = [1, 1]} : vector<1x128xf32> to vector<1x32xf32>
    %412 = vector.extract_strided_slice %408 {offsets = [0, 96], sizes = [1, 32], strides = [1, 1]} : vector<1x128xf32> to vector<1x32xf32>
    %c0_211 = arith.constant 0 : index
    %c0_212 = arith.constant 0 : index
    %413 = vector.load %arg15[%c0_211, %c0_212] : memref<1x32xf32, #tpu.memory_space<vmem>>, vector<1x32xf32>
    %414 = arith.mulf %410, %413 : vector<1x32xf32>
    %415 = arith.mulf %409, %411 : vector<1x32xf32>
    %416 = arith.addf %414, %415 : vector<1x32xf32>
    %417 = math.tanh %416 : vector<1x32xf32>
    %418 = arith.mulf %412, %417 : vector<1x32xf32>
    %c0_213 = arith.constant 0 : index
    %c0_214 = arith.constant 0 : index
    %419 = vector.load %arg15[%c0_213, %c0_214] : memref<1x32xf32, #tpu.memory_space<vmem>>, vector<1x32xf32>
    tpu.vector_store %arg15[%c0_213, %c0_214], %416 {strides = array<i32>} : memref<1x32xf32, #tpu.memory_space<vmem>>, vector<1x32xf32>,
    %c0_215 = arith.constant 0 : index
    %c0_216 = arith.constant 0 : index
    %420 = vector.load %arg14[%c0_215, %c0_216] : memref<1x32xf32, #tpu.memory_space<vmem>>, vector<1x32xf32>
    tpu.vector_store %arg14[%c0_215, %c0_216], %418 {strides = array<i32>} : memref<1x32xf32, #tpu.memory_space<vmem>>, vector<1x32xf32>,
    %421 = arith.index_cast %390 : i32 to index
    %c0_217 = arith.constant 0 : index
    %422 = vector.load %arg13[%421, %c0_217] : memref<8x32xf32, #tpu.memory_space<vmem>>, vector<1x32xf32>
    tpu.vector_store %arg13[%421, %c0_217], %418 {strides = array<i32>} : memref<8x32xf32, #tpu.memory_space<vmem>>, vector<1x32xf32>,
    %c4_i32_218 = arith.constant 4 : i32
    %c1_i32_219 = arith.constant 1 : i32
    %423 = arith.muli %c4_i32_218, %c1_i32_219 : i32
    %c0_220 = arith.constant 0 : index
    %c0_221 = arith.constant 0 : index
    %424 = vector.load %arg14[%c0_220, %c0_221] : memref<1x32xf32, #tpu.memory_space<vmem>>, vector<1x32xf32>
    %425 = arith.index_cast %423 : i32 to index
    %c0_222 = arith.constant 0 : index
    %426 = vector.load %arg12[%425, %c0_222] : memref<8x128xf32, #tpu.memory_space<vmem>>, vector<1x128xf32>
    %cst_223 = arith.constant dense<0.000000e+00> : vector<1x128xf32>
    %427 = tpu.matmul %424, %281, %cst_223 {dimension_numbers = #tpu.dot_dimension_numbers<[1], [0], [0], [1], [0, 0, 1, 1], [], []>} : vector<1x32xf32>, vector<32x128xf32>, vector<1x128xf32> -> vector<1x128xf32>
    %428 = arith.addf %426, %427 : vector<1x128xf32>
    %429 = tpu.iota {dimensions = array<i32: 1>} : vector<1x128xi32>
    %c64_i32_224 = arith.constant 64 : i32
    %430 = vector.broadcast %c64_i32_224 : i32 to vector<1x128xi32>
    %431 = arith.cmpi sge, %429, %430 : vector<1x128xi32>
    %c96_i32_225 = arith.constant 96 : i32
    %432 = vector.broadcast %c96_i32_225 : i32 to vector<1x128xi32>
    %433 = arith.cmpi slt, %429, %432 : vector<1x128xi32>
    %434 = arith.andi %431, %433 : vector<1x128xi1>
    %435 = math.tanh %428 : vector<1x128xf32>
    %436 = arith.negf %428 : vector<1x128xf32>
    %437 = math.exp %436 : vector<1x128xf32>
    %cst_226 = arith.constant 1.000000e+00 : f32
    %438 = vector.broadcast %cst_226 : f32 to vector<1x128xf32>
    %439 = arith.addf %438, %437 : vector<1x128xf32>
    %440 = arith.divf %438, %439 : vector<1x128xf32>
    %441 = arith.select %434, %435, %440 : vector<1x128xi1>, vector<1x128xf32>
    %442 = vector.extract_strided_slice %441 {offsets = [0, 0], sizes = [1, 32], strides = [1, 1]} : vector<1x128xf32> to vector<1x32xf32>
    %443 = vector.extract_strided_slice %441 {offsets = [0, 32], sizes = [1, 32], strides = [1, 1]} : vector<1x128xf32> to vector<1x32xf32>
    %444 = vector.extract_strided_slice %441 {offsets = [0, 64], sizes = [1, 32], strides = [1, 1]} : vector<1x128xf32> to vector<1x32xf32>
    %445 = vector.extract_strided_slice %441 {offsets = [0, 96], sizes = [1, 32], strides = [1, 1]} : vector<1x128xf32> to vector<1x32xf32>
    %c0_227 = arith.constant 0 : index
    %c0_228 = arith.constant 0 : index
    %446 = vector.load %arg15[%c0_227, %c0_228] : memref<1x32xf32, #tpu.memory_space<vmem>>, vector<1x32xf32>
    %447 = arith.mulf %443, %446 : vector<1x32xf32>
    %448 = arith.mulf %442, %444 : vector<1x32xf32>
    %449 = arith.addf %447, %448 : vector<1x32xf32>
    %450 = math.tanh %449 : vector<1x32xf32>
    %451 = arith.mulf %445, %450 : vector<1x32xf32>
    %c0_229 = arith.constant 0 : index
    %c0_230 = arith.constant 0 : index
    %452 = vector.load %arg15[%c0_229, %c0_230] : memref<1x32xf32, #tpu.memory_space<vmem>>, vector<1x32xf32>
    tpu.vector_store %arg15[%c0_229, %c0_230], %449 {strides = array<i32>} : memref<1x32xf32, #tpu.memory_space<vmem>>, vector<1x32xf32>,
    %c0_231 = arith.constant 0 : index
    %c0_232 = arith.constant 0 : index
    %453 = vector.load %arg14[%c0_231, %c0_232] : memref<1x32xf32, #tpu.memory_space<vmem>>, vector<1x32xf32>
    tpu.vector_store %arg14[%c0_231, %c0_232], %451 {strides = array<i32>} : memref<1x32xf32, #tpu.memory_space<vmem>>, vector<1x32xf32>,
    %454 = arith.index_cast %423 : i32 to index
    %c0_233 = arith.constant 0 : index
    %455 = vector.load %arg13[%454, %c0_233] : memref<8x32xf32, #tpu.memory_space<vmem>>, vector<1x32xf32>
    tpu.vector_store %arg13[%454, %c0_233], %451 {strides = array<i32>} : memref<8x32xf32, #tpu.memory_space<vmem>>, vector<1x32xf32>,
    %c5_i32_234 = arith.constant 5 : i32
    %c1_i32_235 = arith.constant 1 : i32
    %456 = arith.muli %c5_i32_234, %c1_i32_235 : i32
    %c0_236 = arith.constant 0 : index
    %c0_237 = arith.constant 0 : index
    %457 = vector.load %arg14[%c0_236, %c0_237] : memref<1x32xf32, #tpu.memory_space<vmem>>, vector<1x32xf32>
    %458 = arith.index_cast %456 : i32 to index
    %c0_238 = arith.constant 0 : index
    %459 = vector.load %arg12[%458, %c0_238] : memref<8x128xf32, #tpu.memory_space<vmem>>, vector<1x128xf32>
    %cst_239 = arith.constant dense<0.000000e+00> : vector<1x128xf32>
    %460 = tpu.matmul %457, %281, %cst_239 {dimension_numbers = #tpu.dot_dimension_numbers<[1], [0], [0], [1], [0, 0, 1, 1], [], []>} : vector<1x32xf32>, vector<32x128xf32>, vector<1x128xf32> -> vector<1x128xf32>
    %461 = arith.addf %459, %460 : vector<1x128xf32>
    %462 = tpu.iota {dimensions = array<i32: 1>} : vector<1x128xi32>
    %c64_i32_240 = arith.constant 64 : i32
    %463 = vector.broadcast %c64_i32_240 : i32 to vector<1x128xi32>
    %464 = arith.cmpi sge, %462, %463 : vector<1x128xi32>
    %c96_i32_241 = arith.constant 96 : i32
    %465 = vector.broadcast %c96_i32_241 : i32 to vector<1x128xi32>
    %466 = arith.cmpi slt, %462, %465 : vector<1x128xi32>
    %467 = arith.andi %464, %466 : vector<1x128xi1>
    %468 = math.tanh %461 : vector<1x128xf32>
    %469 = arith.negf %461 : vector<1x128xf32>
    %470 = math.exp %469 : vector<1x128xf32>
    %cst_242 = arith.constant 1.000000e+00 : f32
    %471 = vector.broadcast %cst_242 : f32 to vector<1x128xf32>
    %472 = arith.addf %471, %470 : vector<1x128xf32>
    %473 = arith.divf %471, %472 : vector<1x128xf32>
    %474 = arith.select %467, %468, %473 : vector<1x128xi1>, vector<1x128xf32>
    %475 = vector.extract_strided_slice %474 {offsets = [0, 0], sizes = [1, 32], strides = [1, 1]} : vector<1x128xf32> to vector<1x32xf32>
    %476 = vector.extract_strided_slice %474 {offsets = [0, 32], sizes = [1, 32], strides = [1, 1]} : vector<1x128xf32> to vector<1x32xf32>
    %477 = vector.extract_strided_slice %474 {offsets = [0, 64], sizes = [1, 32], strides = [1, 1]} : vector<1x128xf32> to vector<1x32xf32>
    %478 = vector.extract_strided_slice %474 {offsets = [0, 96], sizes = [1, 32], strides = [1, 1]} : vector<1x128xf32> to vector<1x32xf32>
    %c0_243 = arith.constant 0 : index
    %c0_244 = arith.constant 0 : index
    %479 = vector.load %arg15[%c0_243, %c0_244] : memref<1x32xf32, #tpu.memory_space<vmem>>, vector<1x32xf32>
    %480 = arith.mulf %476, %479 : vector<1x32xf32>
    %481 = arith.mulf %475, %477 : vector<1x32xf32>
    %482 = arith.addf %480, %481 : vector<1x32xf32>
    %483 = math.tanh %482 : vector<1x32xf32>
    %484 = arith.mulf %478, %483 : vector<1x32xf32>
    %c0_245 = arith.constant 0 : index
    %c0_246 = arith.constant 0 : index
    %485 = vector.load %arg15[%c0_245, %c0_246] : memref<1x32xf32, #tpu.memory_space<vmem>>, vector<1x32xf32>
    tpu.vector_store %arg15[%c0_245, %c0_246], %482 {strides = array<i32>} : memref<1x32xf32, #tpu.memory_space<vmem>>, vector<1x32xf32>,
    %c0_247 = arith.constant 0 : index
    %c0_248 = arith.constant 0 : index
    %486 = vector.load %arg14[%c0_247, %c0_248] : memref<1x32xf32, #tpu.memory_space<vmem>>, vector<1x32xf32>
    tpu.vector_store %arg14[%c0_247, %c0_248], %484 {strides = array<i32>} : memref<1x32xf32, #tpu.memory_space<vmem>>, vector<1x32xf32>,
    %487 = arith.index_cast %456 : i32 to index
    %c0_249 = arith.constant 0 : index
    %488 = vector.load %arg13[%487, %c0_249] : memref<8x32xf32, #tpu.memory_space<vmem>>, vector<1x32xf32>
    tpu.vector_store %arg13[%487, %c0_249], %484 {strides = array<i32>} : memref<8x32xf32, #tpu.memory_space<vmem>>, vector<1x32xf32>,
    %c6_i32_250 = arith.constant 6 : i32
    %c1_i32_251 = arith.constant 1 : i32
    %489 = arith.muli %c6_i32_250, %c1_i32_251 : i32
    %c0_252 = arith.constant 0 : index
    %c0_253 = arith.constant 0 : index
    %490 = vector.load %arg14[%c0_252, %c0_253] : memref<1x32xf32, #tpu.memory_space<vmem>>, vector<1x32xf32>
    %491 = arith.index_cast %489 : i32 to index
    %c0_254 = arith.constant 0 : index
    %492 = vector.load %arg12[%491, %c0_254] : memref<8x128xf32, #tpu.memory_space<vmem>>, vector<1x128xf32>
    %cst_255 = arith.constant dense<0.000000e+00> : vector<1x128xf32>
    %493 = tpu.matmul %490, %281, %cst_255 {dimension_numbers = #tpu.dot_dimension_numbers<[1], [0], [0], [1], [0, 0, 1, 1], [], []>} : vector<1x32xf32>, vector<32x128xf32>, vector<1x128xf32> -> vector<1x128xf32>
    %494 = arith.addf %492, %493 : vector<1x128xf32>
    %495 = tpu.iota {dimensions = array<i32: 1>} : vector<1x128xi32>
    %c64_i32_256 = arith.constant 64 : i32
    %496 = vector.broadcast %c64_i32_256 : i32 to vector<1x128xi32>
    %497 = arith.cmpi sge, %495, %496 : vector<1x128xi32>
    %c96_i32_257 = arith.constant 96 : i32
    %498 = vector.broadcast %c96_i32_257 : i32 to vector<1x128xi32>
    %499 = arith.cmpi slt, %495, %498 : vector<1x128xi32>
    %500 = arith.andi %497, %499 : vector<1x128xi1>
    %501 = math.tanh %494 : vector<1x128xf32>
    %502 = arith.negf %494 : vector<1x128xf32>
    %503 = math.exp %502 : vector<1x128xf32>
    %cst_258 = arith.constant 1.000000e+00 : f32
    %504 = vector.broadcast %cst_258 : f32 to vector<1x128xf32>
    %505 = arith.addf %504, %503 : vector<1x128xf32>
    %506 = arith.divf %504, %505 : vector<1x128xf32>
    %507 = arith.select %500, %501, %506 : vector<1x128xi1>, vector<1x128xf32>
    %508 = vector.extract_strided_slice %507 {offsets = [0, 0], sizes = [1, 32], strides = [1, 1]} : vector<1x128xf32> to vector<1x32xf32>
    %509 = vector.extract_strided_slice %507 {offsets = [0, 32], sizes = [1, 32], strides = [1, 1]} : vector<1x128xf32> to vector<1x32xf32>
    %510 = vector.extract_strided_slice %507 {offsets = [0, 64], sizes = [1, 32], strides = [1, 1]} : vector<1x128xf32> to vector<1x32xf32>
    %511 = vector.extract_strided_slice %507 {offsets = [0, 96], sizes = [1, 32], strides = [1, 1]} : vector<1x128xf32> to vector<1x32xf32>
    %c0_259 = arith.constant 0 : index
    %c0_260 = arith.constant 0 : index
    %512 = vector.load %arg15[%c0_259, %c0_260] : memref<1x32xf32, #tpu.memory_space<vmem>>, vector<1x32xf32>
    %513 = arith.mulf %509, %512 : vector<1x32xf32>
    %514 = arith.mulf %508, %510 : vector<1x32xf32>
    %515 = arith.addf %513, %514 : vector<1x32xf32>
    %516 = math.tanh %515 : vector<1x32xf32>
    %517 = arith.mulf %511, %516 : vector<1x32xf32>
    %c0_261 = arith.constant 0 : index
    %c0_262 = arith.constant 0 : index
    %518 = vector.load %arg15[%c0_261, %c0_262] : memref<1x32xf32, #tpu.memory_space<vmem>>, vector<1x32xf32>
    tpu.vector_store %arg15[%c0_261, %c0_262], %515 {strides = array<i32>} : memref<1x32xf32, #tpu.memory_space<vmem>>, vector<1x32xf32>,
    %c0_263 = arith.constant 0 : index
    %c0_264 = arith.constant 0 : index
    %519 = vector.load %arg14[%c0_263, %c0_264] : memref<1x32xf32, #tpu.memory_space<vmem>>, vector<1x32xf32>
    tpu.vector_store %arg14[%c0_263, %c0_264], %517 {strides = array<i32>} : memref<1x32xf32, #tpu.memory_space<vmem>>, vector<1x32xf32>,
    %520 = arith.index_cast %489 : i32 to index
    %c0_265 = arith.constant 0 : index
    %521 = vector.load %arg13[%520, %c0_265] : memref<8x32xf32, #tpu.memory_space<vmem>>, vector<1x32xf32>
    tpu.vector_store %arg13[%520, %c0_265], %517 {strides = array<i32>} : memref<8x32xf32, #tpu.memory_space<vmem>>, vector<1x32xf32>,
    %c7_i32_266 = arith.constant 7 : i32
    %c1_i32_267 = arith.constant 1 : i32
    %522 = arith.muli %c7_i32_266, %c1_i32_267 : i32
    %c0_268 = arith.constant 0 : index
    %c0_269 = arith.constant 0 : index
    %523 = vector.load %arg14[%c0_268, %c0_269] : memref<1x32xf32, #tpu.memory_space<vmem>>, vector<1x32xf32>
    %524 = arith.index_cast %522 : i32 to index
    %c0_270 = arith.constant 0 : index
    %525 = vector.load %arg12[%524, %c0_270] : memref<8x128xf32, #tpu.memory_space<vmem>>, vector<1x128xf32>
    %cst_271 = arith.constant dense<0.000000e+00> : vector<1x128xf32>
    %526 = tpu.matmul %523, %281, %cst_271 {dimension_numbers = #tpu.dot_dimension_numbers<[1], [0], [0], [1], [0, 0, 1, 1], [], []>} : vector<1x32xf32>, vector<32x128xf32>, vector<1x128xf32> -> vector<1x128xf32>
    %527 = arith.addf %525, %526 : vector<1x128xf32>
    %528 = tpu.iota {dimensions = array<i32: 1>} : vector<1x128xi32>
    %c64_i32_272 = arith.constant 64 : i32
    %529 = vector.broadcast %c64_i32_272 : i32 to vector<1x128xi32>
    %530 = arith.cmpi sge, %528, %529 : vector<1x128xi32>
    %c96_i32_273 = arith.constant 96 : i32
    %531 = vector.broadcast %c96_i32_273 : i32 to vector<1x128xi32>
    %532 = arith.cmpi slt, %528, %531 : vector<1x128xi32>
    %533 = arith.andi %530, %532 : vector<1x128xi1>
    %534 = math.tanh %527 : vector<1x128xf32>
    %535 = arith.negf %527 : vector<1x128xf32>
    %536 = math.exp %535 : vector<1x128xf32>
    %cst_274 = arith.constant 1.000000e+00 : f32
    %537 = vector.broadcast %cst_274 : f32 to vector<1x128xf32>
    %538 = arith.addf %537, %536 : vector<1x128xf32>
    %539 = arith.divf %537, %538 : vector<1x128xf32>
    %540 = arith.select %533, %534, %539 : vector<1x128xi1>, vector<1x128xf32>
    %541 = vector.extract_strided_slice %540 {offsets = [0, 0], sizes = [1, 32], strides = [1, 1]} : vector<1x128xf32> to vector<1x32xf32>
    %542 = vector.extract_strided_slice %540 {offsets = [0, 32], sizes = [1, 32], strides = [1, 1]} : vector<1x128xf32> to vector<1x32xf32>
    %543 = vector.extract_strided_slice %540 {offsets = [0, 64], sizes = [1, 32], strides = [1, 1]} : vector<1x128xf32> to vector<1x32xf32>
    %544 = vector.extract_strided_slice %540 {offsets = [0, 96], sizes = [1, 32], strides = [1, 1]} : vector<1x128xf32> to vector<1x32xf32>
    %c0_275 = arith.constant 0 : index
    %c0_276 = arith.constant 0 : index
    %545 = vector.load %arg15[%c0_275, %c0_276] : memref<1x32xf32, #tpu.memory_space<vmem>>, vector<1x32xf32>
    %546 = arith.mulf %542, %545 : vector<1x32xf32>
    %547 = arith.mulf %541, %543 : vector<1x32xf32>
    %548 = arith.addf %546, %547 : vector<1x32xf32>
    %549 = math.tanh %548 : vector<1x32xf32>
    %550 = arith.mulf %544, %549 : vector<1x32xf32>
    %c0_277 = arith.constant 0 : index
    %c0_278 = arith.constant 0 : index
    %551 = vector.load %arg15[%c0_277, %c0_278] : memref<1x32xf32, #tpu.memory_space<vmem>>, vector<1x32xf32>
    tpu.vector_store %arg15[%c0_277, %c0_278], %548 {strides = array<i32>} : memref<1x32xf32, #tpu.memory_space<vmem>>, vector<1x32xf32>,
    %c0_279 = arith.constant 0 : index
    %c0_280 = arith.constant 0 : index
    %552 = vector.load %arg14[%c0_279, %c0_280] : memref<1x32xf32, #tpu.memory_space<vmem>>, vector<1x32xf32>
    tpu.vector_store %arg14[%c0_279, %c0_280], %550 {strides = array<i32>} : memref<1x32xf32, #tpu.memory_space<vmem>>, vector<1x32xf32>,
    %553 = arith.index_cast %522 : i32 to index
    %c0_281 = arith.constant 0 : index
    %554 = vector.load %arg13[%553, %c0_281] : memref<8x32xf32, #tpu.memory_space<vmem>>, vector<1x32xf32>
    tpu.vector_store %arg13[%553, %c0_281], %550 {strides = array<i32>} : memref<8x32xf32, #tpu.memory_space<vmem>>, vector<1x32xf32>,
    %c8_i32_282 = arith.constant 8 : i32
    %c0_283 = arith.constant 0 : index
    %c0_284 = arith.constant 0 : index
    %555 = vector.load %arg13[%c0_283, %c0_284] : memref<8x32xf32, #tpu.memory_space<vmem>>, vector<8x32xf32>
    %c0_285 = arith.constant 0 : index
    %c0_286 = arith.constant 0 : index
    %556 = vector.load %arg9[%c0_285, %c0_286] : memref<32x128xf32, #tpu.memory_space<vmem>>, vector<32x128xf32>
    %cst_287 = arith.constant dense<0.000000e+00> : vector<8x128xf32>
    %557 = tpu.matmul %555, %556, %cst_287 {dimension_numbers = #tpu.dot_dimension_numbers<[1], [0], [0], [1], [0, 0, 1, 1], [], []>} : vector<8x32xf32>, vector<32x128xf32>, vector<8x128xf32> -> vector<8x128xf32>
    %c0_288 = arith.constant 0 : index
    %c0_289 = arith.constant 0 : index
    %558 = vector.load %arg10[%c0_288, %c0_289] : memref<1x128xf32, #tpu.memory_space<vmem>>, vector<1x128xf32>
    %559 = vector.broadcast %558 : vector<1x128xf32> to vector<8x128xf32>
    %560 = arith.addf %557, %559 : vector<8x128xf32>
    %c0_290 = arith.constant 0 : index
    %c0_291 = arith.constant 0 : index
    %c0_292 = arith.constant 0 : index
    %561 = vector.load %arg11[%c0_290, %c0_291, %c0_292] : memref<1x8x128xf32, #tpu.memory_space<vmem>>, vector<1x8x128xf32>
    %562 = vector.shape_cast %561 : vector<1x8x128xf32> to vector<8x128xf32>
    %563 = vector.shape_cast %560 : vector<8x128xf32> to vector<1x8x128xf32>
    tpu.vector_store %arg11[%c0_290, %c0_291, %c0_292], %563 {strides = array<i32>} : memref<1x8x128xf32, #tpu.memory_space<vmem>>, vector<1x8x128xf32>,
    return
  }
  func.func @transform_0(%arg0: i32) -> (i32, i32, i32) {
    %c0_i32 = arith.constant 0 : i32
    %c0_i32_0 = arith.constant 0 : i32
    %c0_i32_1 = arith.constant 0 : i32
    return %arg0, %c0_i32, %c0_i32_0 : i32, i32, i32
  }
  func.func @transform_1(%arg0: i32) -> (i32, i32) {
    %c0_i32 = arith.constant 0 : i32
    %c0_i32_0 = arith.constant 0 : i32
    %c0_i32_1 = arith.constant 0 : i32
    return %c0_i32, %c0_i32_0 : i32, i32
  }
  func.func @transform_2(%arg0: i32) -> (i32, i32) {
    %c0_i32 = arith.constant 0 : i32
    %c0_i32_0 = arith.constant 0 : i32
    %c0_i32_1 = arith.constant 0 : i32
    return %c0_i32, %c0_i32_0 : i32, i32
  }
  func.func @transform_3(%arg0: i32) -> (i32, i32) {
    %c0_i32 = arith.constant 0 : i32
    %c0_i32_0 = arith.constant 0 : i32
    %c0_i32_1 = arith.constant 0 : i32
    return %c0_i32, %c0_i32_0 : i32, i32
  }
  func.func @transform_4(%arg0: i32) -> (i32, i32) {
    %c0_i32 = arith.constant 0 : i32
    %c0_i32_0 = arith.constant 0 : i32
    %c0_i32_1 = arith.constant 0 : i32
    return %c0_i32, %c0_i32_0 : i32, i32
  }
  func.func @transform_5(%arg0: i32) -> (i32, i32) {
    %c0_i32 = arith.constant 0 : i32
    %c0_i32_0 = arith.constant 0 : i32
    %c0_i32_1 = arith.constant 0 : i32
    return %c0_i32, %c0_i32_0 : i32, i32
  }
  func.func @transform_6(%arg0: i32) -> (i32, i32) {
    %c0_i32 = arith.constant 0 : i32
    %c0_i32_0 = arith.constant 0 : i32
    %c0_i32_1 = arith.constant 0 : i32
    return %c0_i32, %c0_i32_0 : i32, i32
  }
  func.func @transform_7(%arg0: i32) -> (i32, i32) {
    %c0_i32 = arith.constant 0 : i32
    %c0_i32_0 = arith.constant 0 : i32
    %c0_i32_1 = arith.constant 0 : i32
    return %c0_i32, %c0_i32_0 : i32, i32
  }
  func.func @transform_8(%arg0: i32) -> (i32, i32) {
    %c0_i32 = arith.constant 0 : i32
    %c0_i32_0 = arith.constant 0 : i32
    %c0_i32_1 = arith.constant 0 : i32
    return %c0_i32, %c0_i32_0 : i32, i32
  }
  func.func @transform_9(%arg0: i32) -> (i32, i32) {
    %c0_i32 = arith.constant 0 : i32
    %c0_i32_0 = arith.constant 0 : i32
    %c0_i32_1 = arith.constant 0 : i32
    return %c0_i32, %c0_i32_0 : i32, i32
  }
  func.func @transform_10(%arg0: i32) -> (i32, i32, i32) {
    %c0_i32 = arith.constant 0 : i32
    %c0_i32_0 = arith.constant 0 : i32
    %c0_i32_1 = arith.constant 0 : i32
    return %arg0, %c0_i32, %c0_i32_0 : i32, i32, i32
  }
}

</mosaic_0001>

<bundles_post_ra>
// kernel: tpu_custom_call.1
= control target key start
LH: loop header
LB: loop body
LE: loop exit
PB: predicated region body
PF: predicated region fallthrough
CT: control target
= control target key end

     0   :  { %s4522_s0 = inlined_call_operand.hbm [shape: f32[2,8,16], index: 0, kind: input, shape index: {}]   ;;  %s4523_s1 = inlined_call_operand.hbm [shape: f32[16,32], index: 1, kind: input, shape index: {}]   ;;  %s4524_s2 = inlined_call_operand.hbm [shape: f32[32,128], index: 2, kind: input, shape index: {}]   ;;  %s4525_s3 = inlined_call_operand.hbm [shape: f32[32,128], index: 3, kind: input, shape index: {}]   ;;  %s4526_s4 = inlined_call_operand.vmem [shape: f32[1,128], index: 4, kind: input, shape index: {}]   ;;  %s4527_s5 = inlined_call_operand.hbm [shape: f32[32,128], index: 5, kind: input, shape index: {}]   ;;  %s4528_s6 = inlined_call_operand.hbm [shape: f32[32,128], index: 6, kind: input, shape index: {}]   ;;  %s4529_s7 = inlined_call_operand.vmem [shape: f32[1,128], index: 7, kind: input, shape index: {}]   ;;  %s4530_s8 = inlined_call_operand.hbm [shape: f32[32,128], index: 8, kind: input, shape index: {}]   ;;  %s4531_s9 = inlined_call_operand.vmem [shape: f32[1,128], index: 9, kind: input, shape index: {}]   ;;  %s4532_s10 = inlined_call_operand.hbm [shape: f32[2,8,128], index: 10, kind: output, shape index: {}]  }
   0x1   :  { %4537 = sst [smem:[#allocation24_spill]] %s4523_s1 }
   0x2   :  { %4538 = sst [smem:[#allocation25_spill]] %s4524_s2 }
   0x3   :  { %4539 = sst [smem:[#allocation26_spill]] %s4525_s3 }
   0x4   :  { %4540 = sst [smem:[#allocation27_spill]] %s4527_s5 }
   0x5   :  { %4541 = sst [smem:[#allocation28_spill]] %s4528_s6 }
   0x6   :  { %15 = vsyncpa [#allocation7], 0 }
   0x7   :  { %17 = vsyncpa [#allocation7 + $0x1], 0 }
   0x8   :  { %18 = vsyncpa [#allocation10], 0 }
   0x9   :  { %19 = vsyncpa [#allocation13], 0 }
   0xa   :  { %20 = vsyncpa [#allocation16], 0 }
   0xb   :  { %21 = vsyncpa [#allocation8], 0 }
   0xc   :  { %23 = vsyncpa [#allocation8 + $0x1], 0  ;;  %s3859_s13 = smov 0   ;;  %s3861_s14 = smov 0  }
   0xd   :  { %s3863_s15 = smov 0   ;;  %s3865_s16 = smov 0  }
   0xe LB: > { %s3789_s17 = smov [#allocation9]   ;;  %s3880_s19 = sadd.s32 4294967295, %s3787_s16   ;;  %s3787_s16 = sphi %s3865_s16, %s4571_s16   ;;  %s3783_s15 = sphi %s3863_s15, %s4570_s15   ;;  %s3779_s14 = sphi %s3861_s14, %s4569_s14   ;;  %s3775_s13 = sphi %s3859_s13, %s4568_s13  }
   0xf   : > { %s287_s18 = sshll.u32 %s3789_s17, 4  ;;  %p2893_p0 = scmp.ge.s32.totalorder %s3787_s16, 1  ;;  %s288_s18 = int_to_ptr.vmem [resolvable:$true] %s287_s18 }
  0x10   : > { %p4533_p1 = scmp.eq.s32.totalorder %s3880_s19, 0  ;;  %p275_p2 = scmp.lt.s32.totalorder %s3787_s16, 3 }
  0x11   : > { %s3790_s21 = smov [#allocation12]   ;;  %s3791_s24 = smov [#allocation15]  }
  0x12   : > { %p3885_p3 = pnand %p2893_p0, %p275_p2  ;;  %s313_s22 = sshll.u32 %s3790_s21, 4  ;;  %s3898_s22 = int_to_ptr.vmem [resolvable:$true] %s313_s22 }
  0x13   : > { %s342_s25 = sshll.u32 %s3791_s24, 4  ;;  %s3538_s27 = scalar_lea.vmem %s288_s18, 256  ;;  %s3900_s25 = int_to_ptr.vmem [resolvable:$true] %s342_s25 }
  0x14   : > { %s4542_s20 = scalar_select %p3885_p3, 1, 0 }
  0x15   : > { %p3313_p5 = pneg %p3885_p3  ;;  %p3539_p8 = scmp.ne.s32.totalorder %s288_s18, %s3538_s27 }
  0x16   : > { %p3546_p11 = scmp.lt.s32.totalorder %s288_s18, %s288_s18  ;;  %p3547_p12 = scmp.lt.s32.totalorder %s3538_s27, %s3538_s27 }
  0x17   : > { %p3894_p6 = pnand %p3313_p5, %p4533_p1 }
  0x18   : > { %p3548_p13 = por %p3547_p12, %p3546_p11 }
  0x19   : > { %p3904_p7 = pneg %p3894_p6 }
  0x1b   : > { %p3541_p9 = pnand %p3539_p8, %p3904_p7 }
  0x1d   : > { %p3542_p10 = pneg %p3541_p9 }
  0x1f   : > { %p3549_p0 = pnand %p3548_p13, %p3542_p10 }
  0x21   : > { %3552 = shalt.err (!%p3549_p0)
}
  0x22   : > { %s3792_s28 = smov 128   ;;  %s3793_s29 = smov 8  }
  0x23   : > { %s4545_s1 = sld [smem:[#allocation24_spill]]  ;;  %s3564_s12 = scalar_lea.vmem %s3898_s22, 512 }
  0x24   : > { %p3565_p2 = scmp.ne.s32.totalorder %s3898_s22, %s3564_s12  ;;  %p3572_p9 = scmp.lt.s32.totalorder %s3898_s22, %s3898_s22 }
  0x25   : > { %p3573_p10 = scmp.lt.s32.totalorder %s3564_s12, %s3564_s12 }
  0x26   : > { %p3567_p5 = pnand %p3565_p2, %p3904_p7 }
  0x27   : > { %p3574_p11 = por %p3573_p10, %p3572_p9 }
  0x28   : > { %p3568_p8 = pneg %p3567_p5 }
  0x29   : > { %3316 = dma.hbm_to_vmem [thread:$0]  (!%p3894_p6), %s4545_s1, 256, %s288_s18, [#allocation10], %s3792_s28, %s3792_s28, %s3793_s29  }
  0x2a   : > { %p3575_p12 = pnand %p3574_p11, %p3568_p8 }
  0x2c   : > { %3578 = shalt.err (!%p3575_p12)
}
  0x2d   : > { %s4546_s3 = sld [smem:[#allocation26_spill]]  ;;  %s3590_s18 = scalar_lea.vmem %s3900_s25, 512 }
  0x2e   : > { %p3591_p13 = scmp.ne.s32.totalorder %s3900_s25, %s3590_s18  ;;  %p3598_p5 = scmp.lt.s32.totalorder %s3900_s25, %s3900_s25 }
  0x2f   : > { %p3599_p8 = scmp.lt.s32.totalorder %s3590_s18, %s3590_s18 }
  0x30   : > { %p3593_p0 = pnand %p3591_p13, %p3904_p7 }
  0x31   : > { %p3600_p9 = por %p3599_p8, %p3598_p5 }
  0x32   : > { %p3594_p2 = pneg %p3593_p0 }
  0x33   : > { %3322 = dma.hbm_to_vmem [thread:$0]  (!%p3894_p6), %s4546_s3, 512, %s3898_s22, [#allocation13], %s3792_s28, %s3792_s28, %s3793_s29  }
  0x34   : > { %p3601_p10 = pnand %p3600_p9, %p3594_p2 }
  0x36   : > { %3604 = shalt.err (!%p3601_p10)
}
  0x37   : > { %s4547_s6 = sld [smem:[#allocation28_spill]]  ;;  %s3794_s22 = smov [#allocation11]  }
  0x38   : > { %s300_s30 = sshll.u32 %s3794_s22, 4  ;;  %s3795_s11 = smov [#allocation14]   ;;  %s301_s30 = int_to_ptr.vmem [resolvable:$true] %s300_s30 }
  0x39   : > { %s329_s12 = sshll.u32 %s3795_s11, 4  ;;  %s3616_s17 = scalar_lea.vmem %s301_s30, 512  ;;  %s330_s12 = int_to_ptr.vmem [resolvable:$true] %s329_s12 }
  0x3a   : > { %p3617_p11 = scmp.ne.s32.totalorder %s301_s30, %s3616_s17  ;;  %p3624_p0 = scmp.lt.s32.totalorder %s301_s30, %s301_s30 }
  0x3b   : > { %p3625_p2 = scmp.lt.s32.totalorder %s3616_s17, %s3616_s17 }
  0x3c   : > { %p3619_p12 = pnand %p3617_p11, %p3904_p7 }
  0x3d   : > { %3328 = dma.hbm_to_vmem [thread:$0]  (!%p3894_p6), %s4547_s6, 512, %s3900_s25, [#allocation16], %s3792_s28, %s3792_s28, %s3793_s29  }
  0x3e   : > { %p3620_p13 = pneg %p3619_p12  ;;  %p3626_p5 = por %p3625_p2, %p3624_p0 }
  0x40   : > { %p3627_p8 = pnand %p3626_p5, %p3620_p13 }
  0x42   : > { %3630 = shalt.err (!%p3627_p8)
}
  0x43   : > { %s4548_s2 = sld [smem:[#allocation25_spill]]  ;;  %s3642_s18 = scalar_lea.vmem %s330_s12, 512 }
  0x44   : > { %p3643_p9 = scmp.ne.s32.totalorder %s330_s12, %s3642_s18  ;;  %p3650_p12 = scmp.lt.s32.totalorder %s330_s12, %s330_s12 }
  0x45   : > { %p3651_p0 = scmp.lt.s32.totalorder %s3642_s18, %s3642_s18 }
  0x46   : > { %p3645_p10 = pnand %p3643_p9, %p3904_p7 }
  0x47   : > { %p3652_p13 = por %p3651_p0, %p3650_p12 }
  0x48   : > { %p3646_p11 = pneg %p3645_p10 }
  0x49   : > { %3319 = dma.hbm_to_vmem [thread:$0]  (!%p3894_p6), %s4548_s2, 512, %s301_s30, [#allocation10], %s3792_s28, %s3792_s28, %s3793_s29  }
  0x4a   : > { %p3653_p2 = pnand %p3652_p13, %p3646_p11 }
  0x4c   : > { %3656 = shalt.err (!%p3653_p2)
}
  0x4d   : > { %s4549_s5 = sld [smem:[#allocation27_spill]]  ;;  %s3796_s22 = smov [#allocation17]  }
  0x4e   : > { %s358_s30 = sshll.u32 %s3796_s22, 4  ;;  %s359_s30 = int_to_ptr.vmem [resolvable:$true] %s358_s30 }
  0x4f   : > { %s3668_s11 = scalar_lea.vmem %s359_s30, 512  ;;  %p3676_p10 = scmp.lt.s32.totalorder %s359_s30, %s359_s30 }
  0x50   : > { %p3669_p5 = scmp.ne.s32.totalorder %s359_s30, %s3668_s11  ;;  %p3677_p11 = scmp.lt.s32.totalorder %s3668_s11, %s3668_s11 }
  0x52   : > { %p3671_p8 = pnand %p3669_p5, %p3904_p7  ;;  %p3678_p12 = por %p3677_p11, %p3676_p10 }
  0x53   : > { %3325 = dma.hbm_to_vmem [thread:$0]  (!%p3894_p6), %s4549_s5, 512, %s330_s12, [#allocation13], %s3792_s28, %s3792_s28, %s3793_s29  }
  0x54   : > { %p3672_p9 = pneg %p3671_p8 }
  0x56   : > { %p3679_p0 = pnand %p3678_p12, %p3672_p9 }
  0x58   : > { %3682 = shalt.err (!%p3679_p0)
}
  0x59   : > { %3331 = dma.hbm_to_vmem [thread:$0]  (!%p3894_p6), %s4530_s8, 512, %s359_s30, [#allocation16], %s3792_s28, %s3792_s28, %s3793_s29  }
  0x5a   : > { %s2892_s23 = sadd.s32 4294967294, %s3787_s16   ;;  %s3980_s26 = sadd.s32 1, %s3787_s16  }
  0x5b   : > { %s33_s25 = ssub.s32 %s3787_s16, %s3980_s26  ;;  %s36_s21 = sadd.s32 1, %s3783_s15 }
  0x5c   : > { %p34_p7 = scmp.eq.s32.totalorder %s33_s25, 0  ;;  %p43_p13 = scmp.ne.s32.totalorder %s3783_s15, %s3779_s14 }
  0x5d   : > { %p44_p2 = scmp.eq.s32.totalorder %s3787_s16, 0  ;;  %p49_p5 = scmp.ne.s32.totalorder %s3779_s14, %s3775_s13 }
  0x5e   : > { %s3991_s18 = scalar_select %p34_p7, %s3783_s15, %s36_s21  }
  0x5f   : > { %p3993_p8 = por %p44_p2, %p43_p13  ;;  %p3999_p6 = por %p4533_p1, %p49_p5 }
  0x60   : > { %p262_p9 = scmp.eq.s32.totalorder %s3880_s19, 1  ;;  %p268_p10 = scmp.eq.s32.totalorder %s2892_s23, 1 }
  0x61   : > { %s4551_s28 = scalar_select %p3999_p6, 1, 0 }
  0x62   : > { %p3346_p11 = scmp.lt.s32.totalorder %s3787_s16, 2  ;;  %s375_s29 = sand.u32 1, %s3783_s15  }
  0x63   : > { %p4006_p12 = por %p262_p9, %p43_p13  ;;  %p4010_p0 = por %p268_p10, %p49_p5 }
  0x64   : > { %s2901_s30 = sshll.u32 %s375_s29, 3  ;;  %s2902_s11 = sshll.u32 %s3787_s16, 7 }
  0x65   : > { %s4552_s27 = scalar_select %p4006_p12, 1, 0 }
  0x66   : > { %s4553_s22 = scalar_select %p4010_p0, 1, 0 }
  0x67   : > { %s4018_s25 = scalar_lea.hbm %s4522_s0, %s2902_s11  ;;  %s379_s23 = scalar_lea.vmem [#allocation6], %s2901_s30 }
  0x68   : > { %s386_s21 = sshll.u32 %s379_s23, 4  ;;  %p4022_p7 = pnand %p3346_p11, %p3993_p8  ;;  %s387_s21 = int_to_ptr.vmem [resolvable:$true] %s386_s21 }
  0x69   : > { %s376_s2 = scalar_lea.sflag [#allocation7], %s375_s29  ;;  %s3683_s3 = scalar_lea.hbm %s4018_s25, 128 }
  0x6a   : > { %p3684_p13 = scmp.ne.s32.totalorder %s4018_s25, %s3683_s3  ;;  %p3685_p2 = pneg %p4022_p7 }
  0x6b   : > { %s3688_s12 = scalar_lea.hbm %s4522_s0, 256  ;;  %p3689_p10 = scmp.lt.s32.totalorder %s4018_s25, %s4522_s0 }
  0x6c   : > { %p3686_p5 = pnand %p3685_p2, %p3684_p13  ;;  %p3690_p8 = scmp.lt.s32.totalorder %s3688_s12, %s3683_s3 }
  0x6e   : > { %p3687_p9 = pneg %p3686_p5  ;;  %p3691_p11 = por %p3690_p8, %p3689_p10 }
  0x70   : > { %p3692_p4 = pnand %p3691_p11, %p3687_p9 }
  0x72   : > { %3695 = shalt.err (!%p3692_p4)
}
  0x73   : > { %s3696_s24 = scalar_lea.vmem %s387_s21, 128  ;;  %s3797_s29 = smov [#allocation6]  }
  0x74   : > { %p3697_p1 = scmp.ne.s32.totalorder %s387_s21, %s3696_s24  ;;  %s3701_s5 = sshll.u32 %s3797_s29, 4  ;;  %s3702_s5 = int_to_ptr.vmem [resolvable:$false] %s3701_s5 }
  0x75   : > { %s3703_s6 = scalar_lea.vmem %s3702_s5, 256  ;;  %p3704_p13 = scmp.lt.s32.totalorder %s387_s21, %s3702_s5 }
  0x76   : > { %p3699_p0 = pnand %p3697_p1, %p3685_p2  ;;  %p3705_p5 = scmp.lt.s32.totalorder %s3703_s6, %s3696_s24 }
  0x78   : > { %p3700_p12 = pneg %p3699_p0  ;;  %p3706_p6 = por %p3705_p5, %p3704_p13 }
  0x7a   : > { %p3707_p3 = pnand %p3706_p6, %p3700_p12 }
  0x7c   : > { %3710 = shalt.err (!%p3707_p3)
}
  0x7d   : > { %3335 = dma.hbm_to_vmem [thread:$0]  (!%p4022_p7), %s4018_s25, 128, %s387_s21, %s376_s2  }
  0x7e   : > { %p4555_p9 = scmp.ne.s32.totalorder %s4542_s20, 0 }
  0x7f   : > { %s4043_s3 = sand.u32 (!%p4555_p9), 1, %s3779_s14   ;;  %p4556_p1 = scmp.ne.s32.totalorder (!%p4555_p9), %s4551_s28, 0 }
  0x80   : > { %395 = sbr.rel (%p4555_p9) target bundleno = 12026 (0x2efa), region = 60  ;;  %s2904_s11 = sshll.u32 (!%p4555_p9), %s4043_s3, 3 }
  0x81   : > { %s398_s5 = scalar_lea.sflag (!%p4555_p9), [#allocation7], %s4043_s3  ;;  %s401_s6 = scalar_lea.vmem (!%p4555_p9), [#allocation6], %s2904_s11 }
  0x85   : > { %3754 = dma.done.wait (%p4556_p1), %s398_s5, 128  }
  0x86   : > { %3756 = vsyncadd (%p4556_p1), %s398_s5, 4294967168  ;;  %p4557_p3 = scmp.eq.s32.totalorder %s3880_s19, 0 }
  0x88   : > { %3758 = dma.done.wait (%p4557_p3), [#allocation10], 768   ;;  %p4558_p4 = pmov %p4557_p3 }
  0x89   : > { %p4559_p6 = pmov %p4557_p3 }
  0x8a   : > { %3760 = vsyncadd (%p4558_p4), [#allocation10], 4294966528 }
  0x8b   : > { %3762 = dma.done.wait (%p4559_p6), [#allocation13], 1024   ;;  %p4560_p12 = pmov %p4557_p3 }
  0x8c   : > { %p4561_p0 = pmov %p4557_p3 }
  0x8d   : > { %3764 = vsyncadd (%p4560_p12), [#allocation13], 4294966272 }
  0x8e   : > { %3766 = dma.done.wait (%p4561_p0), [#allocation16], 1024   ;;  %p4562_p7 = pmov %p4561_p0 }
  0x8f   : > { %v3798_v0 = vmov 0.0   ;;  %vm3799_vm0 = vmmov 0   ;;  %v464_v1 = vld [vmem:[#allocation9 + $0x8] sm:$0xff]  ;;  %v463_v2 = vld [vmem:[#allocation9] sm:$0xff]  ;;  %v462_v3 = vld [vmem:[%s401_s6] sm:$0xff]  ;;  %vm465_vm1 = vcmask 130048   ;;  %v708_v26 = vlaneseq }
  0x90   : > { %3768 = vsyncadd (%p4562_p7), [#allocation16], 4294966272  ;;  %3069 = vmatprep.subr.mxu0 %v3798_v0  ;;  %3073 = vmatprep.mubr.msk.f32.mxu0 %vm3799_vm0, %v3798_v0  ;;  %v542_v4 = vld [vmem:[#allocation11 + $0x18] sm:$0xff]  ;;  %v541_v5 = vld [vmem:[#allocation11 + $0x10] sm:$0xff]  ;;  %vm629_vm2 = vcmask 253952   ;;  %vm554_vm3 = vcmask 261120  }
  0x91   : > { %3076 = vmatprep.subr.mxu1 %v3798_v0  ;;  %3084 = vmatprep.mubr.msk.f32.mxu1 %vm3799_vm0, %v3798_v0  ;;  %v540_v6 = vld [vmem:[#allocation11 + $0x8] sm:$0xff]  ;;  %v539_v7 = vld [vmem:[#allocation11] sm:$0xff]  ;;  %v4078_v8 = vld [vmem:[#allocation12 + $0x18] sm:$0xff]  ;;  %630 = vst.msk [vmem:[#allocation4] sm:$0x1] %vm629_vm2, %v3798_v0  ;;  %v709_v27 = vand.u32 127, %v708_v26 }
  0x92   : > { %3070 = vmatpush3.msra.mxu0 %v464_v1  ;;  %3077 = vmatpush3.msra.mxu1 %v542_v4  ;;  %631 = vst.msk [vmem:[#allocation5] sm:$0x1] %vm629_vm2, %v3798_v0  ;;  %v4086_v9 = vld [vmem:[#allocation12 + $0x10] sm:$0xff]  ;;  %v4089_v10 = vld [vmem:[#allocation12 + $0x8] sm:$0xff]  ;;  %v4093_v11 = vld [vmem:[#allocation12] sm:$0xff]  ;;  %s3800_s20 = smov 64  }
  0x93   : > { %3071 = vmatprep.subr.mxu0 %v3798_v0  ;;  %3078 = vmatprep.subr.mxu1 %v3798_v0  ;;  %v2913_v17 = vld [vmem:[%s4526_s4] ss:$0 sm:$0xff]  ;;  %vm710_vm4 = vcmp.ge.s32.totalorder %v709_v27, 64  ;;  %vm711_vm5 = vcmp.lt.s32.totalorder %v709_v27, 96  ;;  %s3801_s28 = smov 32   ;;  %s3802_s25 = smov 96  }
  0x94   : > { %3072 = vmatpush3.msra.mxu0 %v463_v2  ;;  %3079 = vmatpush3.msra.mxu1 %v541_v5  ;;  %vm4124_vm6 = vmand %vm710_vm4, %vm711_vm5  ;;  %v2667_v28 = vld [vmem:[#allocation17 + $0x8] sm:$0xff]  ;;  %s2968_s23 = sshll.u32 %s3880_s19, 7  ;;  %s461_s24 = scalar_lea.vmem [#allocation18], %s2904_s11 }
  0x95   : > { %3074 = vmatmul.mubr.msk.f32.vlgmr.msra.gmra.mxu0 %vm465_vm1, %v462_v3  ;;  %3080 = vmatprep.subr.mxu1 %v3798_v0  ;;  %s2765_s29 = sshll.u32 %s461_s24, 4  ;;  %s4485_s1 = scalar_lea.hbm %s4532_s10, %s2968_s23  ;;  %s2766_s29 = int_to_ptr.vmem [resolvable:$true] %s2765_s29 }
  0x96   : > { %3087 = vmatprep.subr.mxu0 %v3798_v0  ;;  %3081 = vmatpush3.msra.mxu1 %v540_v6  ;;  %s2752_s2 = scalar_lea.sflag [#allocation8], %s4043_s3  ;;  %p4565_p10 = scmp.ne.s32.totalorder %s4552_s27, 0 }
  0x97   : > { %3095 = vmatprep.mubr.msk.f32.mxu0 %vm3799_vm0, %v3798_v0  ;;  %3082 = vmatprep.subr.mxu1 %v3798_v0  ;;  %s3803_s19 = smov [#allocation18]  }
  0x98   : > { %3083 = vmatpush3.msra.mxu1 %v539_v7  ;;  %3088 = vmatpush3.msra.mxu0 %v4078_v8  ;;  %v632_v12 = vld [vmem:[#allocation4] sm:$0x1] }
  0x99   : > { %3098 = vmatprep.subr.mxu1 %v3798_v0  ;;  %3089 = vmatprep.subr.mxu0 %v3798_v0  ;;  %v2917_v32 = vld [vmem:[#allocation5] ss:$0 sm:$0xff] }
  0x9a   : > { %3090 = vmatpush3.msra.mxu0 %v4086_v9 }
  0x9b   : > { %3091 = vmatprep.subr.mxu0 %v3798_v0 }
  0x9c   : > { %3092 = vmatpush3.msra.mxu0 %v4089_v10 }
  0x9d   : > { %3093 = vmatprep.subr.mxu0 %v3798_v0 }
  0x9e   : > { %3094 = vmatpush3.msra.mxu0 %v4093_v11 }
  0x9f   : > { %3096 = vmatmul.mubr.msk.f32.vlgmr.msra.gmra.mxu0 %vm554_vm3, %v632_v12  ;;  %3109 = vmatprep.subr.mxu0 %v3798_v0 }
  0xa0   : > { %3110 = vmatpush3.msra.mxu0 %v4078_v8  ;;  %3117 = vmatprep.mubr.msk.f32.mxu0 %vm3799_vm0, %v3798_v0 }
  0xa1   : > { %3111 = vmatprep.subr.mxu0 %v3798_v0 }
  0xa2   : > { %3112 = vmatpush3.msra.mxu0 %v4086_v9 }
  0xa3   : > { %3113 = vmatprep.subr.mxu0 %v3798_v0 }
  0xa4   : > { %3114 = vmatpush3.msra.mxu0 %v4089_v10 }
  0xa5   : > { %3115 = vmatprep.subr.mxu0 %v3798_v0 }
  0xa6   : > { %3116 = vmatpush3.msra.mxu0 %v4093_v11 }
  0xa7   : > { %3131 = vmatprep.subr.mxu0 %v3798_v0 }
 0x155   : > { %v535_v13 = vpop.f32.mrf.mxu0 }
 0x156   : > { %3085 = vmatmul.mubr.msk.f32.vlgmr.msra.gmra.mxu1 %vm554_vm3, %v535_v13 }
 0x157   : > { %v3075_v14 = vpop.f32.mrf.mxu0  ;;  %3099 = vmatpush3.msra.mxu1 %v4078_v8  ;;  %3106 = vmatprep.mubr.msk.f32.mxu1 %vm3799_vm0, %v3798_v0 }
 0x158   : > { %3100 = vmatprep.subr.mxu1 %v3798_v0 }
 0x159   : > { %3101 = vmatpush3.msra.mxu1 %v4086_v9 }
 0x15a   : > { %3102 = vmatprep.subr.mxu1 %v3798_v0 }
 0x15b   : > { %3103 = vmatpush3.msra.mxu1 %v4089_v10 }
 0x15c   : > { %3104 = vmatprep.subr.mxu1 %v3798_v0 }
 0x15d   : > { %3105 = vmatpush3.msra.mxu1 %v4093_v11 }
 0x15e   : > { %3120 = vmatprep.subr.mxu1 %v3798_v0 }
 0x15f   : > { %v703_v15 = vpop.f32.mrf.mxu0 }
 0x161   : > { %v3097_v16 = vpop.f32.mrf.mxu0 }
 0x216   : > { %v624_v18 = vpop.f32.mrf.mxu1 }
 0x217   : > { %v625_v19 = vadd.f32 %v2913_v17, %v624_v18 }
 0x218   : > { %v3086_v20 = vpop.f32.mrf.mxu1 }
 0x219   : > { %628 = vst [vmem:[#allocation2] sm:$0xff] %v625_v19 }
 0x220   : > { %v633_v21 = vld [vmem:[#allocation2] sm:$0x1]  ;;  %v759_v46 = vld [vmem:[#allocation2 + $0x1] sm:$0x1]  ;;  %v880_v6 = vld [vmem:[#allocation2 + $0x2] sm:$0x1] }
 0x221   : > { %v707_v22 = vadd.f32 %v703_v15, %v633_v21 }
 0x223   : > { %v2916_v23 = vmul.f32 -1.442695, %v707_v22 }
 0x225   : > { %3399 = vpow2.f32 %v2916_v23 }
 0x226   : > { %3401 = vtanh.f32 %v707_v22 }
 0x232   : > { %v3400_v24 = vpop.eup %3399 }
 0x233   : > { %v717_v25 = vadd.f32 1.0, %v3400_v24  ;;  %v3402_v29 = vpop.eup %3401 }
 0x235   : > { %3403 = vrcp.f32 %v717_v25 }
 0x242   : > { %v3404_v30 = vpop.eup %3403 }
 0x243   : > { %v720_v31 = vsel %vm4124_vm6, %v3402_v29, %v3404_v30 }
 0x244   : > { %732 = vrot.lane.b32.xlu0 %v720_v31, %s3800_s20 }
 0x248   : > { %727 = vrot.lane.b32.xlu0 %v2917_v32, %s3801_s28 }
 0x2b6   : > { %v733_v33 = vpop.permute.xlu0 %732 }
 0x2b7   : > { %v735_v34 = vmul.f32 %v733_v33, %v720_v31 }
 0x2b9   : > { %737 = vrot.lane.b32.xlu1 %v735_v34, %s3801_s28  ;;  %v1001_v34 = vld [vmem:[#allocation2 + $0x3] sm:$0x1] }
 0x2ba   : > { %v728_v35 = vpop.permute.xlu0 %727 }
 0x2bb   : > { %v730_v36 = vmul.f32 %v728_v35, %v720_v31 }
 0x32b   : > { %v738_v37 = vpop.permute.xlu1 %737 }
 0x32c   : > { %v740_v38 = vadd.f32 %v738_v37, %v730_v36 }
 0x32e   : > { %3405 = vtanh.f32 %v740_v38 }
 0x33b   : > { %v3406_v39 = vpop.eup %3405 }
 0x33c   : > { %743 = vrot.lane.b32.xlu1 %v3406_v39, %s3800_s20 }
 0x340   : > { %748 = vrot.lane.b32.xlu1 %v740_v38, %s3802_s25 }
 0x3ae   : > { %v744_v40 = vpop.permute.xlu1 %743 }
 0x3af   : > { %v746_v41 = vmul.f32 %v744_v40, %v720_v31 }
 0x3b1   : > { %753 = vrot.lane.b32.xlu0 %v746_v41, %s3801_s28 }
 0x3b2   : > { %v749_v42 = vpop.permute.xlu1 %748 }
 0x3b3   : > { %751 = vst.msk [vmem:[#allocation5] sm:$0x1] %vm629_vm2, %v749_v42 }
 0x3ba   : > { %v2920_v43 = vld [vmem:[#allocation5] ss:$0 sm:$0xff] }
 0x3bb   : > { %848 = vrot.lane.b32.xlu1 %v2920_v43, %s3801_s28 }
 0x423   : > { %v754_v44 = vpop.permute.xlu0 %753 }
 0x424   : > { %756 = vst.msk [vmem:[#allocation4] sm:$0x1] %vm629_vm2, %v754_v44  ;;  %757 = vst.msk [vmem:[#allocation3] sm:$0x1] %vm629_vm2, %v754_v44 }
 0x42b   : > { %v758_v45 = vld [vmem:[#allocation4] sm:$0x1] }
 0x42c   : > { %3107 = vmatmul.mubr.msk.f32.vlgmr.msra.gmra.mxu1 %vm554_vm3, %v758_v45 }
 0x42d   : > { %3121 = vmatpush3.msra.mxu1 %v4078_v8  ;;  %3128 = vmatprep.mubr.msk.f32.mxu1 %vm3799_vm0, %v3798_v0  ;;  %v849_v58 = vpop.permute.xlu1 %848 }
 0x42e   : > { %3122 = vmatprep.subr.mxu1 %v3798_v0 }
 0x42f   : > { %3123 = vmatpush3.msra.mxu1 %v4086_v9 }
 0x430   : > { %3124 = vmatprep.subr.mxu1 %v3798_v0 }
 0x431   : > { %3125 = vmatpush3.msra.mxu1 %v4089_v10 }
 0x432   : > { %3126 = vmatprep.subr.mxu1 %v3798_v0 }
 0x433   : > { %3127 = vmatpush3.msra.mxu1 %v4093_v11 }
 0x434   : > { %3142 = vmatprep.subr.mxu1 %v3798_v0 }
 0x4ec   : > { %v829_v47 = vpop.f32.mrf.mxu1 }
 0x4ed   : > { %v833_v48 = vadd.f32 %v829_v47, %v759_v46 }
 0x4ee   : > { %v3108_v49 = vpop.f32.mrf.mxu1 }
 0x4ef   : > { %v2919_v50 = vmul.f32 -1.442695, %v833_v48 }
 0x4f1   : > { %3407 = vpow2.f32 %v2919_v50 }
 0x4f2   : > { %3409 = vtanh.f32 %v833_v48 }
 0x4fe   : > { %v3408_v51 = vpop.eup %3407 }
 0x4ff   : > { %v838_v52 = vadd.f32 1.0, %v3408_v51  ;;  %v3410_v53 = vpop.eup %3409 }
 0x501   : > { %3411 = vrcp.f32 %v838_v52 }
 0x50e   : > { %v3412_v54 = vpop.eup %3411 }
 0x50f   : > { %v841_v55 = vsel %vm4124_vm6, %v3410_v53, %v3412_v54 }
 0x510   : > { %853 = vrot.lane.b32.xlu0 %v841_v55, %s3800_s20  ;;  %v851_v59 = vmul.f32 %v849_v58, %v841_v55 }
 0x582   : > { %v854_v56 = vpop.permute.xlu0 %853 }
 0x583   : > { %v856_v57 = vmul.f32 %v854_v56, %v841_v55 }
 0x585   : > { %858 = vrot.lane.b32.xlu0 %v856_v57, %s3801_s28  ;;  %v1122_v57 = vld [vmem:[#allocation2 + $0x4] sm:$0x1] }
 0x5f7   : > { %v859_v60 = vpop.permute.xlu0 %858 }
 0x5f8   : > { %v861_v61 = vadd.f32 %v859_v60, %v851_v59 }
 0x5fa   : > { %3413 = vtanh.f32 %v861_v61 }
 0x607   : > { %v3414_v62 = vpop.eup %3413 }
 0x608   : > { %864 = vrot.lane.b32.xlu1 %v3414_v62, %s3800_s20 }
 0x60c   : > { %869 = vrot.lane.b32.xlu1 %v861_v61, %s3802_s25 }
 0x67a   : > { %v865_v63 = vpop.permute.xlu1 %864 }
 0x67b   : > { %v867_v1 = vmul.f32 %v865_v63, %v841_v55 }
 0x67d   : > { %874 = vrot.lane.b32.xlu0 %v867_v1, %s3801_s28 }
 0x67e   : > { %v870_v2 = vpop.permute.xlu1 %869 }
 0x67f   : > { %872 = vst.msk [vmem:[#allocation5] sm:$0x1] %vm629_vm2, %v870_v2 }
 0x686   : > { %v2923_v3 = vld [vmem:[#allocation5] ss:$0 sm:$0xff] }
 0x687   : > { %969 = vrot.lane.b32.xlu1 %v2923_v3, %s3801_s28 }
 0x6ef   : > { %v875_v4 = vpop.permute.xlu0 %874 }
 0x6f0   : > { %877 = vst.msk [vmem:[#allocation4] sm:$0x1] %vm629_vm2, %v875_v4  ;;  %878 = vst.msk [vmem:[#allocation3 + $0x1] sm:$0x1] %vm629_vm2, %v875_v4 }
 0x6f7   : > { %v879_v5 = vld [vmem:[#allocation4] sm:$0x1] }
 0x6f8   : > { %3118 = vmatmul.mubr.msk.f32.vlgmr.msra.gmra.mxu0 %vm554_vm3, %v879_v5 }
 0x6f9   : > { %3132 = vmatpush3.msra.mxu0 %v4078_v8  ;;  %3139 = vmatprep.mubr.msk.f32.mxu0 %vm3799_vm0, %v3798_v0  ;;  %v970_v22 = vpop.permute.xlu1 %969 }
 0x6fa   : > { %3133 = vmatprep.subr.mxu0 %v3798_v0 }
 0x6fb   : > { %3134 = vmatpush3.msra.mxu0 %v4086_v9 }
 0x6fc   : > { %3135 = vmatprep.subr.mxu0 %v3798_v0 }
 0x6fd   : > { %3136 = vmatpush3.msra.mxu0 %v4089_v10 }
 0x6fe   : > { %3137 = vmatprep.subr.mxu0 %v3798_v0 }
 0x6ff   : > { %3138 = vmatpush3.msra.mxu0 %v4093_v11 }
 0x700   : > { %3153 = vmatprep.subr.mxu0 %v3798_v0 }
 0x7b8   : > { %v950_v7 = vpop.f32.mrf.mxu0 }
 0x7b9   : > { %v954_v12 = vadd.f32 %v950_v7, %v880_v6 }
 0x7ba   : > { %v3119_v13 = vpop.f32.mrf.mxu0 }
 0x7bb   : > { %v2922_v14 = vmul.f32 -1.442695, %v954_v12 }
 0x7bd   : > { %3415 = vpow2.f32 %v2922_v14 }
 0x7be   : > { %3417 = vtanh.f32 %v954_v12 }
 0x7ca   : > { %v3416_v15 = vpop.eup %3415 }
 0x7cb   : > { %v959_v16 = vadd.f32 1.0, %v3416_v15  ;;  %v3418_v17 = vpop.eup %3417 }
 0x7cd   : > { %3419 = vrcp.f32 %v959_v16 }
 0x7da   : > { %v3420_v18 = vpop.eup %3419 }
 0x7db   : > { %v962_v19 = vsel %vm4124_vm6, %v3418_v17, %v3420_v18 }
 0x7dc   : > { %974 = vrot.lane.b32.xlu0 %v962_v19, %s3800_s20  ;;  %v972_v23 = vmul.f32 %v970_v22, %v962_v19 }
 0x84e   : > { %v975_v20 = vpop.permute.xlu0 %974 }
 0x84f   : > { %v977_v21 = vmul.f32 %v975_v20, %v962_v19 }
 0x851   : > { %979 = vrot.lane.b32.xlu0 %v977_v21, %s3801_s28  ;;  %v1243_v21 = vld [vmem:[#allocation2 + $0x5] sm:$0x1] }
 0x8c3   : > { %v980_v24 = vpop.permute.xlu0 %979 }
 0x8c4   : > { %v982_v25 = vadd.f32 %v980_v24, %v972_v23 }
 0x8c6   : > { %3421 = vtanh.f32 %v982_v25 }
 0x8d3   : > { %v3422_v26 = vpop.eup %3421 }
 0x8d4   : > { %985 = vrot.lane.b32.xlu1 %v3422_v26, %s3800_s20 }
 0x8d8   : > { %990 = vrot.lane.b32.xlu1 %v982_v25, %s3802_s25 }
 0x946   : > { %v986_v27 = vpop.permute.xlu1 %985 }
 0x947   : > { %v988_v29 = vmul.f32 %v986_v27, %v962_v19 }
 0x949   : > { %995 = vrot.lane.b32.xlu0 %v988_v29, %s3801_s28 }
 0x94a   : > { %v991_v30 = vpop.permute.xlu1 %990 }
 0x94b   : > { %993 = vst.msk [vmem:[#allocation5] sm:$0x1] %vm629_vm2, %v991_v30 }
 0x952   : > { %v2926_v31 = vld [vmem:[#allocation5] ss:$0 sm:$0xff] }
 0x953   : > { %1090 = vrot.lane.b32.xlu1 %v2926_v31, %s3801_s28 }
 0x9bb   : > { %v996_v32 = vpop.permute.xlu0 %995 }
 0x9bc   : > { %998 = vst.msk [vmem:[#allocation4] sm:$0x1] %vm629_vm2, %v996_v32  ;;  %999 = vst.msk [vmem:[#allocation3 + $0x2] sm:$0x1] %vm629_vm2, %v996_v32 }
 0x9c3   : > { %v1000_v33 = vld [vmem:[#allocation4] sm:$0x1] }
 0x9c4   : > { %3129 = vmatmul.mubr.msk.f32.vlgmr.msra.gmra.mxu1 %vm554_vm3, %v1000_v33 }
 0x9c5   : > { %3143 = vmatpush3.msra.mxu1 %v4078_v8  ;;  %3150 = vmatprep.mubr.msk.f32.mxu1 %vm3799_vm0, %v3798_v0  ;;  %v1091_v46 = vpop.permute.xlu1 %1090 }
 0x9c6   : > { %3144 = vmatprep.subr.mxu1 %v3798_v0 }
 0x9c7   : > { %3145 = vmatpush3.msra.mxu1 %v4086_v9 }
 0x9c8   : > { %3146 = vmatprep.subr.mxu1 %v3798_v0 }
 0x9c9   : > { %3147 = vmatpush3.msra.mxu1 %v4089_v10 }
 0x9ca   : > { %3148 = vmatprep.subr.mxu1 %v3798_v0 }
 0x9cb   : > { %3149 = vmatpush3.msra.mxu1 %v4093_v11 }
 0x9cc   : > { %3164 = vmatprep.subr.mxu1 %v3798_v0 }
 0xa84   : > { %v1071_v35 = vpop.f32.mrf.mxu1 }
 0xa85   : > { %v1075_v36 = vadd.f32 %v1071_v35, %v1001_v34 }
 0xa86   : > { %v3130_v37 = vpop.f32.mrf.mxu1 }
 0xa87   : > { %v2925_v38 = vmul.f32 -1.442695, %v1075_v36 }
 0xa89   : > { %3423 = vpow2.f32 %v2925_v38 }
 0xa8a   : > { %3425 = vtanh.f32 %v1075_v36 }
 0xa96   : > { %v3424_v39 = vpop.eup %3423 }
 0xa97   : > { %v1080_v40 = vadd.f32 1.0, %v3424_v39  ;;  %v3426_v41 = vpop.eup %3425 }
 0xa99   : > { %3427 = vrcp.f32 %v1080_v40 }
 0xaa6   : > { %v3428_v42 = vpop.eup %3427 }
 0xaa7   : > { %v1083_v43 = vsel %vm4124_vm6, %v3426_v41, %v3428_v42  ;;  %v1364_v41 = vld [vmem:[#allocation2 + $0x6] sm:$0x1] }
 0xaa8   : > { %1095 = vrot.lane.b32.xlu0 %v1083_v43, %s3800_s20  ;;  %v1093_v47 = vmul.f32 %v1091_v46, %v1083_v43 }
 0xb1a   : > { %v1096_v44 = vpop.permute.xlu0 %1095 }
 0xb1b   : > { %v1098_v45 = vmul.f32 %v1096_v44, %v1083_v43 }
 0xb1d   : > { %1100 = vrot.lane.b32.xlu0 %v1098_v45, %s3801_s28 }
 0xb8f   : > { %v1101_v48 = vpop.permute.xlu0 %1100 }
 0xb90   : > { %v1103_v49 = vadd.f32 %v1101_v48, %v1093_v47 }
 0xb92   : > { %3429 = vtanh.f32 %v1103_v49 }
 0xb9f   : > { %v3430_v50 = vpop.eup %3429 }
 0xba0   : > { %1106 = vrot.lane.b32.xlu1 %v3430_v50, %s3800_s20 }
 0xba4   : > { %1111 = vrot.lane.b32.xlu1 %v1103_v49, %s3802_s25 }
 0xc12   : > { %v1107_v51 = vpop.permute.xlu1 %1106 }
 0xc13   : > { %v1109_v52 = vmul.f32 %v1107_v51, %v1083_v43 }
 0xc15   : > { %1116 = vrot.lane.b32.xlu0 %v1109_v52, %s3801_s28 }
 0xc16   : > { %v1112_v53 = vpop.permute.xlu1 %1111 }
 0xc17   : > { %1114 = vst.msk [vmem:[#allocation5] sm:$0x1] %vm629_vm2, %v1112_v53 }
 0xc1e   : > { %v2929_v54 = vld [vmem:[#allocation5] ss:$0 sm:$0xff] }
 0xc1f   : > { %1211 = vrot.lane.b32.xlu1 %v2929_v54, %s3801_s28 }
 0xc87   : > { %v1117_v55 = vpop.permute.xlu0 %1116 }
 0xc88   : > { %1119 = vst.msk [vmem:[#allocation4] sm:$0x1] %vm629_vm2, %v1117_v55  ;;  %1120 = vst.msk [vmem:[#allocation3 + $0x3] sm:$0x1] %vm629_vm2, %v1117_v55 }
 0xc8f   : > { %v1121_v56 = vld [vmem:[#allocation4] sm:$0x1] }
 0xc90   : > { %3140 = vmatmul.mubr.msk.f32.vlgmr.msra.gmra.mxu0 %vm554_vm3, %v1121_v56 }
 0xc91   : > { %3154 = vmatpush3.msra.mxu0 %v4078_v8  ;;  %3161 = vmatprep.mubr.msk.f32.mxu0 %vm3799_vm0, %v3798_v0  ;;  %v1212_v6 = vpop.permute.xlu1 %1211 }
 0xc92   : > { %3155 = vmatprep.subr.mxu0 %v3798_v0 }
 0xc93   : > { %3156 = vmatpush3.msra.mxu0 %v4086_v9 }
 0xc94   : > { %3157 = vmatprep.subr.mxu0 %v3798_v0 }
 0xc95   : > { %3158 = vmatpush3.msra.mxu0 %v4089_v10 }
 0xc96   : > { %3159 = vmatprep.subr.mxu0 %v3798_v0 }
 0xc97   : > { %3160 = vmatpush3.msra.mxu0 %v4093_v11 }
 0xc98   : > { %3175 = vmatprep.subr.mxu0 %v3798_v0 }
 0xd50   : > { %v1192_v58 = vpop.f32.mrf.mxu0 }
 0xd51   : > { %v1196_v59 = vadd.f32 %v1192_v58, %v1122_v57 }
 0xd52   : > { %v3141_v60 = vpop.f32.mrf.mxu0 }
 0xd53   : > { %v2928_v61 = vmul.f32 -1.442695, %v1196_v59 }
 0xd55   : > { %3431 = vpow2.f32 %v2928_v61 }
 0xd56   : > { %3433 = vtanh.f32 %v1196_v59 }
 0xd62   : > { %v3432_v62 = vpop.eup %3431 }
 0xd63   : > { %v1201_v63 = vadd.f32 1.0, %v3432_v62  ;;  %v3434_v1 = vpop.eup %3433 }
 0xd65   : > { %3435 = vrcp.f32 %v1201_v63 }
 0xd72   : > { %v3436_v2 = vpop.eup %3435 }
 0xd73   : > { %v1204_v3 = vsel %vm4124_vm6, %v3434_v1, %v3436_v2  ;;  %v1485_v1 = vld [vmem:[#allocation2 + $0x7] sm:$0x1] }
 0xd74   : > { %1216 = vrot.lane.b32.xlu0 %v1204_v3, %s3800_s20  ;;  %v1214_v7 = vmul.f32 %v1212_v6, %v1204_v3 }
 0xde6   : > { %v1217_v4 = vpop.permute.xlu0 %1216 }
 0xde7   : > { %v1219_v5 = vmul.f32 %v1217_v4, %v1204_v3 }
 0xde9   : > { %1221 = vrot.lane.b32.xlu0 %v1219_v5, %s3801_s28 }
 0xe5b   : > { %v1222_v12 = vpop.permute.xlu0 %1221 }
 0xe5c   : > { %v1224_v13 = vadd.f32 %v1222_v12, %v1214_v7 }
 0xe5e   : > { %3437 = vtanh.f32 %v1224_v13 }
 0xe6b   : > { %v3438_v14 = vpop.eup %3437 }
 0xe6c   : > { %1227 = vrot.lane.b32.xlu1 %v3438_v14, %s3800_s20 }
 0xe70   : > { %1232 = vrot.lane.b32.xlu1 %v1224_v13, %s3802_s25 }
 0xede   : > { %v1228_v15 = vpop.permute.xlu1 %1227 }
 0xedf   : > { %v1230_v16 = vmul.f32 %v1228_v15, %v1204_v3 }
 0xee1   : > { %1237 = vrot.lane.b32.xlu0 %v1230_v16, %s3801_s28 }
 0xee2   : > { %v1233_v17 = vpop.permute.xlu1 %1232 }
 0xee3   : > { %1235 = vst.msk [vmem:[#allocation5] sm:$0x1] %vm629_vm2, %v1233_v17 }
 0xeea   : > { %v2932_v18 = vld [vmem:[#allocation5] ss:$0 sm:$0xff] }
 0xeeb   : > { %1332 = vrot.lane.b32.xlu1 %v2932_v18, %s3801_s28 }
 0xf53   : > { %v1238_v19 = vpop.permute.xlu0 %1237 }
 0xf54   : > { %1240 = vst.msk [vmem:[#allocation4] sm:$0x1] %vm629_vm2, %v1238_v19  ;;  %1241 = vst.msk [vmem:[#allocation3 + $0x4] sm:$0x1] %vm629_vm2, %v1238_v19 }
 0xf5b   : > { %v1242_v20 = vld [vmem:[#allocation4] sm:$0x1] }
 0xf5c   : > { %3151 = vmatmul.mubr.msk.f32.vlgmr.msra.gmra.mxu1 %vm554_vm3, %v1242_v20 }
 0xf5d   : > { %3165 = vmatpush3.msra.mxu1 %v4078_v8  ;;  %3172 = vmatprep.mubr.msk.f32.mxu1 %vm3799_vm0, %v3798_v0  ;;  %v1333_v30 = vpop.permute.xlu1 %1332 }
 0xf5e   : > { %3166 = vmatprep.subr.mxu1 %v3798_v0 }
 0xf5f   : > { %3167 = vmatpush3.msra.mxu1 %v4086_v9 }
 0xf60   : > { %3168 = vmatprep.subr.mxu1 %v3798_v0 }
 0xf61   : > { %3169 = vmatpush3.msra.mxu1 %v4089_v10 }
 0xf62   : > { %3170 = vmatprep.subr.mxu1 %v3798_v0 }
 0xf63   : > { %3171 = vmatpush3.msra.mxu1 %v4093_v11 }
 0xf64   : > { %3186 = vmatprep.subr.mxu1 %v3798_v0 }
0x101c   : > { %v1313_v22 = vpop.f32.mrf.mxu1 }
0x101d   : > { %v1317_v8 = vadd.f32 %v1313_v22, %v1243_v21  ;;  %v1609_v22 = vld [vmem:[#allocation14 + $0x18] sm:$0xff] }
0x101e   : > { %v3152_v23 = vpop.f32.mrf.mxu1 }
0x101f   : > { %v2931_v24 = vmul.f32 -1.442695, %v1317_v8  ;;  %v1607_v23 = vld [vmem:[#allocation14 + $0x8] sm:$0xff] }
0x1021   : > { %3439 = vpow2.f32 %v2931_v24  ;;  %v1606_v24 = vld [vmem:[#allocation14] sm:$0xff] }
0x1022   : > { %3441 = vtanh.f32 %v1317_v8  ;;  %v1608_v8 = vld [vmem:[#allocation14 + $0x10] sm:$0xff] }
0x102e   : > { %v3440_v25 = vpop.eup %3439 }
0x102f   : > { %v1322_v26 = vadd.f32 1.0, %v3440_v25  ;;  %v3442_v9 = vpop.eup %3441  ;;  %v4276_v25 = vld [vmem:[#allocation15 + $0x18] sm:$0xff] }
0x1031   : > { %3443 = vrcp.f32 %v1322_v26  ;;  %v4278_v26 = vld [vmem:[#allocation15 + $0x10] sm:$0xff] }
0x103e   : > { %v3444_v27 = vpop.eup %3443 }
0x103f   : > { %v1325_v10 = vsel %vm4124_vm6, %v3442_v9, %v3444_v27  ;;  %v4283_v27 = vld [vmem:[#allocation15 + $0x8] sm:$0xff] }
0x1040   : > { %1337 = vrot.lane.b32.xlu0 %v1325_v10, %s3800_s20  ;;  %v1335_v31 = vmul.f32 %v1333_v30, %v1325_v10 }
0x10b2   : > { %v1338_v11 = vpop.permute.xlu0 %1337 }
0x10b3   : > { %v1340_v29 = vmul.f32 %v1338_v11, %v1325_v10  ;;  %v4287_v11 = vld [vmem:[#allocation15] sm:$0xff] }
0x10b5   : > { %1342 = vrot.lane.b32.xlu0 %v1340_v29, %s3801_s28 }
0x1127   : > { %v1343_v32 = vpop.permute.xlu0 %1342 }
0x1128   : > { %v1345_v33 = vadd.f32 %v1343_v32, %v1335_v31 }
0x112a   : > { %3445 = vtanh.f32 %v1345_v33 }
0x1137   : > { %v3446_v34 = vpop.eup %3445 }
0x1138   : > { %1348 = vrot.lane.b32.xlu1 %v3446_v34, %s3800_s20  ;;  %v2939_v34 = vld [vmem:[%s4529_s7] ss:$0 sm:$0xff] }
0x113c   : > { %1353 = vrot.lane.b32.xlu1 %v1345_v33, %s3802_s25 }
0x11aa   : > { %v1349_v35 = vpop.permute.xlu1 %1348 }
0x11ab   : > { %v1351_v36 = vmul.f32 %v1349_v35, %v1325_v10 }
0x11ad   : > { %1358 = vrot.lane.b32.xlu0 %v1351_v36, %s3801_s28 }
0x11ae   : > { %v1354_v37 = vpop.permute.xlu1 %1353 }
0x11af   : > { %1356 = vst.msk [vmem:[#allocation5] sm:$0x1] %vm629_vm2, %v1354_v37 }
0x11b6   : > { %v2935_v38 = vld [vmem:[#allocation5] ss:$0 sm:$0xff] }
0x11b7   : > { %1453 = vrot.lane.b32.xlu1 %v2935_v38, %s3801_s28 }
0x121f   : > { %v1359_v39 = vpop.permute.xlu0 %1358 }
0x1220   : > { %1361 = vst.msk [vmem:[#allocation4] sm:$0x1] %vm629_vm2, %v1359_v39  ;;  %1362 = vst.msk [vmem:[#allocation3 + $0x5] sm:$0x1] %vm629_vm2, %v1359_v39 }
0x1227   : > { %v1363_v40 = vld [vmem:[#allocation4] sm:$0x1] }
0x1228   : > { %3162 = vmatmul.mubr.msk.f32.vlgmr.msra.gmra.mxu0 %vm554_vm3, %v1363_v40 }
0x1229   : > { %3183 = vmatprep.mubr.msk.f32.mxu0 %vm3799_vm0, %v3798_v0  ;;  %v1454_v53 = vpop.permute.xlu1 %1453  ;;  %3176 = vmatpush3.msra.mxu0 %v1609_v22 }
0x122a   : > { %3177 = vmatprep.subr.mxu0 %v3798_v0 }
0x122b   : > { %3178 = vmatpush3.msra.mxu0 %v1608_v8 }
0x122c   : > { %3179 = vmatprep.subr.mxu0 %v3798_v0 }
0x122d   : > { %3180 = vmatpush3.msra.mxu0 %v1607_v23 }
0x122e   : > { %3181 = vmatprep.subr.mxu0 %v3798_v0 }
0x122f   : > { %3182 = vmatpush3.msra.mxu0 %v1606_v24 }
0x1230   : > { %3197 = vmatprep.subr.mxu0 %v3798_v0 }
0x12e8   : > { %v1434_v42 = vpop.f32.mrf.mxu0 }
0x12e9   : > { %v1438_v43 = vadd.f32 %v1434_v42, %v1364_v41 }
0x12ea   : > { %v3163_v44 = vpop.f32.mrf.mxu0 }
0x12eb   : > { %v2934_v45 = vmul.f32 -1.442695, %v1438_v43 }
0x12ed   : > { %3447 = vpow2.f32 %v2934_v45 }
0x12ee   : > { %3449 = vtanh.f32 %v1438_v43 }
0x12fa   : > { %v3448_v46 = vpop.eup %3447 }
0x12fb   : > { %v1443_v47 = vadd.f32 1.0, %v3448_v46  ;;  %v3450_v48 = vpop.eup %3449 }
0x12fd   : > { %3451 = vrcp.f32 %v1443_v47 }
0x130a   : > { %v3452_v49 = vpop.eup %3451 }
0x130b   : > { %v1446_v50 = vsel %vm4124_vm6, %v3450_v48, %v3452_v49 }
0x130c   : > { %1458 = vrot.lane.b32.xlu0 %v1446_v50, %s3800_s20  ;;  %v1456_v54 = vmul.f32 %v1454_v53, %v1446_v50 }
0x137e   : > { %v1459_v51 = vpop.permute.xlu0 %1458 }
0x137f   : > { %v1461_v52 = vmul.f32 %v1459_v51, %v1446_v50 }
0x1381   : > { %1463 = vrot.lane.b32.xlu0 %v1461_v52, %s3801_s28 }
0x13f3   : > { %v1464_v55 = vpop.permute.xlu0 %1463 }
0x13f4   : > { %v1466_v56 = vadd.f32 %v1464_v55, %v1456_v54 }
0x13f6   : > { %3453 = vtanh.f32 %v1466_v56 }
0x1403   : > { %v3454_v57 = vpop.eup %3453 }
0x1404   : > { %1469 = vrot.lane.b32.xlu1 %v3454_v57, %s3800_s20 }
0x1408   : > { %1474 = vrot.lane.b32.xlu1 %v1466_v56, %s3802_s25 }
0x1476   : > { %v1470_v58 = vpop.permute.xlu1 %1469 }
0x1477   : > { %v1472_v59 = vmul.f32 %v1470_v58, %v1446_v50 }
0x1479   : > { %1479 = vrot.lane.b32.xlu0 %v1472_v59, %s3801_s28 }
0x147a   : > { %v1475_v60 = vpop.permute.xlu1 %1474 }
0x147b   : > { %1477 = vst.msk [vmem:[#allocation5] sm:$0x1] %vm629_vm2, %v1475_v60 }
0x1482   : > { %v2938_v61 = vld [vmem:[#allocation5] ss:$0 sm:$0xff] }
0x1483   : > { %1574 = vrot.lane.b32.xlu1 %v2938_v61, %s3801_s28 }
0x14eb   : > { %v1480_v62 = vpop.permute.xlu0 %1479 }
0x14ec   : > { %1482 = vst.msk [vmem:[#allocation4] sm:$0x1] %vm629_vm2, %v1480_v62  ;;  %1483 = vst.msk [vmem:[#allocation3 + $0x6] sm:$0x1] %vm629_vm2, %v1480_v62 }
0x14f3   : > { %v1484_v63 = vld [vmem:[#allocation4] sm:$0x1] }
0x14f4   : > { %3173 = vmatmul.mubr.msk.f32.vlgmr.msra.gmra.mxu1 %vm554_vm3, %v1484_v63 }
0x14f5   : > { %3194 = vmatprep.mubr.msk.f32.mxu1 %vm3799_vm0, %v3798_v0  ;;  %v1575_v17 = vpop.permute.xlu1 %1574  ;;  %3187 = vmatpush3.msra.mxu1 %v4276_v25 }
0x14f6   : > { %3188 = vmatprep.subr.mxu1 %v3798_v0 }
0x14f7   : > { %3189 = vmatpush3.msra.mxu1 %v4278_v26 }
0x14f8   : > { %3190 = vmatprep.subr.mxu1 %v3798_v0 }
0x14f9   : > { %3191 = vmatpush3.msra.mxu1 %v4283_v27 }
0x14fa   : > { %3192 = vmatprep.subr.mxu1 %v3798_v0 }
0x14fb   : > { %3193 = vmatpush3.msra.mxu1 %v4287_v11 }
0x14fc   : > { %3208 = vmatprep.subr.mxu1 %v3798_v0 }
0x15b4   : > { %v1555_v2 = vpop.f32.mrf.mxu1 }
0x15b5   : > { %v1559_v3 = vadd.f32 %v1555_v2, %v1485_v1 }
0x15b6   : > { %v3174_v4 = vpop.f32.mrf.mxu1 }
0x15b7   : > { %v2937_v5 = vmul.f32 -1.442695, %v1559_v3 }
0x15b9   : > { %3455 = vpow2.f32 %v2937_v5 }
0x15ba   : > { %3457 = vtanh.f32 %v1559_v3 }
0x15c6   : > { %v3456_v6 = vpop.eup %3455 }
0x15c7   : > { %v1564_v7 = vadd.f32 1.0, %v3456_v6  ;;  %v3458_v12 = vpop.eup %3457 }
0x15c9   : > { %3459 = vrcp.f32 %v1564_v7 }
0x15d6   : > { %v3460_v13 = vpop.eup %3459 }
0x15d7   : > { %v1567_v14 = vsel %vm4124_vm6, %v3458_v12, %v3460_v13 }
0x15d8   : > { %1579 = vrot.lane.b32.xlu0 %v1567_v14, %s3800_s20  ;;  %v1577_v18 = vmul.f32 %v1575_v17, %v1567_v14 }
0x164a   : > { %v1580_v15 = vpop.permute.xlu0 %1579 }
0x164b   : > { %v1582_v16 = vmul.f32 %v1580_v15, %v1567_v14 }
0x164d   : > { %1584 = vrot.lane.b32.xlu0 %v1582_v16, %s3801_s28 }
0x16bf   : > { %v1585_v19 = vpop.permute.xlu0 %1584 }
0x16c0   : > { %v1587_v20 = vadd.f32 %v1585_v19, %v1577_v18 }
0x16c2   : > { %3461 = vtanh.f32 %v1587_v20 }
0x16cf   : > { %v3462_v21 = vpop.eup %3461 }
0x16d0   : > { %1590 = vrot.lane.b32.xlu1 %v3462_v21, %s3800_s20 }
0x16d4   : > { %1595 = vrot.lane.b32.xlu1 %v1587_v20, %s3802_s25 }
0x1742   : > { %v1591_v9 = vpop.permute.xlu1 %1590 }
0x1743   : > { %v1593_v10 = vmul.f32 %v1591_v9, %v1567_v14 }
0x1745   : > { %1600 = vrot.lane.b32.xlu0 %v1593_v10, %s3801_s28 }
0x1746   : > { %v1596_v29 = vpop.permute.xlu1 %1595 }
0x1747   : > { %1598 = vst.msk [vmem:[#allocation5] sm:$0x1] %vm629_vm2, %v1596_v29 }
0x1748   : > { %1696 = vst.msk [vmem:[#allocation5] sm:$0x1] %vm629_vm2, %v3798_v0 }
0x174f   : > { %v2943_v30 = vld [vmem:[#allocation5] ss:$0 sm:$0xff] }
0x1750   : > { %1787 = vrot.lane.b32.xlu1 %v2943_v30, %s3801_s28 }
0x17b7   : > { %v1601_v31 = vpop.permute.xlu0 %1600 }
0x17b8   : > { %1603 = vst.msk [vmem:[#allocation4] sm:$0x1] %vm629_vm2, %v1601_v31  ;;  %1604 = vst.msk [vmem:[#allocation3 + $0x7] sm:$0x1] %vm629_vm2, %v1601_v31 }
0x17b9   : > { %1695 = vst.msk [vmem:[#allocation4] sm:$0x1] %vm629_vm2, %v3798_v0 }
0x17bf   : > { %v1605_v32 = vld [vmem:[#allocation3] sm:$0xff] }
0x17c0   : > { %3184 = vmatmul.mubr.msk.f32.vlgmr.msra.gmra.mxu0 %vm554_vm3, %v1605_v32  ;;  %v1697_v33 = vld [vmem:[#allocation4] sm:$0x1] }
0x17c1   : > { %3195 = vmatmul.mubr.msk.f32.vlgmr.msra.gmra.mxu1 %vm554_vm3, %v1697_v33  ;;  %3198 = vmatpush3.msra.mxu0 %v4276_v25 }
0x17c2   : > { %3199 = vmatprep.subr.mxu0 %v3798_v0  ;;  %3205 = vmatprep.mubr.msk.f32.mxu0 %vm3799_vm0, %v3798_v0  ;;  %v1788_v50 = vpop.permute.xlu1 %1787 }
0x17c3   : > { %3200 = vmatpush3.msra.mxu0 %v4278_v26  ;;  %3209 = vmatpush3.msra.mxu1 %v4276_v25 }
0x17c4   : > { %3201 = vmatprep.subr.mxu0 %v3798_v0  ;;  %3210 = vmatprep.subr.mxu1 %v3798_v0 }
0x17c5   : > { %3202 = vmatpush3.msra.mxu0 %v4283_v27  ;;  %3211 = vmatpush3.msra.mxu1 %v4278_v26 }
0x17c6   : > { %3203 = vmatprep.subr.mxu0 %v3798_v0  ;;  %3212 = vmatprep.subr.mxu1 %v3798_v0 }
0x17c7   : > { %3204 = vmatpush3.msra.mxu0 %v4287_v11  ;;  %3213 = vmatpush3.msra.mxu1 %v4283_v27 }
0x17c8   : > { %3214 = vmatprep.subr.mxu1 %v3798_v0  ;;  %3216 = vmatprep.mubr.msk.f32.mxu1 %vm3799_vm0, %v3798_v0 }
0x17c9   : > { %3215 = vmatpush3.msra.mxu1 %v4287_v11  ;;  %3219 = vmatprep.subr.mxu0 %v3798_v0 }
0x17ca   : > { %3230 = vmatprep.subr.mxu1 %v3798_v0 }
0x1880   : > { %v1690_v35 = vpop.f32.mrf.mxu0 }
0x1881   : > { %v1691_v36 = vadd.f32 %v2939_v34, %v1690_v35  ;;  %v1768_v37 = vpop.f32.mrf.mxu1 }
0x1882   : > { %v3185_v38 = vpop.f32.mrf.mxu0 }
0x1883   : > { %1694 = vst [vmem:[#allocation2] sm:$0xff] %v1691_v36  ;;  %v3196_v39 = vpop.f32.mrf.mxu1 }
0x188a   : > { %v1698_v40 = vld [vmem:[#allocation2] sm:$0x1]  ;;  %v1819_v61 = vld [vmem:[#allocation2 + $0x1] sm:$0x1]  ;;  %v1940_v24 = vld [vmem:[#allocation2 + $0x2] sm:$0x1] }
0x188b   : > { %v1772_v41 = vadd.f32 %v1768_v37, %v1698_v40 }
0x188d   : > { %v2942_v42 = vmul.f32 -1.442695, %v1772_v41 }
0x188f   : > { %3463 = vpow2.f32 %v2942_v42 }
0x1890   : > { %3465 = vtanh.f32 %v1772_v41 }
0x189c   : > { %v3464_v43 = vpop.eup %3463 }
0x189d   : > { %v1777_v44 = vadd.f32 1.0, %v3464_v43  ;;  %v3466_v45 = vpop.eup %3465 }
0x189f   : > { %3467 = vrcp.f32 %v1777_v44 }
0x18ac   : > { %v3468_v46 = vpop.eup %3467 }
0x18ad   : > { %v1780_v47 = vsel %vm4124_vm6, %v3466_v45, %v3468_v46 }
0x18ae   : > { %1792 = vrot.lane.b32.xlu0 %v1780_v47, %s3800_s20  ;;  %v1790_v51 = vmul.f32 %v1788_v50, %v1780_v47 }
0x1920   : > { %v1793_v48 = vpop.permute.xlu0 %1792 }
0x1921   : > { %v1795_v49 = vmul.f32 %v1793_v48, %v1780_v47 }
0x1923   : > { %1797 = vrot.lane.b32.xlu0 %v1795_v49, %s3801_s28  ;;  %v2061_v49 = vld [vmem:[#allocation2 + $0x3] sm:$0x1] }
0x1995   : > { %v1798_v52 = vpop.permute.xlu0 %1797 }
0x1996   : > { %v1800_v53 = vadd.f32 %v1798_v52, %v1790_v51 }
0x1998   : > { %3469 = vtanh.f32 %v1800_v53 }
0x19a5   : > { %v3470_v54 = vpop.eup %3469 }
0x19a6   : > { %1803 = vrot.lane.b32.xlu1 %v3470_v54, %s3800_s20 }
0x19aa   : > { %1808 = vrot.lane.b32.xlu1 %v1800_v53, %s3802_s25 }
0x1a18   : > { %v1804_v55 = vpop.permute.xlu1 %1803 }
0x1a19   : > { %v1806_v56 = vmul.f32 %v1804_v55, %v1780_v47 }
0x1a1b   : > { %1813 = vrot.lane.b32.xlu0 %v1806_v56, %s3801_s28 }
0x1a1c   : > { %v1809_v57 = vpop.permute.xlu1 %1808 }
0x1a1d   : > { %1811 = vst.msk [vmem:[#allocation5] sm:$0x1] %vm629_vm2, %v1809_v57 }
0x1a24   : > { %v2946_v58 = vld [vmem:[#allocation5] ss:$0 sm:$0xff] }
0x1a25   : > { %1908 = vrot.lane.b32.xlu1 %v2946_v58, %s3801_s28 }
0x1a8d   : > { %v1814_v59 = vpop.permute.xlu0 %1813 }
0x1a8e   : > { %1816 = vst.msk [vmem:[#allocation4] sm:$0x1] %vm629_vm2, %v1814_v59  ;;  %1817 = vst.msk [vmem:[#allocation3] sm:$0x1] %vm629_vm2, %v1814_v59 }
0x1a95   : > { %v1818_v60 = vld [vmem:[#allocation4] sm:$0x1] }
0x1a96   : > { %3206 = vmatmul.mubr.msk.f32.vlgmr.msra.gmra.mxu0 %vm554_vm3, %v1818_v60 }
0x1a97   : > { %3220 = vmatpush3.msra.mxu0 %v4276_v25  ;;  %3227 = vmatprep.mubr.msk.f32.mxu0 %vm3799_vm0, %v3798_v0  ;;  %v1909_v14 = vpop.permute.xlu1 %1908 }
0x1a98   : > { %3221 = vmatprep.subr.mxu0 %v3798_v0 }
0x1a99   : > { %3222 = vmatpush3.msra.mxu0 %v4278_v26 }
0x1a9a   : > { %3223 = vmatprep.subr.mxu0 %v3798_v0 }
0x1a9b   : > { %3224 = vmatpush3.msra.mxu0 %v4283_v27 }
0x1a9c   : > { %3225 = vmatprep.subr.mxu0 %v3798_v0 }
0x1a9d   : > { %3226 = vmatpush3.msra.mxu0 %v4287_v11 }
0x1a9e   : > { %3241 = vmatprep.subr.mxu0 %v3798_v0 }
0x1b56   : > { %v1889_v62 = vpop.f32.mrf.mxu0 }
0x1b57   : > { %v1893_v63 = vadd.f32 %v1889_v62, %v1819_v61 }
0x1b58   : > { %v3207_v1 = vpop.f32.mrf.mxu0 }
0x1b59   : > { %v2945_v2 = vmul.f32 -1.442695, %v1893_v63 }
0x1b5b   : > { %3471 = vpow2.f32 %v2945_v2 }
0x1b5c   : > { %3473 = vtanh.f32 %v1893_v63 }
0x1b68   : > { %v3472_v3 = vpop.eup %3471 }
0x1b69   : > { %v1898_v4 = vadd.f32 1.0, %v3472_v3  ;;  %v3474_v5 = vpop.eup %3473 }
0x1b6b   : > { %3475 = vrcp.f32 %v1898_v4 }
0x1b78   : > { %v3476_v6 = vpop.eup %3475 }
0x1b79   : > { %v1901_v7 = vsel %vm4124_vm6, %v3474_v5, %v3476_v6 }
0x1b7a   : > { %1913 = vrot.lane.b32.xlu0 %v1901_v7, %s3800_s20  ;;  %v1911_v15 = vmul.f32 %v1909_v14, %v1901_v7 }
0x1bec   : > { %v1914_v12 = vpop.permute.xlu0 %1913 }
0x1bed   : > { %v1916_v13 = vmul.f32 %v1914_v12, %v1901_v7 }
0x1bef   : > { %1918 = vrot.lane.b32.xlu0 %v1916_v13, %s3801_s28  ;;  %v2182_v13 = vld [vmem:[#allocation2 + $0x4] sm:$0x1] }
0x1c61   : > { %v1919_v16 = vpop.permute.xlu0 %1918 }
0x1c62   : > { %v1921_v17 = vadd.f32 %v1919_v16, %v1911_v15 }
0x1c64   : > { %3477 = vtanh.f32 %v1921_v17 }
0x1c71   : > { %v3478_v18 = vpop.eup %3477 }
0x1c72   : > { %1924 = vrot.lane.b32.xlu1 %v3478_v18, %s3800_s20 }
0x1c76   : > { %1929 = vrot.lane.b32.xlu1 %v1921_v17, %s3802_s25 }
0x1ce4   : > { %v1925_v19 = vpop.permute.xlu1 %1924 }
0x1ce5   : > { %v1927_v20 = vmul.f32 %v1925_v19, %v1901_v7 }
0x1ce7   : > { %1934 = vrot.lane.b32.xlu0 %v1927_v20, %s3801_s28 }
0x1ce8   : > { %v1930_v21 = vpop.permute.xlu1 %1929 }
0x1ce9   : > { %1932 = vst.msk [vmem:[#allocation5] sm:$0x1] %vm629_vm2, %v1930_v21 }
0x1cf0   : > { %v2949_v22 = vld [vmem:[#allocation5] ss:$0 sm:$0xff] }
0x1cf1   : > { %2029 = vrot.lane.b32.xlu1 %v2949_v22, %s3801_s28 }
0x1d59   : > { %v1935_v8 = vpop.permute.xlu0 %1934 }
0x1d5a   : > { %1938 = vst.msk [vmem:[#allocation3 + $0x1] sm:$0x1] %vm629_vm2, %v1935_v8  ;;  %1937 = vst.msk [vmem:[#allocation4] sm:$0x1] %vm629_vm2, %v1935_v8 }
0x1d61   : > { %v1939_v23 = vld [vmem:[#allocation4] sm:$0x1] }
0x1d62   : > { %3217 = vmatmul.mubr.msk.f32.vlgmr.msra.gmra.mxu1 %vm554_vm3, %v1939_v23 }
0x1d63   : > { %3231 = vmatpush3.msra.mxu1 %v4276_v25  ;;  %3238 = vmatprep.mubr.msk.f32.mxu1 %vm3799_vm0, %v3798_v0  ;;  %v2030_v38 = vpop.permute.xlu1 %2029 }
0x1d64   : > { %3232 = vmatprep.subr.mxu1 %v3798_v0 }
0x1d65   : > { %3233 = vmatpush3.msra.mxu1 %v4278_v26 }
0x1d66   : > { %3234 = vmatprep.subr.mxu1 %v3798_v0 }
0x1d67   : > { %3235 = vmatpush3.msra.mxu1 %v4283_v27 }
0x1d68   : > { %3236 = vmatprep.subr.mxu1 %v3798_v0 }
0x1d69   : > { %3237 = vmatpush3.msra.mxu1 %v4287_v11 }
0x1d6a   : > { %3252 = vmatprep.subr.mxu1 %v3798_v0 }
0x1e22   : > { %v2010_v9 = vpop.f32.mrf.mxu1 }
0x1e23   : > { %v2014_v10 = vadd.f32 %v2010_v9, %v1940_v24 }
0x1e24   : > { %v3218_v29 = vpop.f32.mrf.mxu1 }
0x1e25   : > { %v2948_v30 = vmul.f32 -1.442695, %v2014_v10 }
0x1e27   : > { %3479 = vpow2.f32 %v2948_v30 }
0x1e28   : > { %3481 = vtanh.f32 %v2014_v10 }
0x1e34   : > { %v3480_v31 = vpop.eup %3479 }
0x1e35   : > { %v2019_v32 = vadd.f32 1.0, %v3480_v31  ;;  %v3482_v33 = vpop.eup %3481 }
0x1e37   : > { %3483 = vrcp.f32 %v2019_v32 }
0x1e44   : > { %v3484_v34 = vpop.eup %3483 }
0x1e45   : > { %v2022_v35 = vsel %vm4124_vm6, %v3482_v33, %v3484_v34 }
0x1e46   : > { %2034 = vrot.lane.b32.xlu0 %v2022_v35, %s3800_s20  ;;  %v2032_v39 = vmul.f32 %v2030_v38, %v2022_v35 }
0x1eb8   : > { %v2035_v36 = vpop.permute.xlu0 %2034 }
0x1eb9   : > { %v2037_v37 = vmul.f32 %v2035_v36, %v2022_v35 }
0x1ebb   : > { %2039 = vrot.lane.b32.xlu0 %v2037_v37, %s3801_s28  ;;  %v2303_v37 = vld [vmem:[#allocation2 + $0x5] sm:$0x1] }
0x1f2d   : > { %v2040_v40 = vpop.permute.xlu0 %2039 }
0x1f2e   : > { %v2042_v41 = vadd.f32 %v2040_v40, %v2032_v39 }
0x1f30   : > { %3485 = vtanh.f32 %v2042_v41 }
0x1f3d   : > { %v3486_v42 = vpop.eup %3485 }
0x1f3e   : > { %2045 = vrot.lane.b32.xlu1 %v3486_v42, %s3800_s20 }
0x1f42   : > { %2050 = vrot.lane.b32.xlu1 %v2042_v41, %s3802_s25 }
0x1fb0   : > { %v2046_v43 = vpop.permute.xlu1 %2045 }
0x1fb1   : > { %v2048_v44 = vmul.f32 %v2046_v43, %v2022_v35 }
0x1fb3   : > { %2055 = vrot.lane.b32.xlu0 %v2048_v44, %s3801_s28 }
0x1fb4   : > { %v2051_v45 = vpop.permute.xlu1 %2050 }
0x1fb5   : > { %2053 = vst.msk [vmem:[#allocation5] sm:$0x1] %vm629_vm2, %v2051_v45 }
0x1fbc   : > { %v2952_v46 = vld [vmem:[#allocation5] ss:$0 sm:$0xff] }
0x1fbd   : > { %2150 = vrot.lane.b32.xlu1 %v2952_v46, %s3801_s28 }
0x2025   : > { %v2056_v47 = vpop.permute.xlu0 %2055 }
0x2026   : > { %2059 = vst.msk [vmem:[#allocation3 + $0x2] sm:$0x1] %vm629_vm2, %v2056_v47  ;;  %2058 = vst.msk [vmem:[#allocation4] sm:$0x1] %vm629_vm2, %v2056_v47 }
0x202d   : > { %v2060_v48 = vld [vmem:[#allocation4] sm:$0x1] }
0x202e   : > { %3228 = vmatmul.mubr.msk.f32.vlgmr.msra.gmra.mxu0 %vm554_vm3, %v2060_v48 }
0x202f   : > { %3242 = vmatpush3.msra.mxu0 %v4276_v25  ;;  %3249 = vmatprep.mubr.msk.f32.mxu0 %vm3799_vm0, %v3798_v0  ;;  %v2151_v61 = vpop.permute.xlu1 %2150 }
0x2030   : > { %3243 = vmatprep.subr.mxu0 %v3798_v0 }
0x2031   : > { %3244 = vmatpush3.msra.mxu0 %v4278_v26 }
0x2032   : > { %3245 = vmatprep.subr.mxu0 %v3798_v0 }
0x2033   : > { %3246 = vmatpush3.msra.mxu0 %v4283_v27 }
0x2034   : > { %3247 = vmatprep.subr.mxu0 %v3798_v0 }
0x2035   : > { %3248 = vmatpush3.msra.mxu0 %v4287_v11 }
0x2036   : > { %3263 = vmatprep.subr.mxu0 %v3798_v0 }
0x20ee   : > { %v2131_v50 = vpop.f32.mrf.mxu0 }
0x20ef   : > { %v2135_v51 = vadd.f32 %v2131_v50, %v2061_v49 }
0x20f0   : > { %v3229_v52 = vpop.f32.mrf.mxu0 }
0x20f1   : > { %v2951_v53 = vmul.f32 -1.442695, %v2135_v51 }
0x20f3   : > { %3487 = vpow2.f32 %v2951_v53 }
0x20f4   : > { %3489 = vtanh.f32 %v2135_v51 }
0x2100   : > { %v3488_v54 = vpop.eup %3487 }
0x2101   : > { %v2140_v55 = vadd.f32 1.0, %v3488_v54  ;;  %v3490_v56 = vpop.eup %3489 }
0x2103   : > { %3491 = vrcp.f32 %v2140_v55 }
0x2110   : > { %v3492_v57 = vpop.eup %3491 }
0x2111   : > { %v2143_v58 = vsel %vm4124_vm6, %v3490_v56, %v3492_v57  ;;  %v2424_v56 = vld [vmem:[#allocation2 + $0x6] sm:$0x1] }
0x2112   : > { %2155 = vrot.lane.b32.xlu0 %v2143_v58, %s3800_s20  ;;  %v2153_v62 = vmul.f32 %v2151_v61, %v2143_v58 }
0x2184   : > { %v2156_v59 = vpop.permute.xlu0 %2155 }
0x2185   : > { %v2158_v60 = vmul.f32 %v2156_v59, %v2143_v58 }
0x2187   : > { %2160 = vrot.lane.b32.xlu0 %v2158_v60, %s3801_s28 }
0x21f9   : > { %v2161_v63 = vpop.permute.xlu0 %2160 }
0x21fa   : > { %v2163_v1 = vadd.f32 %v2161_v63, %v2153_v62 }
0x21fc   : > { %3493 = vtanh.f32 %v2163_v1 }
0x2209   : > { %v3494_v2 = vpop.eup %3493 }
0x220a   : > { %2166 = vrot.lane.b32.xlu1 %v3494_v2, %s3800_s20 }
0x220e   : > { %2171 = vrot.lane.b32.xlu1 %v2163_v1, %s3802_s25 }
0x227c   : > { %v2167_v3 = vpop.permute.xlu1 %2166 }
0x227d   : > { %v2169_v4 = vmul.f32 %v2167_v3, %v2143_v58 }
0x227f   : > { %2176 = vrot.lane.b32.xlu0 %v2169_v4, %s3801_s28 }
0x2280   : > { %v2172_v5 = vpop.permute.xlu1 %2171 }
0x2281   : > { %2174 = vst.msk [vmem:[#allocation5] sm:$0x1] %vm629_vm2, %v2172_v5 }
0x2288   : > { %v2955_v6 = vld [vmem:[#allocation5] ss:$0 sm:$0xff] }
0x2289   : > { %2271 = vrot.lane.b32.xlu1 %v2955_v6, %s3801_s28 }
0x22f1   : > { %v2177_v7 = vpop.permute.xlu0 %2176 }
0x22f2   : > { %2180 = vst.msk [vmem:[#allocation3 + $0x3] sm:$0x1] %vm629_vm2, %v2177_v7  ;;  %2179 = vst.msk [vmem:[#allocation4] sm:$0x1] %vm629_vm2, %v2177_v7 }
0x22f9   : > { %v2181_v12 = vld [vmem:[#allocation4] sm:$0x1] }
0x22fa   : > { %3239 = vmatmul.mubr.msk.f32.vlgmr.msra.gmra.mxu1 %vm554_vm3, %v2181_v12 }
0x22fb   : > { %3253 = vmatpush3.msra.mxu1 %v4276_v25  ;;  %3260 = vmatprep.mubr.msk.f32.mxu1 %vm3799_vm0, %v3798_v0  ;;  %v2272_v24 = vpop.permute.xlu1 %2271 }
0x22fc   : > { %3254 = vmatprep.subr.mxu1 %v3798_v0 }
0x22fd   : > { %3255 = vmatpush3.msra.mxu1 %v4278_v26 }
0x22fe   : > { %3256 = vmatprep.subr.mxu1 %v3798_v0 }
0x22ff   : > { %3257 = vmatpush3.msra.mxu1 %v4283_v27 }
0x2300   : > { %3258 = vmatprep.subr.mxu1 %v3798_v0 }
0x2301   : > { %3259 = vmatpush3.msra.mxu1 %v4287_v11 }
0x2302   : > { %3274 = vmatprep.subr.mxu1 %v3798_v0 }
0x23ba   : > { %v2252_v14 = vpop.f32.mrf.mxu1 }
0x23bb   : > { %v2256_v15 = vadd.f32 %v2252_v14, %v2182_v13 }
0x23bc   : > { %v3240_v16 = vpop.f32.mrf.mxu1 }
0x23bd   : > { %v2954_v17 = vmul.f32 -1.442695, %v2256_v15 }
0x23bf   : > { %3495 = vpow2.f32 %v2954_v17 }
0x23c0   : > { %3497 = vtanh.f32 %v2256_v15 }
0x23cc   : > { %v3496_v18 = vpop.eup %3495 }
0x23cd   : > { %v2261_v19 = vadd.f32 1.0, %v3496_v18  ;;  %v3498_v20 = vpop.eup %3497 }
0x23cf   : > { %3499 = vrcp.f32 %v2261_v19 }
0x23dc   : > { %v3500_v21 = vpop.eup %3499 }
0x23dd   : > { %v2264_v22 = vsel %vm4124_vm6, %v3498_v20, %v3500_v21  ;;  %v2545_v20 = vld [vmem:[#allocation2 + $0x7] sm:$0x1] }
0x23de   : > { %2276 = vrot.lane.b32.xlu0 %v2264_v22, %s3800_s20  ;;  %v2274_v9 = vmul.f32 %v2272_v24, %v2264_v22 }
0x2450   : > { %v2277_v8 = vpop.permute.xlu0 %2276 }
0x2451   : > { %v2279_v23 = vmul.f32 %v2277_v8, %v2264_v22 }
0x2453   : > { %2281 = vrot.lane.b32.xlu0 %v2279_v23, %s3801_s28 }
0x24c5   : > { %v2282_v10 = vpop.permute.xlu0 %2281 }
0x24c6   : > { %v2284_v29 = vadd.f32 %v2282_v10, %v2274_v9 }
0x24c8   : > { %3501 = vtanh.f32 %v2284_v29 }
0x24d5   : > { %v3502_v30 = vpop.eup %3501 }
0x24d6   : > { %2287 = vrot.lane.b32.xlu1 %v3502_v30, %s3800_s20 }
0x24da   : > { %2292 = vrot.lane.b32.xlu1 %v2284_v29, %s3802_s25 }
0x2548   : > { %v2288_v31 = vpop.permute.xlu1 %2287 }
0x2549   : > { %v2290_v32 = vmul.f32 %v2288_v31, %v2264_v22 }
0x254b   : > { %2297 = vrot.lane.b32.xlu0 %v2290_v32, %s3801_s28 }
0x254c   : > { %v2293_v33 = vpop.permute.xlu1 %2292 }
0x254d   : > { %2295 = vst.msk [vmem:[#allocation5] sm:$0x1] %vm629_vm2, %v2293_v33 }
0x2554   : > { %v2958_v34 = vld [vmem:[#allocation5] ss:$0 sm:$0xff] }
0x2555   : > { %2392 = vrot.lane.b32.xlu1 %v2958_v34, %s3801_s28 }
0x25bd   : > { %v2298_v35 = vpop.permute.xlu0 %2297 }
0x25be   : > { %2301 = vst.msk [vmem:[#allocation3 + $0x4] sm:$0x1] %vm629_vm2, %v2298_v35  ;;  %2300 = vst.msk [vmem:[#allocation4] sm:$0x1] %vm629_vm2, %v2298_v35 }
0x25c5   : > { %v2302_v36 = vld [vmem:[#allocation4] sm:$0x1] }
0x25c6   : > { %3250 = vmatmul.mubr.msk.f32.vlgmr.msra.gmra.mxu0 %vm554_vm3, %v2302_v36 }
0x25c7   : > { %3264 = vmatpush3.msra.mxu0 %v4276_v25  ;;  %3271 = vmatprep.mubr.msk.f32.mxu0 %vm3799_vm0, %v3798_v0 }
0x25c8   : > { %3265 = vmatprep.subr.mxu0 %v3798_v0 }
0x25c9   : > { %3266 = vmatpush3.msra.mxu0 %v4278_v26 }
0x25ca   : > { %3267 = vmatprep.subr.mxu0 %v3798_v0 }
0x25cb   : > { %3268 = vmatpush3.msra.mxu0 %v4283_v27 }
0x25cc   : > { %3269 = vmatprep.subr.mxu0 %v3798_v0 }
0x25cd   : > { %3270 = vmatpush3.msra.mxu0 %v4287_v11  ;;  %v2393_v11 = vpop.permute.xlu1 %2392 }
0x2686   : > { %v2373_v38 = vpop.f32.mrf.mxu0 }
0x2687   : > { %v2377_v39 = vadd.f32 %v2373_v38, %v2303_v37  ;;  %v2669_v38 = vld [vmem:[#allocation17 + $0x18] sm:$0xff] }
0x2688   : > { %v3251_v40 = vpop.f32.mrf.mxu0 }
0x2689   : > { %v2957_v25 = vmul.f32 -1.442695, %v2377_v39  ;;  %v2666_v40 = vld [vmem:[#allocation17] sm:$0xff] }
0x268b   : > { %3503 = vpow2.f32 %v2957_v25 }
0x268c   : > { %3505 = vtanh.f32 %v2377_v39  ;;  %v2668_v39 = vld [vmem:[#allocation17 + $0x10] sm:$0xff] }
0x2698   : > { %v3504_v41 = vpop.eup %3503 }
0x2699   : > { %v2382_v42 = vadd.f32 1.0, %v3504_v41  ;;  %v3506_v43 = vpop.eup %3505 }
0x269b   : > { %3507 = vrcp.f32 %v2382_v42 }
0x26a8   : > { %v3508_v26 = vpop.eup %3507 }
0x26a9   : > { %v2385_v44 = vsel %vm4124_vm6, %v3506_v43, %v3508_v26 }
0x26aa   : > { %2397 = vrot.lane.b32.xlu0 %v2385_v44, %s3800_s20  ;;  %v2395_v46 = vmul.f32 %v2393_v11, %v2385_v44 }
0x271c   : > { %v2398_v27 = vpop.permute.xlu0 %2397 }
0x271d   : > { %v2400_v45 = vmul.f32 %v2398_v27, %v2385_v44 }
0x271f   : > { %2402 = vrot.lane.b32.xlu0 %v2400_v45, %s3801_s28 }
0x2791   : > { %v2403_v47 = vpop.permute.xlu0 %2402 }
0x2792   : > { %v2405_v48 = vadd.f32 %v2403_v47, %v2395_v46 }
0x2794   : > { %3509 = vtanh.f32 %v2405_v48 }
0x27a1   : > { %v3510_v49 = vpop.eup %3509 }
0x27a2   : > { %2408 = vrot.lane.b32.xlu1 %v3510_v49, %s3800_s20 }
0x27a6   : > { %2413 = vrot.lane.b32.xlu1 %v2405_v48, %s3802_s25 }
0x2814   : > { %v2409_v50 = vpop.permute.xlu1 %2408 }
0x2815   : > { %v2411_v51 = vmul.f32 %v2409_v50, %v2385_v44 }
0x2817   : > { %2418 = vrot.lane.b32.xlu0 %v2411_v51, %s3801_s28 }
0x2818   : > { %v2414_v52 = vpop.permute.xlu1 %2413 }
0x2819   : > { %2416 = vst.msk [vmem:[#allocation5] sm:$0x1] %vm629_vm2, %v2414_v52 }
0x2820   : > { %v2961_v53 = vld [vmem:[#allocation5] ss:$0 sm:$0xff] }
0x2821   : > { %2513 = vrot.lane.b32.xlu1 %v2961_v53, %s3801_s28 }
0x2889   : > { %v2419_v54 = vpop.permute.xlu0 %2418 }
0x288a   : > { %2422 = vst.msk [vmem:[#allocation3 + $0x5] sm:$0x1] %vm629_vm2, %v2419_v54  ;;  %2421 = vst.msk [vmem:[#allocation4] sm:$0x1] %vm629_vm2, %v2419_v54 }
0x2891   : > { %v2423_v55 = vld [vmem:[#allocation4] sm:$0x1] }
0x2892   : > { %3261 = vmatmul.mubr.msk.f32.vlgmr.msra.gmra.mxu1 %vm554_vm3, %v2423_v55 }
0x2893   : > { %3282 = vmatprep.mubr.msk.f32.mxu1 %vm3799_vm0, %v3798_v0  ;;  %v2514_v5 = vpop.permute.xlu1 %2513  ;;  %3275 = vmatpush3.msra.mxu1 %v2669_v38 }
0x2894   : > { %3276 = vmatprep.subr.mxu1 %v3798_v0 }
0x2895   : > { %3277 = vmatpush3.msra.mxu1 %v2668_v39 }
0x2896   : > { %3278 = vmatprep.subr.mxu1 %v3798_v0 }
0x2897   : > { %3279 = vmatpush3.msra.mxu1 %v2667_v28 }
0x2898   : > { %3280 = vmatprep.subr.mxu1 %v3798_v0  ;;  %v2965_v0 = vld [vmem:[%s4531_s9] ss:$0 sm:$0xff] }
0x2899   : > { %3281 = vmatpush3.msra.mxu1 %v2666_v40 }
0x2952   : > { %v2494_v57 = vpop.f32.mrf.mxu1 }
0x2953   : > { %v2498_v58 = vadd.f32 %v2494_v57, %v2424_v56 }
0x2954   : > { %v3262_v59 = vpop.f32.mrf.mxu1 }
0x2955   : > { %v2960_v60 = vmul.f32 -1.442695, %v2498_v58 }
0x2957   : > { %3511 = vpow2.f32 %v2960_v60 }
0x2958   : > { %3513 = vtanh.f32 %v2498_v58 }
0x2964   : > { %v3512_v61 = vpop.eup %3511 }
0x2965   : > { %v2503_v62 = vadd.f32 1.0, %v3512_v61  ;;  %v3514_v63 = vpop.eup %3513 }
0x2967   : > { %3515 = vrcp.f32 %v2503_v62 }
0x2974   : > { %v3516_v1 = vpop.eup %3515 }
0x2975   : > { %v2506_v2 = vsel %vm4124_vm6, %v3514_v63, %v3516_v1 }
0x2976   : > { %2518 = vrot.lane.b32.xlu0 %v2506_v2, %s3800_s20  ;;  %v2516_v6 = vmul.f32 %v2514_v5, %v2506_v2 }
0x29e8   : > { %v2519_v3 = vpop.permute.xlu0 %2518 }
0x29e9   : > { %v2521_v4 = vmul.f32 %v2519_v3, %v2506_v2 }
0x29eb   : > { %2523 = vrot.lane.b32.xlu0 %v2521_v4, %s3801_s28 }
0x2a5d   : > { %v2524_v7 = vpop.permute.xlu0 %2523 }
0x2a5e   : > { %v2526_v12 = vadd.f32 %v2524_v7, %v2516_v6 }
0x2a60   : > { %3517 = vtanh.f32 %v2526_v12 }
0x2a6d   : > { %v3518_v13 = vpop.eup %3517 }
0x2a6e   : > { %2529 = vrot.lane.b32.xlu1 %v3518_v13, %s3800_s20 }
0x2a72   : > { %2534 = vrot.lane.b32.xlu1 %v2526_v12, %s3802_s25 }
0x2ae0   : > { %v2530_v14 = vpop.permute.xlu1 %2529 }
0x2ae1   : > { %v2532_v15 = vmul.f32 %v2530_v14, %v2506_v2 }
0x2ae3   : > { %2539 = vrot.lane.b32.xlu0 %v2532_v15, %s3801_s28 }
0x2ae4   : > { %v2535_v16 = vpop.permute.xlu1 %2534 }
0x2ae5   : > { %2537 = vst.msk [vmem:[#allocation5] sm:$0x1] %vm629_vm2, %v2535_v16 }
0x2aec   : > { %v2964_v17 = vld [vmem:[#allocation5] ss:$0 sm:$0xff] }
0x2aed   : > { %2634 = vrot.lane.b32.xlu1 %v2964_v17, %s3801_s28 }
0x2b55   : > { %v2540_v18 = vpop.permute.xlu0 %2539 }
0x2b56   : > { %2543 = vst.msk [vmem:[#allocation3 + $0x6] sm:$0x1] %vm629_vm2, %v2540_v18  ;;  %2542 = vst.msk [vmem:[#allocation4] sm:$0x1] %vm629_vm2, %v2540_v18 }
0x2b5d   : > { %v2544_v19 = vld [vmem:[#allocation4] sm:$0x1] }
0x2b5e   : > { %3272 = vmatmul.mubr.msk.f32.vlgmr.msra.gmra.mxu0 %vm554_vm3, %v2544_v19 }
0x2b5f   : > { %v2635_v33 = vpop.permute.xlu1 %2634 }
0x2c1e   : > { %v2615_v21 = vpop.f32.mrf.mxu0 }
0x2c1f   : > { %v2619_v22 = vadd.f32 %v2615_v21, %v2545_v20 }
0x2c20   : > { %v3273_v8 = vpop.f32.mrf.mxu0 }
0x2c21   : > { %v2963_v23 = vmul.f32 -1.442695, %v2619_v22 }
0x2c23   : > { %3519 = vpow2.f32 %v2963_v23 }
0x2c24   : > { %3521 = vtanh.f32 %v2619_v22 }
0x2c30   : > { %v3520_v24 = vpop.eup %3519 }
0x2c31   : > { %v2624_v9 = vadd.f32 1.0, %v3520_v24  ;;  %v3522_v10 = vpop.eup %3521 }
0x2c33   : > { %3523 = vrcp.f32 %v2624_v9 }
0x2c40   : > { %v3524_v29 = vpop.eup %3523 }
0x2c41   : > { %v2627_v30 = vsel %vm4124_vm6, %v3522_v10, %v3524_v29 }
0x2c42   : > { %2639 = vrot.lane.b32.xlu0 %v2627_v30, %s3800_s20  ;;  %v2637_v34 = vmul.f32 %v2635_v33, %v2627_v30 }
0x2cb4   : > { %v2640_v31 = vpop.permute.xlu0 %2639 }
0x2cb5   : > { %v2642_v32 = vmul.f32 %v2640_v31, %v2627_v30 }
0x2cb7   : > { %2644 = vrot.lane.b32.xlu0 %v2642_v32, %s3801_s28 }
0x2d29   : > { %v2645_v35 = vpop.permute.xlu0 %2644 }
0x2d2a   : > { %v2647_v36 = vadd.f32 %v2645_v35, %v2637_v34 }
0x2d2c   : > { %3525 = vtanh.f32 %v2647_v36 }
0x2d39   : > { %v3526_v37 = vpop.eup %3525 }
0x2d3a   : > { %2650 = vrot.lane.b32.xlu1 %v3526_v37, %s3800_s20  ;;  %s3711_s20 = scalar_lea.vmem %s2766_s29, 128 }
0x2d3b   : > { %p3712_p2 = scmp.ne.s32.totalorder %s2766_s29, %s3711_s20 }
0x2d3d   : > { %p3713_p8 = pnand %p3712_p2, %p4565_p10 }
0x2d3e   : > { %2655 = vrot.lane.b32.xlu1 %v2647_v36, %s3802_s25 }
0x2d3f   : > { %p3714_p11 = pneg %p3713_p8 }
0x2dac   : > { %v2651_v25 = vpop.permute.xlu1 %2650 }
0x2dad   : > { %v2653_v41 = vmul.f32 %v2651_v25, %v2627_v30 }
0x2daf   : > { %2660 = vrot.lane.b32.xlu0 %v2653_v41, %s3801_s28  ;;  %s3715_s28 = sshll.u32 %s3803_s19, 4  ;;  %s3716_s28 = int_to_ptr.vmem [resolvable:$false] %s3715_s28 }
0x2db0   : > { %v2656_v42 = vpop.permute.xlu1 %2655  ;;  %s3717_s11 = scalar_lea.vmem %s3716_s28, 256  ;;  %p3718_p13 = scmp.lt.s32.totalorder %s2766_s29, %s3716_s28 }
0x2db1   : > { %2658 = vst.msk [vmem:[#allocation5] sm:$0x1] %vm629_vm2, %v2656_v42  ;;  %p3719_p5 = scmp.lt.s32.totalorder %s3717_s11, %s3711_s20 }
0x2db3   : > { %p3720_p9 = por %p3719_p5, %p3718_p13 }
0x2db5   : > { %p3721_p1 = pnand %p3720_p9, %p3714_p11 }
0x2e21   : > { %v2661_v43 = vpop.permute.xlu0 %2660 }
0x2e22   : > { %2663 = vst.msk [vmem:[#allocation4] sm:$0x1] %vm629_vm2, %v2661_v43  ;;  %2664 = vst.msk [vmem:[#allocation3 + $0x7] sm:$0x1] %vm629_vm2, %v2661_v43 }
0x2e29   : > { %v2665_v26 = vld [vmem:[#allocation3] sm:$0xff] }
0x2e2a   : > { %3283 = vmatmul.mubr.msk.f32.vlgmr.msra.gmra.mxu1 %vm554_vm3, %v2665_v26 }
0x2eea   : > { %v2746_v44 = vpop.f32.mrf.mxu1 }
0x2eeb   : > { %v2747_v27 = vadd.f32 %v2965_v0, %v2746_v44 }
0x2eec   : > { %v3284_v45 = vpop.f32.mrf.mxu1 }
0x2eed   : > { %2750 = vst [vmem:[%s461_s24] sm:$0xff] %v2747_v27 }
0x2eee   : > { %3724 = shalt.err (!%p3721_p1)
}
0x2eef   : > { %s3725_s25 = scalar_lea.hbm %s4485_s1, 128  ;;  %s3729_s17 = scalar_lea.hbm %s4532_s10, 256 }
0x2ef0   : > { %p3726_p3 = scmp.ne.s32.totalorder %s4485_s1, %s3725_s25  ;;  %p3730_p12 = scmp.lt.s32.totalorder %s4485_s1, %s4532_s10 }
0x2ef1   : > { %p3731_p0 = scmp.lt.s32.totalorder %s3729_s17, %s3725_s25 }
0x2ef2   : > { %p3727_p4 = pnand %p3726_p3, %p4565_p10 }
0x2ef3   : > { %p3732_p7 = por %p3731_p0, %p3730_p12 }
0x2ef4   : > { %p3728_p6 = pneg %p3727_p4 }
0x2ef6   : > { %p3733_p2 = pnand %p3732_p7, %p3728_p6 }
0x2ef8   : > { %3736 = shalt.err (!%p3733_p2)
}
0x2ef9   : > { %3311 = dma.vmem_to_hbm [thread:$0]  (%p4565_p10), %s2766_s29, 128, %s4485_s1, %s2752_s2  }
0x2efa PF: > { %s2777_s23 = sand.u32 1, %s3775_s13   ;;  %p4566_p8 = scmp.ne.s32.totalorder %s4553_s22, 0 }
0x2efb   : > { %p4567_p11 = scmp.ge.s32.totalorder %s3787_s16, 2  ;;  %s2778_s24 = scalar_lea.sflag [#allocation8], %s2777_s23 }
0x2efd   : > { %p3337_p13 = pnand %p4567_p11, %p4566_p8 }
0x2eff   : > { %p3338_p5 = pneg %p3337_p13 }
0x2f01   : > { %3770 = dma.done.wait (%p3338_p5), %s2778_s24, 128  }
0x2f02   : > { %3772 = vsyncadd (%p3338_p5), %s2778_s24, 4294967168  ;;  %p26_p9 = scmp.ge.s32.totalorder %s3980_s26, 4   ;;  %s4568_s13 = smov %s3779_s14 }
0x2f03   : > { %s4569_s14 = smov %s3783_s15  ;;  %s4570_s15 = smov %s3991_s18 }
0x2f04   : > { %s4571_s16 = smov %s3980_s26  ;;  %28 = sbr.rel (!%p26_p9) target bundleno = 14 (0xe), region = 129 }
0x2f09   :  { %2783 = vsyncpa [#allocation7], 1 }
0x2f0a   :  { %2785 = vsyncpa [#allocation7 + $0x1], 1 }
0x2f0b   :  { %2786 = vsyncpa [#allocation10], 1 }
0x2f0c   :  { %2787 = vsyncpa [#allocation13], 1 }
0x2f0d   :  { %2788 = vsyncpa [#allocation16], 1 }
0x2f0e   :  { %2789 = vsyncpa [#allocation8], 1 }
0x2f0f   :  { %2791 = vsyncpa [#allocation8 + $0x1], 1 }

</bundles_post_ra>
